<compile_context>
chip_gen: v6e
topology: v6e:2x2x1
jax: 0.10.0
libtpu: 0.0.40
codegen_flags: <defaults>
</compile_context>

<pallas_src>
import jax
import jax.numpy as jnp
import numpy as np
from jax import lax
from jax.experimental import pallas as pl
from jax.experimental.pallas import tpu as pltpu

_VMEM = pl.BlockSpec(memory_space=pltpu.MemorySpace.VMEM)


# --------------------------------------------------------------------------
# Fused forward kernel
# --------------------------------------------------------------------------
def make_fused_kernel(num_layers, batch):
    """Fused forward: encoder -> projector -> GRU stack -> masks -> decoder."""

    def kernel(*refs):
        patches_ref, we_ref, be_ref, wp_ref, bp_ref = refs[:5]
        gru_refs = refs[5:5 + 6 * num_layers]
        wm_ref, bm_ref, wd_ref, bd_ref, o_ref = refs[5 + 6 * num_layers:]

        B = batch
        TB = patches_ref.shape[0]            # rows ordered (t, b): time-major
        T = TB // B
        F = we_ref.shape[1]

        dot = lambda a, b: jnp.dot(a, b, preferred_element_type=jnp.float32)

        # ---- audio encoder: Conv1d(F,F,k=16,s=8,p=7) as ONE k=16F matmul ----
        enc = dot(patches_ref[...], we_ref[...]) + be_ref[...]          # (TB, F)

        # ---- feature projector: Conv1d(F,H0,k=3,p=1) as ONE k=3F matmul ----
        # time-major rows => shifting by one frame == shifting by B rows.
        zB = jnp.zeros((B, F), jnp.float32)
        prev = jnp.concatenate([zB, enc[:TB - B, :]], axis=0)
        nxt = jnp.concatenate([enc[B:, :], zB], axis=0)
        col = jnp.concatenate([prev, enc, nxt], axis=1)                 # (TB, 3F)
        h2d = dot(col, wp_ref[...]) + bp_ref[...]                       # (TB, H0)

        # ---- GRU layers (PyTorch gate order r,z,n) + LayerNorm, fused ----
        for l in range(num_layers):
            base = 6 * l
            w_ih = gru_refs[base + 0][...]
            w_hh = gru_refs[base + 1][...]   # loaded once, resident across steps
            b_ih = gru_refs[base + 2][...]
            b_hh = gru_refs[base + 3][...]
            gamma = gru_refs[base + 4][...]
            beta = gru_refs[base + 5][...]
            H = w_hh.shape[0]

            # input projection for every timestep in one 2-D MXU matmul.
            xp = dot(h2d, w_ih) + b_ih                                  # (TB, 3H)

            h = jnp.zeros((B, H), jnp.float32)
            hs = []
            for t in range(T):        # static unroll (T small); h stays in vregs
                hp = dot(h, w_hh) + b_hh
                xt = xp[t * B:(t + 1) * B, :]          # static leading-row slice
                r = jax.nn.sigmoid(xt[:, 0:H] + hp[:, 0:H])
                z = jax.nn.sigmoid(xt[:, H:2 * H] + hp[:, H:2 * H])
                n = jnp.tanh(xt[:, 2 * H:3 * H] + r * hp[:, 2 * H:3 * H])
                h = (1.0 - z) * n + z * h
                hs.append(h)
            y = jnp.concatenate(hs, axis=0)                             # (TB, H)

            # LayerNorm over features (PyTorch default eps 1e-5).
            mean = jnp.mean(y, axis=-1, keepdims=True)
            var = jnp.mean((y - mean) ** 2, axis=-1, keepdims=True)
            h2d = (y - mean) * lax.rsqrt(var + 1e-5) * gamma + beta

        # ---- mask heads (packed (Hl,2F)), 2-spk softmax == sigmoid(diff) ----
        m = jnp.maximum(dot(h2d, wm_ref[...]) + bm_ref[...], 0.0)       # (TB, 2F)
        s1 = jax.nn.sigmoid(m[:, 0:F] - m[:, F:2 * F])
        masked1 = s1 * enc
        masked2 = enc - masked1                                         # (1-s1)*enc

        # repack to lane-dense (2B, T*F) via static row slices + lane concat.
        wide1 = jnp.concatenate(
            [masked1[t * B:(t + 1) * B, :] for t in range(T)], axis=1)
        wide2 = jnp.concatenate(
            [masked2[t * B:(t + 1) * B, :] for t in range(T)], axis=1)
        wide = jnp.concatenate([wide1, wide2], axis=0)                  # (2B, T*F)

        # ---- ConvTranspose1d(F,1,k=16,s=8,p=4) as ONE banded matmul ----
        # lane-dense (2B, 8*T) store; frame boundaries are zero blocks in wd.
        o_ref[...] = dot(wide, wd_ref[...]) + bd_ref[...]

    return kernel


# --------------------------------------------------------------------------
# Parameters: raw (PyTorch-layout) init + one-time kernel-layout preparation
# --------------------------------------------------------------------------
def init_params(key, F, hidden, num_layers):
    keys = iter(jax.random.split(key, 64))

    def nrm(shape, scale=0.1):
        return scale * jax.random.normal(next(keys), shape, jnp.float32)

    p = {}
    p["enc_w"] = nrm((F, F, 16))            # Conv1d weight (out, in, K)
    p["enc_b"] = nrm((F,))
    p["proj_w"] = nrm((hidden[0], F, 3))
    p["proj_b"] = nrm((hidden[0],))
    p["gru"] = []
    for i in range(num_layers):
        Hin = hidden[0] if i == 0 else hidden[i - 1]
        H = hidden[i]
        p["gru"].append(dict(
            w_ih=nrm((3 * H, Hin)), w_hh=nrm((3 * H, H)),
            b_ih=nrm((3 * H,)), b_hh=nrm((3 * H,)),
            gamma=jnp.ones((H,), jnp.float32),
            beta=jnp.zeros((H,), jnp.float32)))
    p["out_w"] = [nrm((F, hidden[-1], 1)) for _ in range(2)]
    p["out_b"] = [nrm((F,)) for _ in range(2)]
    p["dec_w"] = nrm((F, 1, 16))            # ConvTranspose1d weight (in, out, K)
    p["dec_b"] = nrm((1,))
    return p


def prepare_params(params, T_enc):
    """One-time re-layout of all weights into kernel-friendly form."""
    F = params["enc_w"].shape[0]
    f32 = lambda a: jnp.asarray(a, jnp.float32)

    prep = {
        # rows ordered (tap k, channel c): matches the [frame_t | frame_{t+1}]
        # patch lane layout built in the wrapper -> one k=16F encoder matmul.
        "we": jnp.transpose(f32(params["enc_w"]), (2, 1, 0)).reshape(16 * F, F),
        "be": f32(params["enc_b"]).reshape(1, F),
        # projector taps (prev|cur|nxt) stacked on rows -> one k=3F matmul.
        "wp": jnp.transpose(f32(params["proj_w"]), (2, 1, 0)).reshape(3 * F, -1),
        "bp": f32(params["proj_b"]).reshape(1, -1),
        "gru": [],
    }
    for layer in params["gru"]:
        prep["gru"].append(dict(
            w_ih=f32(layer["w_ih"]).T,                 # (Hin, 3H)
            w_hh=f32(layer["w_hh"]).T,                 # (H, 3H)
            b_ih=f32(layer["b_ih"]).reshape(1, -1),
            b_hh=f32(layer["b_hh"]).reshape(1, -1),
            gamma=f32(layer["gamma"]).reshape(1, -1),
            beta=f32(layer["beta"]).reshape(1, -1)))

    # Both mask heads packed into one lane-dense (Hl, 2F) matrix.
    prep["wm"] = jnp.concatenate([f32(params["out_w"][0][:, :, 0]).T,
                                  f32(params["out_w"][1][:, :, 0]).T], axis=1)
    prep["bm"] = jnp.concatenate([f32(params["out_b"][0]),
                                  f32(params["out_b"][1])]).reshape(1, 2 * F)

    # Decoder ConvTranspose1d(k=16,s=8,p=4) re-expressed as a banded
    # (T_enc*F, 8*T_enc) matrix: y[b, 8t+j] = sum over frames {t-1,t,t+1} of
    # masked[frame] @ tap-weights; boundaries handled by zero blocks, so the
    # kernel emits the whole lane-dense (2B, 8*T_enc) output in one matmul.
    Wd = np.asarray(params["dec_w"][:, 0, :], np.float32)     # (F, 16)
    z4 = np.zeros((F, 4), np.float32)
    tap_prev = np.concatenate([Wd[:, 12:16], z4], axis=1)     # contributes j<4
    tap_cur = Wd[:, 4:12]
    tap_next = np.concatenate([z4, Wd[:, 0:4]], axis=1)       # contributes j>=4
    Wbig = np.zeros((T_enc * F, 8 * T_enc), np.float32)
    for t in range(T_enc):
        c = 8 * t
        Wbig[t * F:(t + 1) * F, c:c + 8] += tap_cur
        if t >= 1:
            Wbig[(t - 1) * F:t * F, c:c + 8] += tap_prev
        if t + 1 < T_enc:
            Wbig[(t + 1) * F:(t + 2) * F, c:c + 8] += tap_next
    prep["wd"] = jnp.asarray(Wbig)
    prep["bd"] = jnp.full((1, 8 * T_enc), float(np.asarray(params["dec_b"])[0]),
                          jnp.float32)
    return prep


# --------------------------------------------------------------------------
# Forward (one pallas_call; only pad/frame/transpose glue stays in XLA)
# --------------------------------------------------------------------------
def svsrnn_forward(prep, x):
    """x: (B, T, num_features) channels-last. Returns [(B,1,T_out)] * 2."""
    B, T, F = x.shape
    x = x.astype(jnp.float32)
    T_enc = (T + 2 * 7 - 16) // 8 + 1
    n_frames = T_enc + 1
    pad_r = 8 * n_frames - 7 - T

    # Frame the padded input and build [frame_t | frame_{t+1}] patches in
    # TIME-MAJOR row order (t, b) -> lane-dense (T_enc*B, 16F) encoder input.
    x_pad = jnp.pad(x, ((0, 0), (7, pad_r), (0, 0)))
    frames = x_pad.reshape(B, n_frames, 8 * F)
    patches = jnp.concatenate([frames[:, :T_enc, :], frames[:, 1:, :]], axis=-1)
    patches = jnp.transpose(patches, (1, 0, 2)).reshape(T_enc * B, 16 * F)

    num_layers = len(prep["gru"])
    inputs = [patches, prep["we"], prep["be"], prep["wp"], prep["bp"]]
    for layer in prep["gru"]:
        inputs += [layer["w_ih"], layer["w_hh"], layer["b_ih"],
                   layer["b_hh"], layer["gamma"], layer["beta"]]
    inputs += [prep["wm"], prep["bm"], prep["wd"], prep["bd"]]

    y = pl.pallas_call(
        make_fused_kernel(num_layers, B),
        out_shape=jax.ShapeDtypeStruct((2 * B, 8 * T_enc), jnp.float32),
        in_specs=[_VMEM] * len(inputs),
        out_specs=_VMEM,
    )(*inputs)

    T_out = 8 * T_enc
    return [y[:B].reshape(B, 1, T_out), y[B:].reshape(B, 1, T_out)]


# --------------------------------------------------------------------------
# Pure-JAX reference of the PyTorch module (for in-script verification)
# --------------------------------------------------------------------------
def reference_forward(params, x):
    B, T, F = x.shape

    def im2col(a, k, s, p):
        Bb, Tt, C = a.shape
        ap = jnp.pad(a, ((0, 0), (p, p), (0, 0)))
        To = (Tt + 2 * p - k) // s + 1
        cols = [ap[:, i:i + s * (To - 1) + 1:s, :] for i in range(k)]
        return jnp.stack(cols, axis=2).reshape(Bb, To, k * C), To

    patches, T_enc = im2col(x, 16, 8, 7)
    w_enc = jnp.transpose(params["enc_w"], (2, 1, 0)).reshape(16 * F, F)
    encoded = (patches.reshape(B * T_enc, 16 * F) @ w_enc
               + params["enc_b"]).reshape(B, T_enc, F)

    H0 = params["proj_w"].shape[0]
    p2, _ = im2col(encoded, 3, 1, 1)
    w_proj = jnp.transpose(params["proj_w"], (2, 1, 0)).reshape(3 * F, H0)
    h = (p2.reshape(B * T_enc, 3 * F) @ w_proj
         + params["proj_b"]).reshape(B, T_enc, H0)

    for layer in params["gru"]:
        H = layer["w_hh"].shape[1]
        wih, whh = layer["w_ih"].T, layer["w_hh"].T
        bih, bhh = layer["b_ih"], layer["b_hh"]

        def step(hprev, xt):
            gx = xt @ wih + bih
            gh = hprev @ whh + bhh
            r = jax.nn.sigmoid(gx[:, :H] + gh[:, :H])
            z = jax.nn.sigmoid(gx[:, H:2 * H] + gh[:, H:2 * H])
            n = jnp.tanh(gx[:, 2 * H:] + r * gh[:, 2 * H:])
            hn = (1.0 - z) * n + z * hprev
            return hn, hn

        _, ys = lax.scan(step, jnp.zeros((B, H), jnp.float32),
                         jnp.swapaxes(h, 0, 1))
        y = jnp.swapaxes(ys, 0, 1)
        mean = y.mean(-1, keepdims=True)
        var = ((y - mean) ** 2).mean(-1, keepdims=True)
        h = (y - mean) * lax.rsqrt(var + 1e-5) * layer["gamma"] + layer["beta"]

    Hl = h.shape[-1]
    masks = []
    for w, b in zip(params["out_w"], params["out_b"]):
        m = jnp.maximum(h.reshape(B * T_enc, Hl) @ w[:, :, 0].T + b, 0.0)
        masks.append(m.reshape(B, T_enc, F))
    sm = jax.nn.softmax(jnp.stack(masks, axis=1), axis=1)

    w_dec = params["dec_w"][:, 0, :]
    outs = []
    for i in range(2):
        masked = sm[:, i] * encoded
        contrib = (masked.reshape(B * T_enc, F) @ w_dec).reshape(B, T_enc, 16)
        first, second = contrib[:, :, :8], contrib[:, :, 8:]
        z = jnp.zeros((B, 1, 8), jnp.float32)
        off = (jnp.concatenate([first, z], axis=1)
               + jnp.concatenate([z, second], axis=1))
        flat = off.reshape(B, 8 * (T_enc + 1))
        y = flat[:, 4:4 + 8 * T_enc] + params["dec_b"][0]
        outs.append(y.reshape(B, 1, 8 * T_enc))
    return outs


if __name__ == "__main__":
    num_features = 16
    num_rnn_layer = 2
    num_hidden_units = [32, 32]
    B, T = 2, 128
    T_enc = (T + 2 * 7 - 16) // 8 + 1

    raw = init_params(jax.random.PRNGKey(42), num_features,
                      num_hidden_units, num_rnn_layer)
    prep = prepare_params(raw, T_enc)
    x = jax.random.normal(jax.random.PRNGKey(0), (B, T, num_features),
                          jnp.float32)

    fwd = jax.jit(svsrnn_forward)
    separated = fwd(prep, x)
    separated = [jax.block_until_ready(s) for s in separated]

    assert len(separated) == 2
    assert all(s.shape == (B, 1, 8 * T_enc) for s in separated)
    assert all(bool(jnp.all(jnp.isfinite(s))) for s in separated)

    # Verify the fused Pallas path against the pure-JAX PyTorch-equivalent ref.
    refs = reference_forward(raw, x)
    for s, r in zip(separated, refs):
        err = float(jnp.max(jnp.abs(s - r)))
        assert err < 1e-3, f"mismatch vs reference: max abs err {err}"

    print("KERNEL_OK")
</pallas_src>

<mosaic_0001>
module attributes {stable_mosaic.version = 11 : i64} {
  func.func @kernel(%arg0: memref<32x256xf32, #tpu.memory_space<vmem>>, %arg1: memref<256x16xf32, #tpu.memory_space<vmem>>, %arg2: memref<1x16xf32, #tpu.memory_space<vmem>>, %arg3: memref<48x32xf32, #tpu.memory_space<vmem>>, %arg4: memref<1x32xf32, #tpu.memory_space<vmem>>, %arg5: memref<32x96xf32, #tpu.memory_space<vmem>>, %arg6: memref<32x96xf32, #tpu.memory_space<vmem>>, %arg7: memref<1x96xf32, #tpu.memory_space<vmem>>, %arg8: memref<1x96xf32, #tpu.memory_space<vmem>>, %arg9: memref<1x32xf32, #tpu.memory_space<vmem>>, %arg10: memref<1x32xf32, #tpu.memory_space<vmem>>, %arg11: memref<32x96xf32, #tpu.memory_space<vmem>>, %arg12: memref<32x96xf32, #tpu.memory_space<vmem>>, %arg13: memref<1x96xf32, #tpu.memory_space<vmem>>, %arg14: memref<1x96xf32, #tpu.memory_space<vmem>>, %arg15: memref<1x32xf32, #tpu.memory_space<vmem>>, %arg16: memref<1x32xf32, #tpu.memory_space<vmem>>, %arg17: memref<32x32xf32, #tpu.memory_space<vmem>>, %arg18: memref<1x32xf32, #tpu.memory_space<vmem>>, %arg19: memref<256x128xf32, #tpu.memory_space<vmem>>, %arg20: memref<1x128xf32, #tpu.memory_space<vmem>>, %arg21: memref<4x128xf32, #tpu.memory_space<vmem>>) attributes {dimension_semantics = [], scalar_prefetch = 0 : i64, scratch_operands = 0 : i64, tpu.core_type = #tpu.core_type<tc>} {
    %c0 = arith.constant 0 : index
    %c0_0 = arith.constant 0 : index
    %0 = vector.load %arg0[%c0, %c0_0] : memref<32x256xf32, #tpu.memory_space<vmem>>, vector<32x256xf32>
    %c0_1 = arith.constant 0 : index
    %c0_2 = arith.constant 0 : index
    %1 = vector.load %arg1[%c0_1, %c0_2] : memref<256x16xf32, #tpu.memory_space<vmem>>, vector<256x16xf32>
    %cst = arith.constant dense<0.000000e+00> : vector<32x16xf32>
    %2 = tpu.matmul %0, %1, %cst {dimension_numbers = #tpu.dot_dimension_numbers<[1], [0], [0], [1], [0, 0, 1, 1], [], []>} : vector<32x256xf32>, vector<256x16xf32>, vector<32x16xf32> -> vector<32x16xf32>
    %c0_3 = arith.constant 0 : index
    %c0_4 = arith.constant 0 : index
    %3 = vector.load %arg2[%c0_3, %c0_4] : memref<1x16xf32, #tpu.memory_space<vmem>>, vector<1x16xf32>
    %4 = vector.broadcast %3 : vector<1x16xf32> to vector<32x16xf32>
    %5 = arith.addf %2, %4 : vector<32x16xf32>
    %cst_5 = arith.constant 0.000000e+00 : f32
    %6 = vector.broadcast %cst_5 : f32 to vector<2x16xf32>
    %7 = vector.extract_strided_slice %5 {offsets = [0, 0], sizes = [30, 16], strides = [1, 1]} : vector<32x16xf32> to vector<30x16xf32>
    %8 = tpu.concatenate %6, %7 in 0 : vector<2x16xf32>, vector<30x16xf32> -> vector<32x16xf32>
    %9 = vector.extract_strided_slice %5 {offsets = [2, 0], sizes = [30, 16], strides = [1, 1]} : vector<32x16xf32> to vector<30x16xf32>
    %10 = tpu.concatenate %9, %6 in 0 : vector<30x16xf32>, vector<2x16xf32> -> vector<32x16xf32>
    %11 = tpu.concatenate %8, %5, %10 in 1 : vector<32x16xf32>, vector<32x16xf32>, vector<32x16xf32> -> vector<32x48xf32>
    %c0_6 = arith.constant 0 : index
    %c0_7 = arith.constant 0 : index
    %12 = vector.load %arg3[%c0_6, %c0_7] : memref<48x32xf32, #tpu.memory_space<vmem>>, vector<48x32xf32>
    %cst_8 = arith.constant dense<0.000000e+00> : vector<32x32xf32>
    %13 = tpu.matmul %11, %12, %cst_8 {dimension_numbers = #tpu.dot_dimension_numbers<[1], [0], [0], [1], [0, 0, 1, 1], [], []>} : vector<32x48xf32>, vector<48x32xf32>, vector<32x32xf32> -> vector<32x32xf32>
    %c0_9 = arith.constant 0 : index
    %c0_10 = arith.constant 0 : index
    %14 = vector.load %arg4[%c0_9, %c0_10] : memref<1x32xf32, #tpu.memory_space<vmem>>, vector<1x32xf32>
    %15 = vector.broadcast %14 : vector<1x32xf32> to vector<32x32xf32>
    %16 = arith.addf %13, %15 : vector<32x32xf32>
    %c0_11 = arith.constant 0 : index
    %c0_12 = arith.constant 0 : index
    %17 = vector.load %arg5[%c0_11, %c0_12] : memref<32x96xf32, #tpu.memory_space<vmem>>, vector<32x96xf32>
    %c0_13 = arith.constant 0 : index
    %c0_14 = arith.constant 0 : index
    %18 = vector.load %arg6[%c0_13, %c0_14] : memref<32x96xf32, #tpu.memory_space<vmem>>, vector<32x96xf32>
    %c0_15 = arith.constant 0 : index
    %c0_16 = arith.constant 0 : index
    %19 = vector.load %arg7[%c0_15, %c0_16] : memref<1x96xf32, #tpu.memory_space<vmem>>, vector<1x96xf32>
    %c0_17 = arith.constant 0 : index
    %c0_18 = arith.constant 0 : index
    %20 = vector.load %arg8[%c0_17, %c0_18] : memref<1x96xf32, #tpu.memory_space<vmem>>, vector<1x96xf32>
    %c0_19 = arith.constant 0 : index
    %c0_20 = arith.constant 0 : index
    %21 = vector.load %arg9[%c0_19, %c0_20] : memref<1x32xf32, #tpu.memory_space<vmem>>, vector<1x32xf32>
    %c0_21 = arith.constant 0 : index
    %c0_22 = arith.constant 0 : index
    %22 = vector.load %arg10[%c0_21, %c0_22] : memref<1x32xf32, #tpu.memory_space<vmem>>, vector<1x32xf32>
    %cst_23 = arith.constant dense<0.000000e+00> : vector<32x96xf32>
    %23 = tpu.matmul %16, %17, %cst_23 {dimension_numbers = #tpu.dot_dimension_numbers<[1], [0], [0], [1], [0, 0, 1, 1], [], []>} : vector<32x32xf32>, vector<32x96xf32>, vector<32x96xf32> -> vector<32x96xf32>
    %24 = vector.broadcast %19 : vector<1x96xf32> to vector<32x96xf32>
    %25 = arith.addf %23, %24 : vector<32x96xf32>
    %cst_24 = arith.constant 0.000000e+00 : f32
    %26 = vector.broadcast %cst_24 : f32 to vector<2x32xf32>
    %cst_25 = arith.constant dense<0.000000e+00> : vector<2x96xf32>
    %27 = tpu.matmul %26, %18, %cst_25 {dimension_numbers = #tpu.dot_dimension_numbers<[1], [0], [0], [1], [0, 0, 1, 1], [], []>} : vector<2x32xf32>, vector<32x96xf32>, vector<2x96xf32> -> vector<2x96xf32>
    %28 = vector.broadcast %20 : vector<1x96xf32> to vector<2x96xf32>
    %29 = arith.addf %27, %28 : vector<2x96xf32>
    %30 = vector.extract_strided_slice %25 {offsets = [0, 0], sizes = [2, 96], strides = [1, 1]} : vector<32x96xf32> to vector<2x96xf32>
    %31 = vector.extract_strided_slice %30 {offsets = [0, 0], sizes = [2, 32], strides = [1, 1]} : vector<2x96xf32> to vector<2x32xf32>
    %32 = vector.extract_strided_slice %29 {offsets = [0, 0], sizes = [2, 32], strides = [1, 1]} : vector<2x96xf32> to vector<2x32xf32>
    %33 = arith.addf %31, %32 : vector<2x32xf32>
    %34 = arith.negf %33 : vector<2x32xf32>
    %35 = math.exp %34 : vector<2x32xf32>
    %cst_26 = arith.constant 1.000000e+00 : f32
    %36 = vector.broadcast %cst_26 : f32 to vector<2x32xf32>
    %37 = arith.addf %36, %35 : vector<2x32xf32>
    %38 = arith.divf %36, %37 : vector<2x32xf32>
    %39 = vector.extract_strided_slice %30 {offsets = [0, 32], sizes = [2, 32], strides = [1, 1]} : vector<2x96xf32> to vector<2x32xf32>
    %40 = vector.extract_strided_slice %29 {offsets = [0, 32], sizes = [2, 32], strides = [1, 1]} : vector<2x96xf32> to vector<2x32xf32>
    %41 = arith.addf %39, %40 : vector<2x32xf32>
    %42 = arith.negf %41 : vector<2x32xf32>
    %43 = math.exp %42 : vector<2x32xf32>
    %cst_27 = arith.constant 1.000000e+00 : f32
    %44 = vector.broadcast %cst_27 : f32 to vector<2x32xf32>
    %45 = arith.addf %44, %43 : vector<2x32xf32>
    %46 = arith.divf %44, %45 : vector<2x32xf32>
    %47 = vector.extract_strided_slice %30 {offsets = [0, 64], sizes = [2, 32], strides = [1, 1]} : vector<2x96xf32> to vector<2x32xf32>
    %48 = vector.extract_strided_slice %29 {offsets = [0, 64], sizes = [2, 32], strides = [1, 1]} : vector<2x96xf32> to vector<2x32xf32>
    %49 = arith.mulf %38, %48 : vector<2x32xf32>
    %50 = arith.addf %47, %49 : vector<2x32xf32>
    %51 = math.tanh %50 : vector<2x32xf32>
    %cst_28 = arith.constant 1.000000e+00 : f32
    %52 = vector.broadcast %cst_28 : f32 to vector<2x32xf32>
    %53 = arith.subf %52, %46 : vector<2x32xf32>
    %54 = arith.mulf %53, %51 : vector<2x32xf32>
    %55 = arith.mulf %46, %26 : vector<2x32xf32>
    %56 = arith.addf %54, %55 : vector<2x32xf32>
    %cst_29 = arith.constant dense<0.000000e+00> : vector<2x96xf32>
    %57 = tpu.matmul %56, %18, %cst_29 {dimension_numbers = #tpu.dot_dimension_numbers<[1], [0], [0], [1], [0, 0, 1, 1], [], []>} : vector<2x32xf32>, vector<32x96xf32>, vector<2x96xf32> -> vector<2x96xf32>
    %58 = vector.broadcast %20 : vector<1x96xf32> to vector<2x96xf32>
    %59 = arith.addf %57, %58 : vector<2x96xf32>
    %60 = vector.extract_strided_slice %25 {offsets = [2, 0], sizes = [2, 96], strides = [1, 1]} : vector<32x96xf32> to vector<2x96xf32>
    %61 = vector.extract_strided_slice %60 {offsets = [0, 0], sizes = [2, 32], strides = [1, 1]} : vector<2x96xf32> to vector<2x32xf32>
    %62 = vector.extract_strided_slice %59 {offsets = [0, 0], sizes = [2, 32], strides = [1, 1]} : vector<2x96xf32> to vector<2x32xf32>
    %63 = arith.addf %61, %62 : vector<2x32xf32>
    %64 = arith.negf %63 : vector<2x32xf32>
    %65 = math.exp %64 : vector<2x32xf32>
    %cst_30 = arith.constant 1.000000e+00 : f32
    %66 = vector.broadcast %cst_30 : f32 to vector<2x32xf32>
    %67 = arith.addf %66, %65 : vector<2x32xf32>
    %68 = arith.divf %66, %67 : vector<2x32xf32>
    %69 = vector.extract_strided_slice %60 {offsets = [0, 32], sizes = [2, 32], strides = [1, 1]} : vector<2x96xf32> to vector<2x32xf32>
    %70 = vector.extract_strided_slice %59 {offsets = [0, 32], sizes = [2, 32], strides = [1, 1]} : vector<2x96xf32> to vector<2x32xf32>
    %71 = arith.addf %69, %70 : vector<2x32xf32>
    %72 = arith.negf %71 : vector<2x32xf32>
    %73 = math.exp %72 : vector<2x32xf32>
    %cst_31 = arith.constant 1.000000e+00 : f32
    %74 = vector.broadcast %cst_31 : f32 to vector<2x32xf32>
    %75 = arith.addf %74, %73 : vector<2x32xf32>
    %76 = arith.divf %74, %75 : vector<2x32xf32>
    %77 = vector.extract_strided_slice %60 {offsets = [0, 64], sizes = [2, 32], strides = [1, 1]} : vector<2x96xf32> to vector<2x32xf32>
    %78 = vector.extract_strided_slice %59 {offsets = [0, 64], sizes = [2, 32], strides = [1, 1]} : vector<2x96xf32> to vector<2x32xf32>
    %79 = arith.mulf %68, %78 : vector<2x32xf32>
    %80 = arith.addf %77, %79 : vector<2x32xf32>
    %81 = math.tanh %80 : vector<2x32xf32>
    %cst_32 = arith.constant 1.000000e+00 : f32
    %82 = vector.broadcast %cst_32 : f32 to vector<2x32xf32>
    %83 = arith.subf %82, %76 : vector<2x32xf32>
    %84 = arith.mulf %83, %81 : vector<2x32xf32>
    %85 = arith.mulf %76, %56 : vector<2x32xf32>
    %86 = arith.addf %84, %85 : vector<2x32xf32>
    %cst_33 = arith.constant dense<0.000000e+00> : vector<2x96xf32>
    %87 = tpu.matmul %86, %18, %cst_33 {dimension_numbers = #tpu.dot_dimension_numbers<[1], [0], [0], [1], [0, 0, 1, 1], [], []>} : vector<2x32xf32>, vector<32x96xf32>, vector<2x96xf32> -> vector<2x96xf32>
    %88 = vector.broadcast %20 : vector<1x96xf32> to vector<2x96xf32>
    %89 = arith.addf %87, %88 : vector<2x96xf32>
    %90 = vector.extract_strided_slice %25 {offsets = [4, 0], sizes = [2, 96], strides = [1, 1]} : vector<32x96xf32> to vector<2x96xf32>
    %91 = vector.extract_strided_slice %90 {offsets = [0, 0], sizes = [2, 32], strides = [1, 1]} : vector<2x96xf32> to vector<2x32xf32>
    %92 = vector.extract_strided_slice %89 {offsets = [0, 0], sizes = [2, 32], strides = [1, 1]} : vector<2x96xf32> to vector<2x32xf32>
    %93 = arith.addf %91, %92 : vector<2x32xf32>
    %94 = arith.negf %93 : vector<2x32xf32>
    %95 = math.exp %94 : vector<2x32xf32>
    %cst_34 = arith.constant 1.000000e+00 : f32
    %96 = vector.broadcast %cst_34 : f32 to vector<2x32xf32>
    %97 = arith.addf %96, %95 : vector<2x32xf32>
    %98 = arith.divf %96, %97 : vector<2x32xf32>
    %99 = vector.extract_strided_slice %90 {offsets = [0, 32], sizes = [2, 32], strides = [1, 1]} : vector<2x96xf32> to vector<2x32xf32>
    %100 = vector.extract_strided_slice %89 {offsets = [0, 32], sizes = [2, 32], strides = [1, 1]} : vector<2x96xf32> to vector<2x32xf32>
    %101 = arith.addf %99, %100 : vector<2x32xf32>
    %102 = arith.negf %101 : vector<2x32xf32>
    %103 = math.exp %102 : vector<2x32xf32>
    %cst_35 = arith.constant 1.000000e+00 : f32
    %104 = vector.broadcast %cst_35 : f32 to vector<2x32xf32>
    %105 = arith.addf %104, %103 : vector<2x32xf32>
    %106 = arith.divf %104, %105 : vector<2x32xf32>
    %107 = vector.extract_strided_slice %90 {offsets = [0, 64], sizes = [2, 32], strides = [1, 1]} : vector<2x96xf32> to vector<2x32xf32>
    %108 = vector.extract_strided_slice %89 {offsets = [0, 64], sizes = [2, 32], strides = [1, 1]} : vector<2x96xf32> to vector<2x32xf32>
    %109 = arith.mulf %98, %108 : vector<2x32xf32>
    %110 = arith.addf %107, %109 : vector<2x32xf32>
    %111 = math.tanh %110 : vector<2x32xf32>
    %cst_36 = arith.constant 1.000000e+00 : f32
    %112 = vector.broadcast %cst_36 : f32 to vector<2x32xf32>
    %113 = arith.subf %112, %106 : vector<2x32xf32>
    %114 = arith.mulf %113, %111 : vector<2x32xf32>
    %115 = arith.mulf %106, %86 : vector<2x32xf32>
    %116 = arith.addf %114, %115 : vector<2x32xf32>
    %cst_37 = arith.constant dense<0.000000e+00> : vector<2x96xf32>
    %117 = tpu.matmul %116, %18, %cst_37 {dimension_numbers = #tpu.dot_dimension_numbers<[1], [0], [0], [1], [0, 0, 1, 1], [], []>} : vector<2x32xf32>, vector<32x96xf32>, vector<2x96xf32> -> vector<2x96xf32>
    %118 = vector.broadcast %20 : vector<1x96xf32> to vector<2x96xf32>
    %119 = arith.addf %117, %118 : vector<2x96xf32>
    %120 = vector.extract_strided_slice %25 {offsets = [6, 0], sizes = [2, 96], strides = [1, 1]} : vector<32x96xf32> to vector<2x96xf32>
    %121 = vector.extract_strided_slice %120 {offsets = [0, 0], sizes = [2, 32], strides = [1, 1]} : vector<2x96xf32> to vector<2x32xf32>
    %122 = vector.extract_strided_slice %119 {offsets = [0, 0], sizes = [2, 32], strides = [1, 1]} : vector<2x96xf32> to vector<2x32xf32>
    %123 = arith.addf %121, %122 : vector<2x32xf32>
    %124 = arith.negf %123 : vector<2x32xf32>
    %125 = math.exp %124 : vector<2x32xf32>
    %cst_38 = arith.constant 1.000000e+00 : f32
    %126 = vector.broadcast %cst_38 : f32 to vector<2x32xf32>
    %127 = arith.addf %126, %125 : vector<2x32xf32>
    %128 = arith.divf %126, %127 : vector<2x32xf32>
    %129 = vector.extract_strided_slice %120 {offsets = [0, 32], sizes = [2, 32], strides = [1, 1]} : vector<2x96xf32> to vector<2x32xf32>
    %130 = vector.extract_strided_slice %119 {offsets = [0, 32], sizes = [2, 32], strides = [1, 1]} : vector<2x96xf32> to vector<2x32xf32>
    %131 = arith.addf %129, %130 : vector<2x32xf32>
    %132 = arith.negf %131 : vector<2x32xf32>
    %133 = math.exp %132 : vector<2x32xf32>
    %cst_39 = arith.constant 1.000000e+00 : f32
    %134 = vector.broadcast %cst_39 : f32 to vector<2x32xf32>
    %135 = arith.addf %134, %133 : vector<2x32xf32>
    %136 = arith.divf %134, %135 : vector<2x32xf32>
    %137 = vector.extract_strided_slice %120 {offsets = [0, 64], sizes = [2, 32], strides = [1, 1]} : vector<2x96xf32> to vector<2x32xf32>
    %138 = vector.extract_strided_slice %119 {offsets = [0, 64], sizes = [2, 32], strides = [1, 1]} : vector<2x96xf32> to vector<2x32xf32>
    %139 = arith.mulf %128, %138 : vector<2x32xf32>
    %140 = arith.addf %137, %139 : vector<2x32xf32>
    %141 = math.tanh %140 : vector<2x32xf32>
    %cst_40 = arith.constant 1.000000e+00 : f32
    %142 = vector.broadcast %cst_40 : f32 to vector<2x32xf32>
    %143 = arith.subf %142, %136 : vector<2x32xf32>
    %144 = arith.mulf %143, %141 : vector<2x32xf32>
    %145 = arith.mulf %136, %116 : vector<2x32xf32>
    %146 = arith.addf %144, %145 : vector<2x32xf32>
    %cst_41 = arith.constant dense<0.000000e+00> : vector<2x96xf32>
    %147 = tpu.matmul %146, %18, %cst_41 {dimension_numbers = #tpu.dot_dimension_numbers<[1], [0], [0], [1], [0, 0, 1, 1], [], []>} : vector<2x32xf32>, vector<32x96xf32>, vector<2x96xf32> -> vector<2x96xf32>
    %148 = vector.broadcast %20 : vector<1x96xf32> to vector<2x96xf32>
    %149 = arith.addf %147, %148 : vector<2x96xf32>
    %150 = vector.extract_strided_slice %25 {offsets = [8, 0], sizes = [2, 96], strides = [1, 1]} : vector<32x96xf32> to vector<2x96xf32>
    %151 = vector.extract_strided_slice %150 {offsets = [0, 0], sizes = [2, 32], strides = [1, 1]} : vector<2x96xf32> to vector<2x32xf32>
    %152 = vector.extract_strided_slice %149 {offsets = [0, 0], sizes = [2, 32], strides = [1, 1]} : vector<2x96xf32> to vector<2x32xf32>
    %153 = arith.addf %151, %152 : vector<2x32xf32>
    %154 = arith.negf %153 : vector<2x32xf32>
    %155 = math.exp %154 : vector<2x32xf32>
    %cst_42 = arith.constant 1.000000e+00 : f32
    %156 = vector.broadcast %cst_42 : f32 to vector<2x32xf32>
    %157 = arith.addf %156, %155 : vector<2x32xf32>
    %158 = arith.divf %156, %157 : vector<2x32xf32>
    %159 = vector.extract_strided_slice %150 {offsets = [0, 32], sizes = [2, 32], strides = [1, 1]} : vector<2x96xf32> to vector<2x32xf32>
    %160 = vector.extract_strided_slice %149 {offsets = [0, 32], sizes = [2, 32], strides = [1, 1]} : vector<2x96xf32> to vector<2x32xf32>
    %161 = arith.addf %159, %160 : vector<2x32xf32>
    %162 = arith.negf %161 : vector<2x32xf32>
    %163 = math.exp %162 : vector<2x32xf32>
    %cst_43 = arith.constant 1.000000e+00 : f32
    %164 = vector.broadcast %cst_43 : f32 to vector<2x32xf32>
    %165 = arith.addf %164, %163 : vector<2x32xf32>
    %166 = arith.divf %164, %165 : vector<2x32xf32>
    %167 = vector.extract_strided_slice %150 {offsets = [0, 64], sizes = [2, 32], strides = [1, 1]} : vector<2x96xf32> to vector<2x32xf32>
    %168 = vector.extract_strided_slice %149 {offsets = [0, 64], sizes = [2, 32], strides = [1, 1]} : vector<2x96xf32> to vector<2x32xf32>
    %169 = arith.mulf %158, %168 : vector<2x32xf32>
    %170 = arith.addf %167, %169 : vector<2x32xf32>
    %171 = math.tanh %170 : vector<2x32xf32>
    %cst_44 = arith.constant 1.000000e+00 : f32
    %172 = vector.broadcast %cst_44 : f32 to vector<2x32xf32>
    %173 = arith.subf %172, %166 : vector<2x32xf32>
    %174 = arith.mulf %173, %171 : vector<2x32xf32>
    %175 = arith.mulf %166, %146 : vector<2x32xf32>
    %176 = arith.addf %174, %175 : vector<2x32xf32>
    %cst_45 = arith.constant dense<0.000000e+00> : vector<2x96xf32>
    %177 = tpu.matmul %176, %18, %cst_45 {dimension_numbers = #tpu.dot_dimension_numbers<[1], [0], [0], [1], [0, 0, 1, 1], [], []>} : vector<2x32xf32>, vector<32x96xf32>, vector<2x96xf32> -> vector<2x96xf32>
    %178 = vector.broadcast %20 : vector<1x96xf32> to vector<2x96xf32>
    %179 = arith.addf %177, %178 : vector<2x96xf32>
    %180 = vector.extract_strided_slice %25 {offsets = [10, 0], sizes = [2, 96], strides = [1, 1]} : vector<32x96xf32> to vector<2x96xf32>
    %181 = vector.extract_strided_slice %180 {offsets = [0, 0], sizes = [2, 32], strides = [1, 1]} : vector<2x96xf32> to vector<2x32xf32>
    %182 = vector.extract_strided_slice %179 {offsets = [0, 0], sizes = [2, 32], strides = [1, 1]} : vector<2x96xf32> to vector<2x32xf32>
    %183 = arith.addf %181, %182 : vector<2x32xf32>
    %184 = arith.negf %183 : vector<2x32xf32>
    %185 = math.exp %184 : vector<2x32xf32>
    %cst_46 = arith.constant 1.000000e+00 : f32
    %186 = vector.broadcast %cst_46 : f32 to vector<2x32xf32>
    %187 = arith.addf %186, %185 : vector<2x32xf32>
    %188 = arith.divf %186, %187 : vector<2x32xf32>
    %189 = vector.extract_strided_slice %180 {offsets = [0, 32], sizes = [2, 32], strides = [1, 1]} : vector<2x96xf32> to vector<2x32xf32>
    %190 = vector.extract_strided_slice %179 {offsets = [0, 32], sizes = [2, 32], strides = [1, 1]} : vector<2x96xf32> to vector<2x32xf32>
    %191 = arith.addf %189, %190 : vector<2x32xf32>
    %192 = arith.negf %191 : vector<2x32xf32>
    %193 = math.exp %192 : vector<2x32xf32>
    %cst_47 = arith.constant 1.000000e+00 : f32
    %194 = vector.broadcast %cst_47 : f32 to vector<2x32xf32>
    %195 = arith.addf %194, %193 : vector<2x32xf32>
    %196 = arith.divf %194, %195 : vector<2x32xf32>
    %197 = vector.extract_strided_slice %180 {offsets = [0, 64], sizes = [2, 32], strides = [1, 1]} : vector<2x96xf32> to vector<2x32xf32>
    %198 = vector.extract_strided_slice %179 {offsets = [0, 64], sizes = [2, 32], strides = [1, 1]} : vector<2x96xf32> to vector<2x32xf32>
    %199 = arith.mulf %188, %198 : vector<2x32xf32>
    %200 = arith.addf %197, %199 : vector<2x32xf32>
    %201 = math.tanh %200 : vector<2x32xf32>
    %cst_48 = arith.constant 1.000000e+00 : f32
    %202 = vector.broadcast %cst_48 : f32 to vector<2x32xf32>
    %203 = arith.subf %202, %196 : vector<2x32xf32>
    %204 = arith.mulf %203, %201 : vector<2x32xf32>
    %205 = arith.mulf %196, %176 : vector<2x32xf32>
    %206 = arith.addf %204, %205 : vector<2x32xf32>
    %cst_49 = arith.constant dense<0.000000e+00> : vector<2x96xf32>
    %207 = tpu.matmul %206, %18, %cst_49 {dimension_numbers = #tpu.dot_dimension_numbers<[1], [0], [0], [1], [0, 0, 1, 1], [], []>} : vector<2x32xf32>, vector<32x96xf32>, vector<2x96xf32> -> vector<2x96xf32>
    %208 = vector.broadcast %20 : vector<1x96xf32> to vector<2x96xf32>
    %209 = arith.addf %207, %208 : vector<2x96xf32>
    %210 = vector.extract_strided_slice %25 {offsets = [12, 0], sizes = [2, 96], strides = [1, 1]} : vector<32x96xf32> to vector<2x96xf32>
    %211 = vector.extract_strided_slice %210 {offsets = [0, 0], sizes = [2, 32], strides = [1, 1]} : vector<2x96xf32> to vector<2x32xf32>
    %212 = vector.extract_strided_slice %209 {offsets = [0, 0], sizes = [2, 32], strides = [1, 1]} : vector<2x96xf32> to vector<2x32xf32>
    %213 = arith.addf %211, %212 : vector<2x32xf32>
    %214 = arith.negf %213 : vector<2x32xf32>
    %215 = math.exp %214 : vector<2x32xf32>
    %cst_50 = arith.constant 1.000000e+00 : f32
    %216 = vector.broadcast %cst_50 : f32 to vector<2x32xf32>
    %217 = arith.addf %216, %215 : vector<2x32xf32>
    %218 = arith.divf %216, %217 : vector<2x32xf32>
    %219 = vector.extract_strided_slice %210 {offsets = [0, 32], sizes = [2, 32], strides = [1, 1]} : vector<2x96xf32> to vector<2x32xf32>
    %220 = vector.extract_strided_slice %209 {offsets = [0, 32], sizes = [2, 32], strides = [1, 1]} : vector<2x96xf32> to vector<2x32xf32>
    %221 = arith.addf %219, %220 : vector<2x32xf32>
    %222 = arith.negf %221 : vector<2x32xf32>
    %223 = math.exp %222 : vector<2x32xf32>
    %cst_51 = arith.constant 1.000000e+00 : f32
    %224 = vector.broadcast %cst_51 : f32 to vector<2x32xf32>
    %225 = arith.addf %224, %223 : vector<2x32xf32>
    %226 = arith.divf %224, %225 : vector<2x32xf32>
    %227 = vector.extract_strided_slice %210 {offsets = [0, 64], sizes = [2, 32], strides = [1, 1]} : vector<2x96xf32> to vector<2x32xf32>
    %228 = vector.extract_strided_slice %209 {offsets = [0, 64], sizes = [2, 32], strides = [1, 1]} : vector<2x96xf32> to vector<2x32xf32>
    %229 = arith.mulf %218, %228 : vector<2x32xf32>
    %230 = arith.addf %227, %229 : vector<2x32xf32>
    %231 = math.tanh %230 : vector<2x32xf32>
    %cst_52 = arith.constant 1.000000e+00 : f32
    %232 = vector.broadcast %cst_52 : f32 to vector<2x32xf32>
    %233 = arith.subf %232, %226 : vector<2x32xf32>
    %234 = arith.mulf %233, %231 : vector<2x32xf32>
    %235 = arith.mulf %226, %206 : vector<2x32xf32>
    %236 = arith.addf %234, %235 : vector<2x32xf32>
    %cst_53 = arith.constant dense<0.000000e+00> : vector<2x96xf32>
    %237 = tpu.matmul %236, %18, %cst_53 {dimension_numbers = #tpu.dot_dimension_numbers<[1], [0], [0], [1], [0, 0, 1, 1], [], []>} : vector<2x32xf32>, vector<32x96xf32>, vector<2x96xf32> -> vector<2x96xf32>
    %238 = vector.broadcast %20 : vector<1x96xf32> to vector<2x96xf32>
    %239 = arith.addf %237, %238 : vector<2x96xf32>
    %240 = vector.extract_strided_slice %25 {offsets = [14, 0], sizes = [2, 96], strides = [1, 1]} : vector<32x96xf32> to vector<2x96xf32>
    %241 = vector.extract_strided_slice %240 {offsets = [0, 0], sizes = [2, 32], strides = [1, 1]} : vector<2x96xf32> to vector<2x32xf32>
    %242 = vector.extract_strided_slice %239 {offsets = [0, 0], sizes = [2, 32], strides = [1, 1]} : vector<2x96xf32> to vector<2x32xf32>
    %243 = arith.addf %241, %242 : vector<2x32xf32>
    %244 = arith.negf %243 : vector<2x32xf32>
    %245 = math.exp %244 : vector<2x32xf32>
    %cst_54 = arith.constant 1.000000e+00 : f32
    %246 = vector.broadcast %cst_54 : f32 to vector<2x32xf32>
    %247 = arith.addf %246, %245 : vector<2x32xf32>
    %248 = arith.divf %246, %247 : vector<2x32xf32>
    %249 = vector.extract_strided_slice %240 {offsets = [0, 32], sizes = [2, 32], strides = [1, 1]} : vector<2x96xf32> to vector<2x32xf32>
    %250 = vector.extract_strided_slice %239 {offsets = [0, 32], sizes = [2, 32], strides = [1, 1]} : vector<2x96xf32> to vector<2x32xf32>
    %251 = arith.addf %249, %250 : vector<2x32xf32>
    %252 = arith.negf %251 : vector<2x32xf32>
    %253 = math.exp %252 : vector<2x32xf32>
    %cst_55 = arith.constant 1.000000e+00 : f32
    %254 = vector.broadcast %cst_55 : f32 to vector<2x32xf32>
    %255 = arith.addf %254, %253 : vector<2x32xf32>
    %256 = arith.divf %254, %255 : vector<2x32xf32>
    %257 = vector.extract_strided_slice %240 {offsets = [0, 64], sizes = [2, 32], strides = [1, 1]} : vector<2x96xf32> to vector<2x32xf32>
    %258 = vector.extract_strided_slice %239 {offsets = [0, 64], sizes = [2, 32], strides = [1, 1]} : vector<2x96xf32> to vector<2x32xf32>
    %259 = arith.mulf %248, %258 : vector<2x32xf32>
    %260 = arith.addf %257, %259 : vector<2x32xf32>
    %261 = math.tanh %260 : vector<2x32xf32>
    %cst_56 = arith.constant 1.000000e+00 : f32
    %262 = vector.broadcast %cst_56 : f32 to vector<2x32xf32>
    %263 = arith.subf %262, %256 : vector<2x32xf32>
    %264 = arith.mulf %263, %261 : vector<2x32xf32>
    %265 = arith.mulf %256, %236 : vector<2x32xf32>
    %266 = arith.addf %264, %265 : vector<2x32xf32>
    %cst_57 = arith.constant dense<0.000000e+00> : vector<2x96xf32>
    %267 = tpu.matmul %266, %18, %cst_57 {dimension_numbers = #tpu.dot_dimension_numbers<[1], [0], [0], [1], [0, 0, 1, 1], [], []>} : vector<2x32xf32>, vector<32x96xf32>, vector<2x96xf32> -> vector<2x96xf32>
    %268 = vector.broadcast %20 : vector<1x96xf32> to vector<2x96xf32>
    %269 = arith.addf %267, %268 : vector<2x96xf32>
    %270 = vector.extract_strided_slice %25 {offsets = [16, 0], sizes = [2, 96], strides = [1, 1]} : vector<32x96xf32> to vector<2x96xf32>
    %271 = vector.extract_strided_slice %270 {offsets = [0, 0], sizes = [2, 32], strides = [1, 1]} : vector<2x96xf32> to vector<2x32xf32>
    %272 = vector.extract_strided_slice %269 {offsets = [0, 0], sizes = [2, 32], strides = [1, 1]} : vector<2x96xf32> to vector<2x32xf32>
    %273 = arith.addf %271, %272 : vector<2x32xf32>
    %274 = arith.negf %273 : vector<2x32xf32>
    %275 = math.exp %274 : vector<2x32xf32>
    %cst_58 = arith.constant 1.000000e+00 : f32
    %276 = vector.broadcast %cst_58 : f32 to vector<2x32xf32>
    %277 = arith.addf %276, %275 : vector<2x32xf32>
    %278 = arith.divf %276, %277 : vector<2x32xf32>
    %279 = vector.extract_strided_slice %270 {offsets = [0, 32], sizes = [2, 32], strides = [1, 1]} : vector<2x96xf32> to vector<2x32xf32>
    %280 = vector.extract_strided_slice %269 {offsets = [0, 32], sizes = [2, 32], strides = [1, 1]} : vector<2x96xf32> to vector<2x32xf32>
    %281 = arith.addf %279, %280 : vector<2x32xf32>
    %282 = arith.negf %281 : vector<2x32xf32>
    %283 = math.exp %282 : vector<2x32xf32>
    %cst_59 = arith.constant 1.000000e+00 : f32
    %284 = vector.broadcast %cst_59 : f32 to vector<2x32xf32>
    %285 = arith.addf %284, %283 : vector<2x32xf32>
    %286 = arith.divf %284, %285 : vector<2x32xf32>
    %287 = vector.extract_strided_slice %270 {offsets = [0, 64], sizes = [2, 32], strides = [1, 1]} : vector<2x96xf32> to vector<2x32xf32>
    %288 = vector.extract_strided_slice %269 {offsets = [0, 64], sizes = [2, 32], strides = [1, 1]} : vector<2x96xf32> to vector<2x32xf32>
    %289 = arith.mulf %278, %288 : vector<2x32xf32>
    %290 = arith.addf %287, %289 : vector<2x32xf32>
    %291 = math.tanh %290 : vector<2x32xf32>
    %cst_60 = arith.constant 1.000000e+00 : f32
    %292 = vector.broadcast %cst_60 : f32 to vector<2x32xf32>
    %293 = arith.subf %292, %286 : vector<2x32xf32>
    %294 = arith.mulf %293, %291 : vector<2x32xf32>
    %295 = arith.mulf %286, %266 : vector<2x32xf32>
    %296 = arith.addf %294, %295 : vector<2x32xf32>
    %cst_61 = arith.constant dense<0.000000e+00> : vector<2x96xf32>
    %297 = tpu.matmul %296, %18, %cst_61 {dimension_numbers = #tpu.dot_dimension_numbers<[1], [0], [0], [1], [0, 0, 1, 1], [], []>} : vector<2x32xf32>, vector<32x96xf32>, vector<2x96xf32> -> vector<2x96xf32>
    %298 = vector.broadcast %20 : vector<1x96xf32> to vector<2x96xf32>
    %299 = arith.addf %297, %298 : vector<2x96xf32>
    %300 = vector.extract_strided_slice %25 {offsets = [18, 0], sizes = [2, 96], strides = [1, 1]} : vector<32x96xf32> to vector<2x96xf32>
    %301 = vector.extract_strided_slice %300 {offsets = [0, 0], sizes = [2, 32], strides = [1, 1]} : vector<2x96xf32> to vector<2x32xf32>
    %302 = vector.extract_strided_slice %299 {offsets = [0, 0], sizes = [2, 32], strides = [1, 1]} : vector<2x96xf32> to vector<2x32xf32>
    %303 = arith.addf %301, %302 : vector<2x32xf32>
    %304 = arith.negf %303 : vector<2x32xf32>
    %305 = math.exp %304 : vector<2x32xf32>
    %cst_62 = arith.constant 1.000000e+00 : f32
    %306 = vector.broadcast %cst_62 : f32 to vector<2x32xf32>
    %307 = arith.addf %306, %305 : vector<2x32xf32>
    %308 = arith.divf %306, %307 : vector<2x32xf32>
    %309 = vector.extract_strided_slice %300 {offsets = [0, 32], sizes = [2, 32], strides = [1, 1]} : vector<2x96xf32> to vector<2x32xf32>
    %310 = vector.extract_strided_slice %299 {offsets = [0, 32], sizes = [2, 32], strides = [1, 1]} : vector<2x96xf32> to vector<2x32xf32>
    %311 = arith.addf %309, %310 : vector<2x32xf32>
    %312 = arith.negf %311 : vector<2x32xf32>
    %313 = math.exp %312 : vector<2x32xf32>
    %cst_63 = arith.constant 1.000000e+00 : f32
    %314 = vector.broadcast %cst_63 : f32 to vector<2x32xf32>
    %315 = arith.addf %314, %313 : vector<2x32xf32>
    %316 = arith.divf %314, %315 : vector<2x32xf32>
    %317 = vector.extract_strided_slice %300 {offsets = [0, 64], sizes = [2, 32], strides = [1, 1]} : vector<2x96xf32> to vector<2x32xf32>
    %318 = vector.extract_strided_slice %299 {offsets = [0, 64], sizes = [2, 32], strides = [1, 1]} : vector<2x96xf32> to vector<2x32xf32>
    %319 = arith.mulf %308, %318 : vector<2x32xf32>
    %320 = arith.addf %317, %319 : vector<2x32xf32>
    %321 = math.tanh %320 : vector<2x32xf32>
    %cst_64 = arith.constant 1.000000e+00 : f32
    %322 = vector.broadcast %cst_64 : f32 to vector<2x32xf32>
    %323 = arith.subf %322, %316 : vector<2x32xf32>
    %324 = arith.mulf %323, %321 : vector<2x32xf32>
    %325 = arith.mulf %316, %296 : vector<2x32xf32>
    %326 = arith.addf %324, %325 : vector<2x32xf32>
    %cst_65 = arith.constant dense<0.000000e+00> : vector<2x96xf32>
    %327 = tpu.matmul %326, %18, %cst_65 {dimension_numbers = #tpu.dot_dimension_numbers<[1], [0], [0], [1], [0, 0, 1, 1], [], []>} : vector<2x32xf32>, vector<32x96xf32>, vector<2x96xf32> -> vector<2x96xf32>
    %328 = vector.broadcast %20 : vector<1x96xf32> to vector<2x96xf32>
    %329 = arith.addf %327, %328 : vector<2x96xf32>
    %330 = vector.extract_strided_slice %25 {offsets = [20, 0], sizes = [2, 96], strides = [1, 1]} : vector<32x96xf32> to vector<2x96xf32>
    %331 = vector.extract_strided_slice %330 {offsets = [0, 0], sizes = [2, 32], strides = [1, 1]} : vector<2x96xf32> to vector<2x32xf32>
    %332 = vector.extract_strided_slice %329 {offsets = [0, 0], sizes = [2, 32], strides = [1, 1]} : vector<2x96xf32> to vector<2x32xf32>
    %333 = arith.addf %331, %332 : vector<2x32xf32>
    %334 = arith.negf %333 : vector<2x32xf32>
    %335 = math.exp %334 : vector<2x32xf32>
    %cst_66 = arith.constant 1.000000e+00 : f32
    %336 = vector.broadcast %cst_66 : f32 to vector<2x32xf32>
    %337 = arith.addf %336, %335 : vector<2x32xf32>
    %338 = arith.divf %336, %337 : vector<2x32xf32>
    %339 = vector.extract_strided_slice %330 {offsets = [0, 32], sizes = [2, 32], strides = [1, 1]} : vector<2x96xf32> to vector<2x32xf32>
    %340 = vector.extract_strided_slice %329 {offsets = [0, 32], sizes = [2, 32], strides = [1, 1]} : vector<2x96xf32> to vector<2x32xf32>
    %341 = arith.addf %339, %340 : vector<2x32xf32>
    %342 = arith.negf %341 : vector<2x32xf32>
    %343 = math.exp %342 : vector<2x32xf32>
    %cst_67 = arith.constant 1.000000e+00 : f32
    %344 = vector.broadcast %cst_67 : f32 to vector<2x32xf32>
    %345 = arith.addf %344, %343 : vector<2x32xf32>
    %346 = arith.divf %344, %345 : vector<2x32xf32>
    %347 = vector.extract_strided_slice %330 {offsets = [0, 64], sizes = [2, 32], strides = [1, 1]} : vector<2x96xf32> to vector<2x32xf32>
    %348 = vector.extract_strided_slice %329 {offsets = [0, 64], sizes = [2, 32], strides = [1, 1]} : vector<2x96xf32> to vector<2x32xf32>
    %349 = arith.mulf %338, %348 : vector<2x32xf32>
    %350 = arith.addf %347, %349 : vector<2x32xf32>
    %351 = math.tanh %350 : vector<2x32xf32>
    %cst_68 = arith.constant 1.000000e+00 : f32
    %352 = vector.broadcast %cst_68 : f32 to vector<2x32xf32>
    %353 = arith.subf %352, %346 : vector<2x32xf32>
    %354 = arith.mulf %353, %351 : vector<2x32xf32>
    %355 = arith.mulf %346, %326 : vector<2x32xf32>
    %356 = arith.addf %354, %355 : vector<2x32xf32>
    %cst_69 = arith.constant dense<0.000000e+00> : vector<2x96xf32>
    %357 = tpu.matmul %356, %18, %cst_69 {dimension_numbers = #tpu.dot_dimension_numbers<[1], [0], [0], [1], [0, 0, 1, 1], [], []>} : vector<2x32xf32>, vector<32x96xf32>, vector<2x96xf32> -> vector<2x96xf32>
    %358 = vector.broadcast %20 : vector<1x96xf32> to vector<2x96xf32>
    %359 = arith.addf %357, %358 : vector<2x96xf32>
    %360 = vector.extract_strided_slice %25 {offsets = [22, 0], sizes = [2, 96], strides = [1, 1]} : vector<32x96xf32> to vector<2x96xf32>
    %361 = vector.extract_strided_slice %360 {offsets = [0, 0], sizes = [2, 32], strides = [1, 1]} : vector<2x96xf32> to vector<2x32xf32>
    %362 = vector.extract_strided_slice %359 {offsets = [0, 0], sizes = [2, 32], strides = [1, 1]} : vector<2x96xf32> to vector<2x32xf32>
    %363 = arith.addf %361, %362 : vector<2x32xf32>
    %364 = arith.negf %363 : vector<2x32xf32>
    %365 = math.exp %364 : vector<2x32xf32>
    %cst_70 = arith.constant 1.000000e+00 : f32
    %366 = vector.broadcast %cst_70 : f32 to vector<2x32xf32>
    %367 = arith.addf %366, %365 : vector<2x32xf32>
    %368 = arith.divf %366, %367 : vector<2x32xf32>
    %369 = vector.extract_strided_slice %360 {offsets = [0, 32], sizes = [2, 32], strides = [1, 1]} : vector<2x96xf32> to vector<2x32xf32>
    %370 = vector.extract_strided_slice %359 {offsets = [0, 32], sizes = [2, 32], strides = [1, 1]} : vector<2x96xf32> to vector<2x32xf32>
    %371 = arith.addf %369, %370 : vector<2x32xf32>
    %372 = arith.negf %371 : vector<2x32xf32>
    %373 = math.exp %372 : vector<2x32xf32>
    %cst_71 = arith.constant 1.000000e+00 : f32
    %374 = vector.broadcast %cst_71 : f32 to vector<2x32xf32>
    %375 = arith.addf %374, %373 : vector<2x32xf32>
    %376 = arith.divf %374, %375 : vector<2x32xf32>
    %377 = vector.extract_strided_slice %360 {offsets = [0, 64], sizes = [2, 32], strides = [1, 1]} : vector<2x96xf32> to vector<2x32xf32>
    %378 = vector.extract_strided_slice %359 {offsets = [0, 64], sizes = [2, 32], strides = [1, 1]} : vector<2x96xf32> to vector<2x32xf32>
    %379 = arith.mulf %368, %378 : vector<2x32xf32>
    %380 = arith.addf %377, %379 : vector<2x32xf32>
    %381 = math.tanh %380 : vector<2x32xf32>
    %cst_72 = arith.constant 1.000000e+00 : f32
    %382 = vector.broadcast %cst_72 : f32 to vector<2x32xf32>
    %383 = arith.subf %382, %376 : vector<2x32xf32>
    %384 = arith.mulf %383, %381 : vector<2x32xf32>
    %385 = arith.mulf %376, %356 : vector<2x32xf32>
    %386 = arith.addf %384, %385 : vector<2x32xf32>
    %cst_73 = arith.constant dense<0.000000e+00> : vector<2x96xf32>
    %387 = tpu.matmul %386, %18, %cst_73 {dimension_numbers = #tpu.dot_dimension_numbers<[1], [0], [0], [1], [0, 0, 1, 1], [], []>} : vector<2x32xf32>, vector<32x96xf32>, vector<2x96xf32> -> vector<2x96xf32>
    %388 = vector.broadcast %20 : vector<1x96xf32> to vector<2x96xf32>
    %389 = arith.addf %387, %388 : vector<2x96xf32>
    %390 = vector.extract_strided_slice %25 {offsets = [24, 0], sizes = [2, 96], strides = [1, 1]} : vector<32x96xf32> to vector<2x96xf32>
    %391 = vector.extract_strided_slice %390 {offsets = [0, 0], sizes = [2, 32], strides = [1, 1]} : vector<2x96xf32> to vector<2x32xf32>
    %392 = vector.extract_strided_slice %389 {offsets = [0, 0], sizes = [2, 32], strides = [1, 1]} : vector<2x96xf32> to vector<2x32xf32>
    %393 = arith.addf %391, %392 : vector<2x32xf32>
    %394 = arith.negf %393 : vector<2x32xf32>
    %395 = math.exp %394 : vector<2x32xf32>
    %cst_74 = arith.constant 1.000000e+00 : f32
    %396 = vector.broadcast %cst_74 : f32 to vector<2x32xf32>
    %397 = arith.addf %396, %395 : vector<2x32xf32>
    %398 = arith.divf %396, %397 : vector<2x32xf32>
    %399 = vector.extract_strided_slice %390 {offsets = [0, 32], sizes = [2, 32], strides = [1, 1]} : vector<2x96xf32> to vector<2x32xf32>
    %400 = vector.extract_strided_slice %389 {offsets = [0, 32], sizes = [2, 32], strides = [1, 1]} : vector<2x96xf32> to vector<2x32xf32>
    %401 = arith.addf %399, %400 : vector<2x32xf32>
    %402 = arith.negf %401 : vector<2x32xf32>
    %403 = math.exp %402 : vector<2x32xf32>
    %cst_75 = arith.constant 1.000000e+00 : f32
    %404 = vector.broadcast %cst_75 : f32 to vector<2x32xf32>
    %405 = arith.addf %404, %403 : vector<2x32xf32>
    %406 = arith.divf %404, %405 : vector<2x32xf32>
    %407 = vector.extract_strided_slice %390 {offsets = [0, 64], sizes = [2, 32], strides = [1, 1]} : vector<2x96xf32> to vector<2x32xf32>
    %408 = vector.extract_strided_slice %389 {offsets = [0, 64], sizes = [2, 32], strides = [1, 1]} : vector<2x96xf32> to vector<2x32xf32>
    %409 = arith.mulf %398, %408 : vector<2x32xf32>
    %410 = arith.addf %407, %409 : vector<2x32xf32>
    %411 = math.tanh %410 : vector<2x32xf32>
    %cst_76 = arith.constant 1.000000e+00 : f32
    %412 = vector.broadcast %cst_76 : f32 to vector<2x32xf32>
    %413 = arith.subf %412, %406 : vector<2x32xf32>
    %414 = arith.mulf %413, %411 : vector<2x32xf32>
    %415 = arith.mulf %406, %386 : vector<2x32xf32>
    %416 = arith.addf %414, %415 : vector<2x32xf32>
    %cst_77 = arith.constant dense<0.000000e+00> : vector<2x96xf32>
    %417 = tpu.matmul %416, %18, %cst_77 {dimension_numbers = #tpu.dot_dimension_numbers<[1], [0], [0], [1], [0, 0, 1, 1], [], []>} : vector<2x32xf32>, vector<32x96xf32>, vector<2x96xf32> -> vector<2x96xf32>
    %418 = vector.broadcast %20 : vector<1x96xf32> to vector<2x96xf32>
    %419 = arith.addf %417, %418 : vector<2x96xf32>
    %420 = vector.extract_strided_slice %25 {offsets = [26, 0], sizes = [2, 96], strides = [1, 1]} : vector<32x96xf32> to vector<2x96xf32>
    %421 = vector.extract_strided_slice %420 {offsets = [0, 0], sizes = [2, 32], strides = [1, 1]} : vector<2x96xf32> to vector<2x32xf32>
    %422 = vector.extract_strided_slice %419 {offsets = [0, 0], sizes = [2, 32], strides = [1, 1]} : vector<2x96xf32> to vector<2x32xf32>
    %423 = arith.addf %421, %422 : vector<2x32xf32>
    %424 = arith.negf %423 : vector<2x32xf32>
    %425 = math.exp %424 : vector<2x32xf32>
    %cst_78 = arith.constant 1.000000e+00 : f32
    %426 = vector.broadcast %cst_78 : f32 to vector<2x32xf32>
    %427 = arith.addf %426, %425 : vector<2x32xf32>
    %428 = arith.divf %426, %427 : vector<2x32xf32>
    %429 = vector.extract_strided_slice %420 {offsets = [0, 32], sizes = [2, 32], strides = [1, 1]} : vector<2x96xf32> to vector<2x32xf32>
    %430 = vector.extract_strided_slice %419 {offsets = [0, 32], sizes = [2, 32], strides = [1, 1]} : vector<2x96xf32> to vector<2x32xf32>
    %431 = arith.addf %429, %430 : vector<2x32xf32>
    %432 = arith.negf %431 : vector<2x32xf32>
    %433 = math.exp %432 : vector<2x32xf32>
    %cst_79 = arith.constant 1.000000e+00 : f32
    %434 = vector.broadcast %cst_79 : f32 to vector<2x32xf32>
    %435 = arith.addf %434, %433 : vector<2x32xf32>
    %436 = arith.divf %434, %435 : vector<2x32xf32>
    %437 = vector.extract_strided_slice %420 {offsets = [0, 64], sizes = [2, 32], strides = [1, 1]} : vector<2x96xf32> to vector<2x32xf32>
    %438 = vector.extract_strided_slice %419 {offsets = [0, 64], sizes = [2, 32], strides = [1, 1]} : vector<2x96xf32> to vector<2x32xf32>
    %439 = arith.mulf %428, %438 : vector<2x32xf32>
    %440 = arith.addf %437, %439 : vector<2x32xf32>
    %441 = math.tanh %440 : vector<2x32xf32>
    %cst_80 = arith.constant 1.000000e+00 : f32
    %442 = vector.broadcast %cst_80 : f32 to vector<2x32xf32>
    %443 = arith.subf %442, %436 : vector<2x32xf32>
    %444 = arith.mulf %443, %441 : vector<2x32xf32>
    %445 = arith.mulf %436, %416 : vector<2x32xf32>
    %446 = arith.addf %444, %445 : vector<2x32xf32>
    %cst_81 = arith.constant dense<0.000000e+00> : vector<2x96xf32>
    %447 = tpu.matmul %446, %18, %cst_81 {dimension_numbers = #tpu.dot_dimension_numbers<[1], [0], [0], [1], [0, 0, 1, 1], [], []>} : vector<2x32xf32>, vector<32x96xf32>, vector<2x96xf32> -> vector<2x96xf32>
    %448 = vector.broadcast %20 : vector<1x96xf32> to vector<2x96xf32>
    %449 = arith.addf %447, %448 : vector<2x96xf32>
    %450 = vector.extract_strided_slice %25 {offsets = [28, 0], sizes = [2, 96], strides = [1, 1]} : vector<32x96xf32> to vector<2x96xf32>
    %451 = vector.extract_strided_slice %450 {offsets = [0, 0], sizes = [2, 32], strides = [1, 1]} : vector<2x96xf32> to vector<2x32xf32>
    %452 = vector.extract_strided_slice %449 {offsets = [0, 0], sizes = [2, 32], strides = [1, 1]} : vector<2x96xf32> to vector<2x32xf32>
    %453 = arith.addf %451, %452 : vector<2x32xf32>
    %454 = arith.negf %453 : vector<2x32xf32>
    %455 = math.exp %454 : vector<2x32xf32>
    %cst_82 = arith.constant 1.000000e+00 : f32
    %456 = vector.broadcast %cst_82 : f32 to vector<2x32xf32>
    %457 = arith.addf %456, %455 : vector<2x32xf32>
    %458 = arith.divf %456, %457 : vector<2x32xf32>
    %459 = vector.extract_strided_slice %450 {offsets = [0, 32], sizes = [2, 32], strides = [1, 1]} : vector<2x96xf32> to vector<2x32xf32>
    %460 = vector.extract_strided_slice %449 {offsets = [0, 32], sizes = [2, 32], strides = [1, 1]} : vector<2x96xf32> to vector<2x32xf32>
    %461 = arith.addf %459, %460 : vector<2x32xf32>
    %462 = arith.negf %461 : vector<2x32xf32>
    %463 = math.exp %462 : vector<2x32xf32>
    %cst_83 = arith.constant 1.000000e+00 : f32
    %464 = vector.broadcast %cst_83 : f32 to vector<2x32xf32>
    %465 = arith.addf %464, %463 : vector<2x32xf32>
    %466 = arith.divf %464, %465 : vector<2x32xf32>
    %467 = vector.extract_strided_slice %450 {offsets = [0, 64], sizes = [2, 32], strides = [1, 1]} : vector<2x96xf32> to vector<2x32xf32>
    %468 = vector.extract_strided_slice %449 {offsets = [0, 64], sizes = [2, 32], strides = [1, 1]} : vector<2x96xf32> to vector<2x32xf32>
    %469 = arith.mulf %458, %468 : vector<2x32xf32>
    %470 = arith.addf %467, %469 : vector<2x32xf32>
    %471 = math.tanh %470 : vector<2x32xf32>
    %cst_84 = arith.constant 1.000000e+00 : f32
    %472 = vector.broadcast %cst_84 : f32 to vector<2x32xf32>
    %473 = arith.subf %472, %466 : vector<2x32xf32>
    %474 = arith.mulf %473, %471 : vector<2x32xf32>
    %475 = arith.mulf %466, %446 : vector<2x32xf32>
    %476 = arith.addf %474, %475 : vector<2x32xf32>
    %cst_85 = arith.constant dense<0.000000e+00> : vector<2x96xf32>
    %477 = tpu.matmul %476, %18, %cst_85 {dimension_numbers = #tpu.dot_dimension_numbers<[1], [0], [0], [1], [0, 0, 1, 1], [], []>} : vector<2x32xf32>, vector<32x96xf32>, vector<2x96xf32> -> vector<2x96xf32>
    %478 = vector.broadcast %20 : vector<1x96xf32> to vector<2x96xf32>
    %479 = arith.addf %477, %478 : vector<2x96xf32>
    %480 = vector.extract_strided_slice %25 {offsets = [30, 0], sizes = [2, 96], strides = [1, 1]} : vector<32x96xf32> to vector<2x96xf32>
    %481 = vector.extract_strided_slice %480 {offsets = [0, 0], sizes = [2, 32], strides = [1, 1]} : vector<2x96xf32> to vector<2x32xf32>
    %482 = vector.extract_strided_slice %479 {offsets = [0, 0], sizes = [2, 32], strides = [1, 1]} : vector<2x96xf32> to vector<2x32xf32>
    %483 = arith.addf %481, %482 : vector<2x32xf32>
    %484 = arith.negf %483 : vector<2x32xf32>
    %485 = math.exp %484 : vector<2x32xf32>
    %cst_86 = arith.constant 1.000000e+00 : f32
    %486 = vector.broadcast %cst_86 : f32 to vector<2x32xf32>
    %487 = arith.addf %486, %485 : vector<2x32xf32>
    %488 = arith.divf %486, %487 : vector<2x32xf32>
    %489 = vector.extract_strided_slice %480 {offsets = [0, 32], sizes = [2, 32], strides = [1, 1]} : vector<2x96xf32> to vector<2x32xf32>
    %490 = vector.extract_strided_slice %479 {offsets = [0, 32], sizes = [2, 32], strides = [1, 1]} : vector<2x96xf32> to vector<2x32xf32>
    %491 = arith.addf %489, %490 : vector<2x32xf32>
    %492 = arith.negf %491 : vector<2x32xf32>
    %493 = math.exp %492 : vector<2x32xf32>
    %cst_87 = arith.constant 1.000000e+00 : f32
    %494 = vector.broadcast %cst_87 : f32 to vector<2x32xf32>
    %495 = arith.addf %494, %493 : vector<2x32xf32>
    %496 = arith.divf %494, %495 : vector<2x32xf32>
    %497 = vector.extract_strided_slice %480 {offsets = [0, 64], sizes = [2, 32], strides = [1, 1]} : vector<2x96xf32> to vector<2x32xf32>
    %498 = vector.extract_strided_slice %479 {offsets = [0, 64], sizes = [2, 32], strides = [1, 1]} : vector<2x96xf32> to vector<2x32xf32>
    %499 = arith.mulf %488, %498 : vector<2x32xf32>
    %500 = arith.addf %497, %499 : vector<2x32xf32>
    %501 = math.tanh %500 : vector<2x32xf32>
    %cst_88 = arith.constant 1.000000e+00 : f32
    %502 = vector.broadcast %cst_88 : f32 to vector<2x32xf32>
    %503 = arith.subf %502, %496 : vector<2x32xf32>
    %504 = arith.mulf %503, %501 : vector<2x32xf32>
    %505 = arith.mulf %496, %476 : vector<2x32xf32>
    %506 = arith.addf %504, %505 : vector<2x32xf32>
    %507 = tpu.concatenate %56, %86, %116, %146, %176, %206, %236, %266, %296, %326, %356, %386, %416, %446, %476, %506 in 0 : vector<2x32xf32>, vector<2x32xf32>, vector<2x32xf32>, vector<2x32xf32>, vector<2x32xf32>, vector<2x32xf32>, vector<2x32xf32>, vector<2x32xf32>, vector<2x32xf32>, vector<2x32xf32>, vector<2x32xf32>, vector<2x32xf32>, vector<2x32xf32>, vector<2x32xf32>, vector<2x32xf32>, vector<2x32xf32> -> vector<32x32xf32>
    %cst_89 = arith.constant dense<0.000000e+00> : vector<32xf32>
    %508 = vector.multi_reduction <add>, %507, %cst_89 [1] : vector<32x32xf32> to vector<32xf32>
    %509 = vector.shape_cast %508 : vector<32xf32> to vector<32x1xf32>
    %cst_90 = arith.constant 3.200000e+01 : f32
    %510 = vector.broadcast %cst_90 : f32 to vector<32x1xf32>
    %511 = arith.divf %509, %510 : vector<32x1xf32>
    %512 = vector.broadcast %511 : vector<32x1xf32> to vector<32x32xf32>
    %513 = arith.subf %507, %512 : vector<32x32xf32>
    %514 = arith.mulf %513, %513 : vector<32x32xf32>
    %cst_91 = arith.constant dense<0.000000e+00> : vector<32xf32>
    %515 = vector.multi_reduction <add>, %514, %cst_91 [1] : vector<32x32xf32> to vector<32xf32>
    %516 = vector.shape_cast %515 : vector<32xf32> to vector<32x1xf32>
    %cst_92 = arith.constant 3.200000e+01 : f32
    %517 = vector.broadcast %cst_92 : f32 to vector<32x1xf32>
    %518 = arith.divf %516, %517 : vector<32x1xf32>
    %519 = vector.broadcast %511 : vector<32x1xf32> to vector<32x32xf32>
    %520 = arith.subf %507, %519 : vector<32x32xf32>
    %cst_93 = arith.constant 9.99999974E-6 : f32
    %521 = vector.broadcast %cst_93 : f32 to vector<32x1xf32>
    %522 = arith.addf %518, %521 : vector<32x1xf32>
    %523 = math.rsqrt %522 : vector<32x1xf32>
    %524 = vector.broadcast %523 : vector<32x1xf32> to vector<32x32xf32>
    %525 = arith.mulf %520, %524 : vector<32x32xf32>
    %526 = vector.broadcast %21 : vector<1x32xf32> to vector<32x32xf32>
    %527 = arith.mulf %525, %526 : vector<32x32xf32>
    %528 = vector.broadcast %22 : vector<1x32xf32> to vector<32x32xf32>
    %529 = arith.addf %527, %528 : vector<32x32xf32>
    %c0_94 = arith.constant 0 : index
    %c0_95 = arith.constant 0 : index
    %530 = vector.load %arg11[%c0_94, %c0_95] : memref<32x96xf32, #tpu.memory_space<vmem>>, vector<32x96xf32>
    %c0_96 = arith.constant 0 : index
    %c0_97 = arith.constant 0 : index
    %531 = vector.load %arg12[%c0_96, %c0_97] : memref<32x96xf32, #tpu.memory_space<vmem>>, vector<32x96xf32>
    %c0_98 = arith.constant 0 : index
    %c0_99 = arith.constant 0 : index
    %532 = vector.load %arg13[%c0_98, %c0_99] : memref<1x96xf32, #tpu.memory_space<vmem>>, vector<1x96xf32>
    %c0_100 = arith.constant 0 : index
    %c0_101 = arith.constant 0 : index
    %533 = vector.load %arg14[%c0_100, %c0_101] : memref<1x96xf32, #tpu.memory_space<vmem>>, vector<1x96xf32>
    %c0_102 = arith.constant 0 : index
    %c0_103 = arith.constant 0 : index
    %534 = vector.load %arg15[%c0_102, %c0_103] : memref<1x32xf32, #tpu.memory_space<vmem>>, vector<1x32xf32>
    %c0_104 = arith.constant 0 : index
    %c0_105 = arith.constant 0 : index
    %535 = vector.load %arg16[%c0_104, %c0_105] : memref<1x32xf32, #tpu.memory_space<vmem>>, vector<1x32xf32>
    %cst_106 = arith.constant dense<0.000000e+00> : vector<32x96xf32>
    %536 = tpu.matmul %529, %530, %cst_106 {dimension_numbers = #tpu.dot_dimension_numbers<[1], [0], [0], [1], [0, 0, 1, 1], [], []>} : vector<32x32xf32>, vector<32x96xf32>, vector<32x96xf32> -> vector<32x96xf32>
    %537 = vector.broadcast %532 : vector<1x96xf32> to vector<32x96xf32>
    %538 = arith.addf %536, %537 : vector<32x96xf32>
    %cst_107 = arith.constant 0.000000e+00 : f32
    %539 = vector.broadcast %cst_107 : f32 to vector<2x32xf32>
    %cst_108 = arith.constant dense<0.000000e+00> : vector<2x96xf32>
    %540 = tpu.matmul %539, %531, %cst_108 {dimension_numbers = #tpu.dot_dimension_numbers<[1], [0], [0], [1], [0, 0, 1, 1], [], []>} : vector<2x32xf32>, vector<32x96xf32>, vector<2x96xf32> -> vector<2x96xf32>
    %541 = vector.broadcast %533 : vector<1x96xf32> to vector<2x96xf32>
    %542 = arith.addf %540, %541 : vector<2x96xf32>
    %543 = vector.extract_strided_slice %538 {offsets = [0, 0], sizes = [2, 96], strides = [1, 1]} : vector<32x96xf32> to vector<2x96xf32>
    %544 = vector.extract_strided_slice %543 {offsets = [0, 0], sizes = [2, 32], strides = [1, 1]} : vector<2x96xf32> to vector<2x32xf32>
    %545 = vector.extract_strided_slice %542 {offsets = [0, 0], sizes = [2, 32], strides = [1, 1]} : vector<2x96xf32> to vector<2x32xf32>
    %546 = arith.addf %544, %545 : vector<2x32xf32>
    %547 = arith.negf %546 : vector<2x32xf32>
    %548 = math.exp %547 : vector<2x32xf32>
    %cst_109 = arith.constant 1.000000e+00 : f32
    %549 = vector.broadcast %cst_109 : f32 to vector<2x32xf32>
    %550 = arith.addf %549, %548 : vector<2x32xf32>
    %551 = arith.divf %549, %550 : vector<2x32xf32>
    %552 = vector.extract_strided_slice %543 {offsets = [0, 32], sizes = [2, 32], strides = [1, 1]} : vector<2x96xf32> to vector<2x32xf32>
    %553 = vector.extract_strided_slice %542 {offsets = [0, 32], sizes = [2, 32], strides = [1, 1]} : vector<2x96xf32> to vector<2x32xf32>
    %554 = arith.addf %552, %553 : vector<2x32xf32>
    %555 = arith.negf %554 : vector<2x32xf32>
    %556 = math.exp %555 : vector<2x32xf32>
    %cst_110 = arith.constant 1.000000e+00 : f32
    %557 = vector.broadcast %cst_110 : f32 to vector<2x32xf32>
    %558 = arith.addf %557, %556 : vector<2x32xf32>
    %559 = arith.divf %557, %558 : vector<2x32xf32>
    %560 = vector.extract_strided_slice %543 {offsets = [0, 64], sizes = [2, 32], strides = [1, 1]} : vector<2x96xf32> to vector<2x32xf32>
    %561 = vector.extract_strided_slice %542 {offsets = [0, 64], sizes = [2, 32], strides = [1, 1]} : vector<2x96xf32> to vector<2x32xf32>
    %562 = arith.mulf %551, %561 : vector<2x32xf32>
    %563 = arith.addf %560, %562 : vector<2x32xf32>
    %564 = math.tanh %563 : vector<2x32xf32>
    %cst_111 = arith.constant 1.000000e+00 : f32
    %565 = vector.broadcast %cst_111 : f32 to vector<2x32xf32>
    %566 = arith.subf %565, %559 : vector<2x32xf32>
    %567 = arith.mulf %566, %564 : vector<2x32xf32>
    %568 = arith.mulf %559, %539 : vector<2x32xf32>
    %569 = arith.addf %567, %568 : vector<2x32xf32>
    %cst_112 = arith.constant dense<0.000000e+00> : vector<2x96xf32>
    %570 = tpu.matmul %569, %531, %cst_112 {dimension_numbers = #tpu.dot_dimension_numbers<[1], [0], [0], [1], [0, 0, 1, 1], [], []>} : vector<2x32xf32>, vector<32x96xf32>, vector<2x96xf32> -> vector<2x96xf32>
    %571 = vector.broadcast %533 : vector<1x96xf32> to vector<2x96xf32>
    %572 = arith.addf %570, %571 : vector<2x96xf32>
    %573 = vector.extract_strided_slice %538 {offsets = [2, 0], sizes = [2, 96], strides = [1, 1]} : vector<32x96xf32> to vector<2x96xf32>
    %574 = vector.extract_strided_slice %573 {offsets = [0, 0], sizes = [2, 32], strides = [1, 1]} : vector<2x96xf32> to vector<2x32xf32>
    %575 = vector.extract_strided_slice %572 {offsets = [0, 0], sizes = [2, 32], strides = [1, 1]} : vector<2x96xf32> to vector<2x32xf32>
    %576 = arith.addf %574, %575 : vector<2x32xf32>
    %577 = arith.negf %576 : vector<2x32xf32>
    %578 = math.exp %577 : vector<2x32xf32>
    %cst_113 = arith.constant 1.000000e+00 : f32
    %579 = vector.broadcast %cst_113 : f32 to vector<2x32xf32>
    %580 = arith.addf %579, %578 : vector<2x32xf32>
    %581 = arith.divf %579, %580 : vector<2x32xf32>
    %582 = vector.extract_strided_slice %573 {offsets = [0, 32], sizes = [2, 32], strides = [1, 1]} : vector<2x96xf32> to vector<2x32xf32>
    %583 = vector.extract_strided_slice %572 {offsets = [0, 32], sizes = [2, 32], strides = [1, 1]} : vector<2x96xf32> to vector<2x32xf32>
    %584 = arith.addf %582, %583 : vector<2x32xf32>
    %585 = arith.negf %584 : vector<2x32xf32>
    %586 = math.exp %585 : vector<2x32xf32>
    %cst_114 = arith.constant 1.000000e+00 : f32
    %587 = vector.broadcast %cst_114 : f32 to vector<2x32xf32>
    %588 = arith.addf %587, %586 : vector<2x32xf32>
    %589 = arith.divf %587, %588 : vector<2x32xf32>
    %590 = vector.extract_strided_slice %573 {offsets = [0, 64], sizes = [2, 32], strides = [1, 1]} : vector<2x96xf32> to vector<2x32xf32>
    %591 = vector.extract_strided_slice %572 {offsets = [0, 64], sizes = [2, 32], strides = [1, 1]} : vector<2x96xf32> to vector<2x32xf32>
    %592 = arith.mulf %581, %591 : vector<2x32xf32>
    %593 = arith.addf %590, %592 : vector<2x32xf32>
    %594 = math.tanh %593 : vector<2x32xf32>
    %cst_115 = arith.constant 1.000000e+00 : f32
    %595 = vector.broadcast %cst_115 : f32 to vector<2x32xf32>
    %596 = arith.subf %595, %589 : vector<2x32xf32>
    %597 = arith.mulf %596, %594 : vector<2x32xf32>
    %598 = arith.mulf %589, %569 : vector<2x32xf32>
    %599 = arith.addf %597, %598 : vector<2x32xf32>
    %cst_116 = arith.constant dense<0.000000e+00> : vector<2x96xf32>
    %600 = tpu.matmul %599, %531, %cst_116 {dimension_numbers = #tpu.dot_dimension_numbers<[1], [0], [0], [1], [0, 0, 1, 1], [], []>} : vector<2x32xf32>, vector<32x96xf32>, vector<2x96xf32> -> vector<2x96xf32>
    %601 = vector.broadcast %533 : vector<1x96xf32> to vector<2x96xf32>
    %602 = arith.addf %600, %601 : vector<2x96xf32>
    %603 = vector.extract_strided_slice %538 {offsets = [4, 0], sizes = [2, 96], strides = [1, 1]} : vector<32x96xf32> to vector<2x96xf32>
    %604 = vector.extract_strided_slice %603 {offsets = [0, 0], sizes = [2, 32], strides = [1, 1]} : vector<2x96xf32> to vector<2x32xf32>
    %605 = vector.extract_strided_slice %602 {offsets = [0, 0], sizes = [2, 32], strides = [1, 1]} : vector<2x96xf32> to vector<2x32xf32>
    %606 = arith.addf %604, %605 : vector<2x32xf32>
    %607 = arith.negf %606 : vector<2x32xf32>
    %608 = math.exp %607 : vector<2x32xf32>
    %cst_117 = arith.constant 1.000000e+00 : f32
    %609 = vector.broadcast %cst_117 : f32 to vector<2x32xf32>
    %610 = arith.addf %609, %608 : vector<2x32xf32>
    %611 = arith.divf %609, %610 : vector<2x32xf32>
    %612 = vector.extract_strided_slice %603 {offsets = [0, 32], sizes = [2, 32], strides = [1, 1]} : vector<2x96xf32> to vector<2x32xf32>
    %613 = vector.extract_strided_slice %602 {offsets = [0, 32], sizes = [2, 32], strides = [1, 1]} : vector<2x96xf32> to vector<2x32xf32>
    %614 = arith.addf %612, %613 : vector<2x32xf32>
    %615 = arith.negf %614 : vector<2x32xf32>
    %616 = math.exp %615 : vector<2x32xf32>
    %cst_118 = arith.constant 1.000000e+00 : f32
    %617 = vector.broadcast %cst_118 : f32 to vector<2x32xf32>
    %618 = arith.addf %617, %616 : vector<2x32xf32>
    %619 = arith.divf %617, %618 : vector<2x32xf32>
    %620 = vector.extract_strided_slice %603 {offsets = [0, 64], sizes = [2, 32], strides = [1, 1]} : vector<2x96xf32> to vector<2x32xf32>
    %621 = vector.extract_strided_slice %602 {offsets = [0, 64], sizes = [2, 32], strides = [1, 1]} : vector<2x96xf32> to vector<2x32xf32>
    %622 = arith.mulf %611, %621 : vector<2x32xf32>
    %623 = arith.addf %620, %622 : vector<2x32xf32>
    %624 = math.tanh %623 : vector<2x32xf32>
    %cst_119 = arith.constant 1.000000e+00 : f32
    %625 = vector.broadcast %cst_119 : f32 to vector<2x32xf32>
    %626 = arith.subf %625, %619 : vector<2x32xf32>
    %627 = arith.mulf %626, %624 : vector<2x32xf32>
    %628 = arith.mulf %619, %599 : vector<2x32xf32>
    %629 = arith.addf %627, %628 : vector<2x32xf32>
    %cst_120 = arith.constant dense<0.000000e+00> : vector<2x96xf32>
    %630 = tpu.matmul %629, %531, %cst_120 {dimension_numbers = #tpu.dot_dimension_numbers<[1], [0], [0], [1], [0, 0, 1, 1], [], []>} : vector<2x32xf32>, vector<32x96xf32>, vector<2x96xf32> -> vector<2x96xf32>
    %631 = vector.broadcast %533 : vector<1x96xf32> to vector<2x96xf32>
    %632 = arith.addf %630, %631 : vector<2x96xf32>
    %633 = vector.extract_strided_slice %538 {offsets = [6, 0], sizes = [2, 96], strides = [1, 1]} : vector<32x96xf32> to vector<2x96xf32>
    %634 = vector.extract_strided_slice %633 {offsets = [0, 0], sizes = [2, 32], strides = [1, 1]} : vector<2x96xf32> to vector<2x32xf32>
    %635 = vector.extract_strided_slice %632 {offsets = [0, 0], sizes = [2, 32], strides = [1, 1]} : vector<2x96xf32> to vector<2x32xf32>
    %636 = arith.addf %634, %635 : vector<2x32xf32>
    %637 = arith.negf %636 : vector<2x32xf32>
    %638 = math.exp %637 : vector<2x32xf32>
    %cst_121 = arith.constant 1.000000e+00 : f32
    %639 = vector.broadcast %cst_121 : f32 to vector<2x32xf32>
    %640 = arith.addf %639, %638 : vector<2x32xf32>
    %641 = arith.divf %639, %640 : vector<2x32xf32>
    %642 = vector.extract_strided_slice %633 {offsets = [0, 32], sizes = [2, 32], strides = [1, 1]} : vector<2x96xf32> to vector<2x32xf32>
    %643 = vector.extract_strided_slice %632 {offsets = [0, 32], sizes = [2, 32], strides = [1, 1]} : vector<2x96xf32> to vector<2x32xf32>
    %644 = arith.addf %642, %643 : vector<2x32xf32>
    %645 = arith.negf %644 : vector<2x32xf32>
    %646 = math.exp %645 : vector<2x32xf32>
    %cst_122 = arith.constant 1.000000e+00 : f32
    %647 = vector.broadcast %cst_122 : f32 to vector<2x32xf32>
    %648 = arith.addf %647, %646 : vector<2x32xf32>
    %649 = arith.divf %647, %648 : vector<2x32xf32>
    %650 = vector.extract_strided_slice %633 {offsets = [0, 64], sizes = [2, 32], strides = [1, 1]} : vector<2x96xf32> to vector<2x32xf32>
    %651 = vector.extract_strided_slice %632 {offsets = [0, 64], sizes = [2, 32], strides = [1, 1]} : vector<2x96xf32> to vector<2x32xf32>
    %652 = arith.mulf %641, %651 : vector<2x32xf32>
    %653 = arith.addf %650, %652 : vector<2x32xf32>
    %654 = math.tanh %653 : vector<2x32xf32>
    %cst_123 = arith.constant 1.000000e+00 : f32
    %655 = vector.broadcast %cst_123 : f32 to vector<2x32xf32>
    %656 = arith.subf %655, %649 : vector<2x32xf32>
    %657 = arith.mulf %656, %654 : vector<2x32xf32>
    %658 = arith.mulf %649, %629 : vector<2x32xf32>
    %659 = arith.addf %657, %658 : vector<2x32xf32>
    %cst_124 = arith.constant dense<0.000000e+00> : vector<2x96xf32>
    %660 = tpu.matmul %659, %531, %cst_124 {dimension_numbers = #tpu.dot_dimension_numbers<[1], [0], [0], [1], [0, 0, 1, 1], [], []>} : vector<2x32xf32>, vector<32x96xf32>, vector<2x96xf32> -> vector<2x96xf32>
    %661 = vector.broadcast %533 : vector<1x96xf32> to vector<2x96xf32>
    %662 = arith.addf %660, %661 : vector<2x96xf32>
    %663 = vector.extract_strided_slice %538 {offsets = [8, 0], sizes = [2, 96], strides = [1, 1]} : vector<32x96xf32> to vector<2x96xf32>
    %664 = vector.extract_strided_slice %663 {offsets = [0, 0], sizes = [2, 32], strides = [1, 1]} : vector<2x96xf32> to vector<2x32xf32>
    %665 = vector.extract_strided_slice %662 {offsets = [0, 0], sizes = [2, 32], strides = [1, 1]} : vector<2x96xf32> to vector<2x32xf32>
    %666 = arith.addf %664, %665 : vector<2x32xf32>
    %667 = arith.negf %666 : vector<2x32xf32>
    %668 = math.exp %667 : vector<2x32xf32>
    %cst_125 = arith.constant 1.000000e+00 : f32
    %669 = vector.broadcast %cst_125 : f32 to vector<2x32xf32>
    %670 = arith.addf %669, %668 : vector<2x32xf32>
    %671 = arith.divf %669, %670 : vector<2x32xf32>
    %672 = vector.extract_strided_slice %663 {offsets = [0, 32], sizes = [2, 32], strides = [1, 1]} : vector<2x96xf32> to vector<2x32xf32>
    %673 = vector.extract_strided_slice %662 {offsets = [0, 32], sizes = [2, 32], strides = [1, 1]} : vector<2x96xf32> to vector<2x32xf32>
    %674 = arith.addf %672, %673 : vector<2x32xf32>
    %675 = arith.negf %674 : vector<2x32xf32>
    %676 = math.exp %675 : vector<2x32xf32>
    %cst_126 = arith.constant 1.000000e+00 : f32
    %677 = vector.broadcast %cst_126 : f32 to vector<2x32xf32>
    %678 = arith.addf %677, %676 : vector<2x32xf32>
    %679 = arith.divf %677, %678 : vector<2x32xf32>
    %680 = vector.extract_strided_slice %663 {offsets = [0, 64], sizes = [2, 32], strides = [1, 1]} : vector<2x96xf32> to vector<2x32xf32>
    %681 = vector.extract_strided_slice %662 {offsets = [0, 64], sizes = [2, 32], strides = [1, 1]} : vector<2x96xf32> to vector<2x32xf32>
    %682 = arith.mulf %671, %681 : vector<2x32xf32>
    %683 = arith.addf %680, %682 : vector<2x32xf32>
    %684 = math.tanh %683 : vector<2x32xf32>
    %cst_127 = arith.constant 1.000000e+00 : f32
    %685 = vector.broadcast %cst_127 : f32 to vector<2x32xf32>
    %686 = arith.subf %685, %679 : vector<2x32xf32>
    %687 = arith.mulf %686, %684 : vector<2x32xf32>
    %688 = arith.mulf %679, %659 : vector<2x32xf32>
    %689 = arith.addf %687, %688 : vector<2x32xf32>
    %cst_128 = arith.constant dense<0.000000e+00> : vector<2x96xf32>
    %690 = tpu.matmul %689, %531, %cst_128 {dimension_numbers = #tpu.dot_dimension_numbers<[1], [0], [0], [1], [0, 0, 1, 1], [], []>} : vector<2x32xf32>, vector<32x96xf32>, vector<2x96xf32> -> vector<2x96xf32>
    %691 = vector.broadcast %533 : vector<1x96xf32> to vector<2x96xf32>
    %692 = arith.addf %690, %691 : vector<2x96xf32>
    %693 = vector.extract_strided_slice %538 {offsets = [10, 0], sizes = [2, 96], strides = [1, 1]} : vector<32x96xf32> to vector<2x96xf32>
    %694 = vector.extract_strided_slice %693 {offsets = [0, 0], sizes = [2, 32], strides = [1, 1]} : vector<2x96xf32> to vector<2x32xf32>
    %695 = vector.extract_strided_slice %692 {offsets = [0, 0], sizes = [2, 32], strides = [1, 1]} : vector<2x96xf32> to vector<2x32xf32>
    %696 = arith.addf %694, %695 : vector<2x32xf32>
    %697 = arith.negf %696 : vector<2x32xf32>
    %698 = math.exp %697 : vector<2x32xf32>
    %cst_129 = arith.constant 1.000000e+00 : f32
    %699 = vector.broadcast %cst_129 : f32 to vector<2x32xf32>
    %700 = arith.addf %699, %698 : vector<2x32xf32>
    %701 = arith.divf %699, %700 : vector<2x32xf32>
    %702 = vector.extract_strided_slice %693 {offsets = [0, 32], sizes = [2, 32], strides = [1, 1]} : vector<2x96xf32> to vector<2x32xf32>
    %703 = vector.extract_strided_slice %692 {offsets = [0, 32], sizes = [2, 32], strides = [1, 1]} : vector<2x96xf32> to vector<2x32xf32>
    %704 = arith.addf %702, %703 : vector<2x32xf32>
    %705 = arith.negf %704 : vector<2x32xf32>
    %706 = math.exp %705 : vector<2x32xf32>
    %cst_130 = arith.constant 1.000000e+00 : f32
    %707 = vector.broadcast %cst_130 : f32 to vector<2x32xf32>
    %708 = arith.addf %707, %706 : vector<2x32xf32>
    %709 = arith.divf %707, %708 : vector<2x32xf32>
    %710 = vector.extract_strided_slice %693 {offsets = [0, 64], sizes = [2, 32], strides = [1, 1]} : vector<2x96xf32> to vector<2x32xf32>
    %711 = vector.extract_strided_slice %692 {offsets = [0, 64], sizes = [2, 32], strides = [1, 1]} : vector<2x96xf32> to vector<2x32xf32>
    %712 = arith.mulf %701, %711 : vector<2x32xf32>
    %713 = arith.addf %710, %712 : vector<2x32xf32>
    %714 = math.tanh %713 : vector<2x32xf32>
    %cst_131 = arith.constant 1.000000e+00 : f32
    %715 = vector.broadcast %cst_131 : f32 to vector<2x32xf32>
    %716 = arith.subf %715, %709 : vector<2x32xf32>
    %717 = arith.mulf %716, %714 : vector<2x32xf32>
    %718 = arith.mulf %709, %689 : vector<2x32xf32>
    %719 = arith.addf %717, %718 : vector<2x32xf32>
    %cst_132 = arith.constant dense<0.000000e+00> : vector<2x96xf32>
    %720 = tpu.matmul %719, %531, %cst_132 {dimension_numbers = #tpu.dot_dimension_numbers<[1], [0], [0], [1], [0, 0, 1, 1], [], []>} : vector<2x32xf32>, vector<32x96xf32>, vector<2x96xf32> -> vector<2x96xf32>
    %721 = vector.broadcast %533 : vector<1x96xf32> to vector<2x96xf32>
    %722 = arith.addf %720, %721 : vector<2x96xf32>
    %723 = vector.extract_strided_slice %538 {offsets = [12, 0], sizes = [2, 96], strides = [1, 1]} : vector<32x96xf32> to vector<2x96xf32>
    %724 = vector.extract_strided_slice %723 {offsets = [0, 0], sizes = [2, 32], strides = [1, 1]} : vector<2x96xf32> to vector<2x32xf32>
    %725 = vector.extract_strided_slice %722 {offsets = [0, 0], sizes = [2, 32], strides = [1, 1]} : vector<2x96xf32> to vector<2x32xf32>
    %726 = arith.addf %724, %725 : vector<2x32xf32>
    %727 = arith.negf %726 : vector<2x32xf32>
    %728 = math.exp %727 : vector<2x32xf32>
    %cst_133 = arith.constant 1.000000e+00 : f32
    %729 = vector.broadcast %cst_133 : f32 to vector<2x32xf32>
    %730 = arith.addf %729, %728 : vector<2x32xf32>
    %731 = arith.divf %729, %730 : vector<2x32xf32>
    %732 = vector.extract_strided_slice %723 {offsets = [0, 32], sizes = [2, 32], strides = [1, 1]} : vector<2x96xf32> to vector<2x32xf32>
    %733 = vector.extract_strided_slice %722 {offsets = [0, 32], sizes = [2, 32], strides = [1, 1]} : vector<2x96xf32> to vector<2x32xf32>
    %734 = arith.addf %732, %733 : vector<2x32xf32>
    %735 = arith.negf %734 : vector<2x32xf32>
    %736 = math.exp %735 : vector<2x32xf32>
    %cst_134 = arith.constant 1.000000e+00 : f32
    %737 = vector.broadcast %cst_134 : f32 to vector<2x32xf32>
    %738 = arith.addf %737, %736 : vector<2x32xf32>
    %739 = arith.divf %737, %738 : vector<2x32xf32>
    %740 = vector.extract_strided_slice %723 {offsets = [0, 64], sizes = [2, 32], strides = [1, 1]} : vector<2x96xf32> to vector<2x32xf32>
    %741 = vector.extract_strided_slice %722 {offsets = [0, 64], sizes = [2, 32], strides = [1, 1]} : vector<2x96xf32> to vector<2x32xf32>
    %742 = arith.mulf %731, %741 : vector<2x32xf32>
    %743 = arith.addf %740, %742 : vector<2x32xf32>
    %744 = math.tanh %743 : vector<2x32xf32>
    %cst_135 = arith.constant 1.000000e+00 : f32
    %745 = vector.broadcast %cst_135 : f32 to vector<2x32xf32>
    %746 = arith.subf %745, %739 : vector<2x32xf32>
    %747 = arith.mulf %746, %744 : vector<2x32xf32>
    %748 = arith.mulf %739, %719 : vector<2x32xf32>
    %749 = arith.addf %747, %748 : vector<2x32xf32>
    %cst_136 = arith.constant dense<0.000000e+00> : vector<2x96xf32>
    %750 = tpu.matmul %749, %531, %cst_136 {dimension_numbers = #tpu.dot_dimension_numbers<[1], [0], [0], [1], [0, 0, 1, 1], [], []>} : vector<2x32xf32>, vector<32x96xf32>, vector<2x96xf32> -> vector<2x96xf32>
    %751 = vector.broadcast %533 : vector<1x96xf32> to vector<2x96xf32>
    %752 = arith.addf %750, %751 : vector<2x96xf32>
    %753 = vector.extract_strided_slice %538 {offsets = [14, 0], sizes = [2, 96], strides = [1, 1]} : vector<32x96xf32> to vector<2x96xf32>
    %754 = vector.extract_strided_slice %753 {offsets = [0, 0], sizes = [2, 32], strides = [1, 1]} : vector<2x96xf32> to vector<2x32xf32>
    %755 = vector.extract_strided_slice %752 {offsets = [0, 0], sizes = [2, 32], strides = [1, 1]} : vector<2x96xf32> to vector<2x32xf32>
    %756 = arith.addf %754, %755 : vector<2x32xf32>
    %757 = arith.negf %756 : vector<2x32xf32>
    %758 = math.exp %757 : vector<2x32xf32>
    %cst_137 = arith.constant 1.000000e+00 : f32
    %759 = vector.broadcast %cst_137 : f32 to vector<2x32xf32>
    %760 = arith.addf %759, %758 : vector<2x32xf32>
    %761 = arith.divf %759, %760 : vector<2x32xf32>
    %762 = vector.extract_strided_slice %753 {offsets = [0, 32], sizes = [2, 32], strides = [1, 1]} : vector<2x96xf32> to vector<2x32xf32>
    %763 = vector.extract_strided_slice %752 {offsets = [0, 32], sizes = [2, 32], strides = [1, 1]} : vector<2x96xf32> to vector<2x32xf32>
    %764 = arith.addf %762, %763 : vector<2x32xf32>
    %765 = arith.negf %764 : vector<2x32xf32>
    %766 = math.exp %765 : vector<2x32xf32>
    %cst_138 = arith.constant 1.000000e+00 : f32
    %767 = vector.broadcast %cst_138 : f32 to vector<2x32xf32>
    %768 = arith.addf %767, %766 : vector<2x32xf32>
    %769 = arith.divf %767, %768 : vector<2x32xf32>
    %770 = vector.extract_strided_slice %753 {offsets = [0, 64], sizes = [2, 32], strides = [1, 1]} : vector<2x96xf32> to vector<2x32xf32>
    %771 = vector.extract_strided_slice %752 {offsets = [0, 64], sizes = [2, 32], strides = [1, 1]} : vector<2x96xf32> to vector<2x32xf32>
    %772 = arith.mulf %761, %771 : vector<2x32xf32>
    %773 = arith.addf %770, %772 : vector<2x32xf32>
    %774 = math.tanh %773 : vector<2x32xf32>
    %cst_139 = arith.constant 1.000000e+00 : f32
    %775 = vector.broadcast %cst_139 : f32 to vector<2x32xf32>
    %776 = arith.subf %775, %769 : vector<2x32xf32>
    %777 = arith.mulf %776, %774 : vector<2x32xf32>
    %778 = arith.mulf %769, %749 : vector<2x32xf32>
    %779 = arith.addf %777, %778 : vector<2x32xf32>
    %cst_140 = arith.constant dense<0.000000e+00> : vector<2x96xf32>
    %780 = tpu.matmul %779, %531, %cst_140 {dimension_numbers = #tpu.dot_dimension_numbers<[1], [0], [0], [1], [0, 0, 1, 1], [], []>} : vector<2x32xf32>, vector<32x96xf32>, vector<2x96xf32> -> vector<2x96xf32>
    %781 = vector.broadcast %533 : vector<1x96xf32> to vector<2x96xf32>
    %782 = arith.addf %780, %781 : vector<2x96xf32>
    %783 = vector.extract_strided_slice %538 {offsets = [16, 0], sizes = [2, 96], strides = [1, 1]} : vector<32x96xf32> to vector<2x96xf32>
    %784 = vector.extract_strided_slice %783 {offsets = [0, 0], sizes = [2, 32], strides = [1, 1]} : vector<2x96xf32> to vector<2x32xf32>
    %785 = vector.extract_strided_slice %782 {offsets = [0, 0], sizes = [2, 32], strides = [1, 1]} : vector<2x96xf32> to vector<2x32xf32>
    %786 = arith.addf %784, %785 : vector<2x32xf32>
    %787 = arith.negf %786 : vector<2x32xf32>
    %788 = math.exp %787 : vector<2x32xf32>
    %cst_141 = arith.constant 1.000000e+00 : f32
    %789 = vector.broadcast %cst_141 : f32 to vector<2x32xf32>
    %790 = arith.addf %789, %788 : vector<2x32xf32>
    %791 = arith.divf %789, %790 : vector<2x32xf32>
    %792 = vector.extract_strided_slice %783 {offsets = [0, 32], sizes = [2, 32], strides = [1, 1]} : vector<2x96xf32> to vector<2x32xf32>
    %793 = vector.extract_strided_slice %782 {offsets = [0, 32], sizes = [2, 32], strides = [1, 1]} : vector<2x96xf32> to vector<2x32xf32>
    %794 = arith.addf %792, %793 : vector<2x32xf32>
    %795 = arith.negf %794 : vector<2x32xf32>
    %796 = math.exp %795 : vector<2x32xf32>
    %cst_142 = arith.constant 1.000000e+00 : f32
    %797 = vector.broadcast %cst_142 : f32 to vector<2x32xf32>
    %798 = arith.addf %797, %796 : vector<2x32xf32>
    %799 = arith.divf %797, %798 : vector<2x32xf32>
    %800 = vector.extract_strided_slice %783 {offsets = [0, 64], sizes = [2, 32], strides = [1, 1]} : vector<2x96xf32> to vector<2x32xf32>
    %801 = vector.extract_strided_slice %782 {offsets = [0, 64], sizes = [2, 32], strides = [1, 1]} : vector<2x96xf32> to vector<2x32xf32>
    %802 = arith.mulf %791, %801 : vector<2x32xf32>
    %803 = arith.addf %800, %802 : vector<2x32xf32>
    %804 = math.tanh %803 : vector<2x32xf32>
    %cst_143 = arith.constant 1.000000e+00 : f32
    %805 = vector.broadcast %cst_143 : f32 to vector<2x32xf32>
    %806 = arith.subf %805, %799 : vector<2x32xf32>
    %807 = arith.mulf %806, %804 : vector<2x32xf32>
    %808 = arith.mulf %799, %779 : vector<2x32xf32>
    %809 = arith.addf %807, %808 : vector<2x32xf32>
    %cst_144 = arith.constant dense<0.000000e+00> : vector<2x96xf32>
    %810 = tpu.matmul %809, %531, %cst_144 {dimension_numbers = #tpu.dot_dimension_numbers<[1], [0], [0], [1], [0, 0, 1, 1], [], []>} : vector<2x32xf32>, vector<32x96xf32>, vector<2x96xf32> -> vector<2x96xf32>
    %811 = vector.broadcast %533 : vector<1x96xf32> to vector<2x96xf32>
    %812 = arith.addf %810, %811 : vector<2x96xf32>
    %813 = vector.extract_strided_slice %538 {offsets = [18, 0], sizes = [2, 96], strides = [1, 1]} : vector<32x96xf32> to vector<2x96xf32>
    %814 = vector.extract_strided_slice %813 {offsets = [0, 0], sizes = [2, 32], strides = [1, 1]} : vector<2x96xf32> to vector<2x32xf32>
    %815 = vector.extract_strided_slice %812 {offsets = [0, 0], sizes = [2, 32], strides = [1, 1]} : vector<2x96xf32> to vector<2x32xf32>
    %816 = arith.addf %814, %815 : vector<2x32xf32>
    %817 = arith.negf %816 : vector<2x32xf32>
    %818 = math.exp %817 : vector<2x32xf32>
    %cst_145 = arith.constant 1.000000e+00 : f32
    %819 = vector.broadcast %cst_145 : f32 to vector<2x32xf32>
    %820 = arith.addf %819, %818 : vector<2x32xf32>
    %821 = arith.divf %819, %820 : vector<2x32xf32>
    %822 = vector.extract_strided_slice %813 {offsets = [0, 32], sizes = [2, 32], strides = [1, 1]} : vector<2x96xf32> to vector<2x32xf32>
    %823 = vector.extract_strided_slice %812 {offsets = [0, 32], sizes = [2, 32], strides = [1, 1]} : vector<2x96xf32> to vector<2x32xf32>
    %824 = arith.addf %822, %823 : vector<2x32xf32>
    %825 = arith.negf %824 : vector<2x32xf32>
    %826 = math.exp %825 : vector<2x32xf32>
    %cst_146 = arith.constant 1.000000e+00 : f32
    %827 = vector.broadcast %cst_146 : f32 to vector<2x32xf32>
    %828 = arith.addf %827, %826 : vector<2x32xf32>
    %829 = arith.divf %827, %828 : vector<2x32xf32>
    %830 = vector.extract_strided_slice %813 {offsets = [0, 64], sizes = [2, 32], strides = [1, 1]} : vector<2x96xf32> to vector<2x32xf32>
    %831 = vector.extract_strided_slice %812 {offsets = [0, 64], sizes = [2, 32], strides = [1, 1]} : vector<2x96xf32> to vector<2x32xf32>
    %832 = arith.mulf %821, %831 : vector<2x32xf32>
    %833 = arith.addf %830, %832 : vector<2x32xf32>
    %834 = math.tanh %833 : vector<2x32xf32>
    %cst_147 = arith.constant 1.000000e+00 : f32
    %835 = vector.broadcast %cst_147 : f32 to vector<2x32xf32>
    %836 = arith.subf %835, %829 : vector<2x32xf32>
    %837 = arith.mulf %836, %834 : vector<2x32xf32>
    %838 = arith.mulf %829, %809 : vector<2x32xf32>
    %839 = arith.addf %837, %838 : vector<2x32xf32>
    %cst_148 = arith.constant dense<0.000000e+00> : vector<2x96xf32>
    %840 = tpu.matmul %839, %531, %cst_148 {dimension_numbers = #tpu.dot_dimension_numbers<[1], [0], [0], [1], [0, 0, 1, 1], [], []>} : vector<2x32xf32>, vector<32x96xf32>, vector<2x96xf32> -> vector<2x96xf32>
    %841 = vector.broadcast %533 : vector<1x96xf32> to vector<2x96xf32>
    %842 = arith.addf %840, %841 : vector<2x96xf32>
    %843 = vector.extract_strided_slice %538 {offsets = [20, 0], sizes = [2, 96], strides = [1, 1]} : vector<32x96xf32> to vector<2x96xf32>
    %844 = vector.extract_strided_slice %843 {offsets = [0, 0], sizes = [2, 32], strides = [1, 1]} : vector<2x96xf32> to vector<2x32xf32>
    %845 = vector.extract_strided_slice %842 {offsets = [0, 0], sizes = [2, 32], strides = [1, 1]} : vector<2x96xf32> to vector<2x32xf32>
    %846 = arith.addf %844, %845 : vector<2x32xf32>
    %847 = arith.negf %846 : vector<2x32xf32>
    %848 = math.exp %847 : vector<2x32xf32>
    %cst_149 = arith.constant 1.000000e+00 : f32
    %849 = vector.broadcast %cst_149 : f32 to vector<2x32xf32>
    %850 = arith.addf %849, %848 : vector<2x32xf32>
    %851 = arith.divf %849, %850 : vector<2x32xf32>
    %852 = vector.extract_strided_slice %843 {offsets = [0, 32], sizes = [2, 32], strides = [1, 1]} : vector<2x96xf32> to vector<2x32xf32>
    %853 = vector.extract_strided_slice %842 {offsets = [0, 32], sizes = [2, 32], strides = [1, 1]} : vector<2x96xf32> to vector<2x32xf32>
    %854 = arith.addf %852, %853 : vector<2x32xf32>
    %855 = arith.negf %854 : vector<2x32xf32>
    %856 = math.exp %855 : vector<2x32xf32>
    %cst_150 = arith.constant 1.000000e+00 : f32
    %857 = vector.broadcast %cst_150 : f32 to vector<2x32xf32>
    %858 = arith.addf %857, %856 : vector<2x32xf32>
    %859 = arith.divf %857, %858 : vector<2x32xf32>
    %860 = vector.extract_strided_slice %843 {offsets = [0, 64], sizes = [2, 32], strides = [1, 1]} : vector<2x96xf32> to vector<2x32xf32>
    %861 = vector.extract_strided_slice %842 {offsets = [0, 64], sizes = [2, 32], strides = [1, 1]} : vector<2x96xf32> to vector<2x32xf32>
    %862 = arith.mulf %851, %861 : vector<2x32xf32>
    %863 = arith.addf %860, %862 : vector<2x32xf32>
    %864 = math.tanh %863 : vector<2x32xf32>
    %cst_151 = arith.constant 1.000000e+00 : f32
    %865 = vector.broadcast %cst_151 : f32 to vector<2x32xf32>
    %866 = arith.subf %865, %859 : vector<2x32xf32>
    %867 = arith.mulf %866, %864 : vector<2x32xf32>
    %868 = arith.mulf %859, %839 : vector<2x32xf32>
    %869 = arith.addf %867, %868 : vector<2x32xf32>
    %cst_152 = arith.constant dense<0.000000e+00> : vector<2x96xf32>
    %870 = tpu.matmul %869, %531, %cst_152 {dimension_numbers = #tpu.dot_dimension_numbers<[1], [0], [0], [1], [0, 0, 1, 1], [], []>} : vector<2x32xf32>, vector<32x96xf32>, vector<2x96xf32> -> vector<2x96xf32>
    %871 = vector.broadcast %533 : vector<1x96xf32> to vector<2x96xf32>
    %872 = arith.addf %870, %871 : vector<2x96xf32>
    %873 = vector.extract_strided_slice %538 {offsets = [22, 0], sizes = [2, 96], strides = [1, 1]} : vector<32x96xf32> to vector<2x96xf32>
    %874 = vector.extract_strided_slice %873 {offsets = [0, 0], sizes = [2, 32], strides = [1, 1]} : vector<2x96xf32> to vector<2x32xf32>
    %875 = vector.extract_strided_slice %872 {offsets = [0, 0], sizes = [2, 32], strides = [1, 1]} : vector<2x96xf32> to vector<2x32xf32>
    %876 = arith.addf %874, %875 : vector<2x32xf32>
    %877 = arith.negf %876 : vector<2x32xf32>
    %878 = math.exp %877 : vector<2x32xf32>
    %cst_153 = arith.constant 1.000000e+00 : f32
    %879 = vector.broadcast %cst_153 : f32 to vector<2x32xf32>
    %880 = arith.addf %879, %878 : vector<2x32xf32>
    %881 = arith.divf %879, %880 : vector<2x32xf32>
    %882 = vector.extract_strided_slice %873 {offsets = [0, 32], sizes = [2, 32], strides = [1, 1]} : vector<2x96xf32> to vector<2x32xf32>
    %883 = vector.extract_strided_slice %872 {offsets = [0, 32], sizes = [2, 32], strides = [1, 1]} : vector<2x96xf32> to vector<2x32xf32>
    %884 = arith.addf %882, %883 : vector<2x32xf32>
    %885 = arith.negf %884 : vector<2x32xf32>
    %886 = math.exp %885 : vector<2x32xf32>
    %cst_154 = arith.constant 1.000000e+00 : f32
    %887 = vector.broadcast %cst_154 : f32 to vector<2x32xf32>
    %888 = arith.addf %887, %886 : vector<2x32xf32>
    %889 = arith.divf %887, %888 : vector<2x32xf32>
    %890 = vector.extract_strided_slice %873 {offsets = [0, 64], sizes = [2, 32], strides = [1, 1]} : vector<2x96xf32> to vector<2x32xf32>
    %891 = vector.extract_strided_slice %872 {offsets = [0, 64], sizes = [2, 32], strides = [1, 1]} : vector<2x96xf32> to vector<2x32xf32>
    %892 = arith.mulf %881, %891 : vector<2x32xf32>
    %893 = arith.addf %890, %892 : vector<2x32xf32>
    %894 = math.tanh %893 : vector<2x32xf32>
    %cst_155 = arith.constant 1.000000e+00 : f32
    %895 = vector.broadcast %cst_155 : f32 to vector<2x32xf32>
    %896 = arith.subf %895, %889 : vector<2x32xf32>
    %897 = arith.mulf %896, %894 : vector<2x32xf32>
    %898 = arith.mulf %889, %869 : vector<2x32xf32>
    %899 = arith.addf %897, %898 : vector<2x32xf32>
    %cst_156 = arith.constant dense<0.000000e+00> : vector<2x96xf32>
    %900 = tpu.matmul %899, %531, %cst_156 {dimension_numbers = #tpu.dot_dimension_numbers<[1], [0], [0], [1], [0, 0, 1, 1], [], []>} : vector<2x32xf32>, vector<32x96xf32>, vector<2x96xf32> -> vector<2x96xf32>
    %901 = vector.broadcast %533 : vector<1x96xf32> to vector<2x96xf32>
    %902 = arith.addf %900, %901 : vector<2x96xf32>
    %903 = vector.extract_strided_slice %538 {offsets = [24, 0], sizes = [2, 96], strides = [1, 1]} : vector<32x96xf32> to vector<2x96xf32>
    %904 = vector.extract_strided_slice %903 {offsets = [0, 0], sizes = [2, 32], strides = [1, 1]} : vector<2x96xf32> to vector<2x32xf32>
    %905 = vector.extract_strided_slice %902 {offsets = [0, 0], sizes = [2, 32], strides = [1, 1]} : vector<2x96xf32> to vector<2x32xf32>
    %906 = arith.addf %904, %905 : vector<2x32xf32>
    %907 = arith.negf %906 : vector<2x32xf32>
    %908 = math.exp %907 : vector<2x32xf32>
    %cst_157 = arith.constant 1.000000e+00 : f32
    %909 = vector.broadcast %cst_157 : f32 to vector<2x32xf32>
    %910 = arith.addf %909, %908 : vector<2x32xf32>
    %911 = arith.divf %909, %910 : vector<2x32xf32>
    %912 = vector.extract_strided_slice %903 {offsets = [0, 32], sizes = [2, 32], strides = [1, 1]} : vector<2x96xf32> to vector<2x32xf32>
    %913 = vector.extract_strided_slice %902 {offsets = [0, 32], sizes = [2, 32], strides = [1, 1]} : vector<2x96xf32> to vector<2x32xf32>
    %914 = arith.addf %912, %913 : vector<2x32xf32>
    %915 = arith.negf %914 : vector<2x32xf32>
    %916 = math.exp %915 : vector<2x32xf32>
    %cst_158 = arith.constant 1.000000e+00 : f32
    %917 = vector.broadcast %cst_158 : f32 to vector<2x32xf32>
    %918 = arith.addf %917, %916 : vector<2x32xf32>
    %919 = arith.divf %917, %918 : vector<2x32xf32>
    %920 = vector.extract_strided_slice %903 {offsets = [0, 64], sizes = [2, 32], strides = [1, 1]} : vector<2x96xf32> to vector<2x32xf32>
    %921 = vector.extract_strided_slice %902 {offsets = [0, 64], sizes = [2, 32], strides = [1, 1]} : vector<2x96xf32> to vector<2x32xf32>
    %922 = arith.mulf %911, %921 : vector<2x32xf32>
    %923 = arith.addf %920, %922 : vector<2x32xf32>
    %924 = math.tanh %923 : vector<2x32xf32>
    %cst_159 = arith.constant 1.000000e+00 : f32
    %925 = vector.broadcast %cst_159 : f32 to vector<2x32xf32>
    %926 = arith.subf %925, %919 : vector<2x32xf32>
    %927 = arith.mulf %926, %924 : vector<2x32xf32>
    %928 = arith.mulf %919, %899 : vector<2x32xf32>
    %929 = arith.addf %927, %928 : vector<2x32xf32>
    %cst_160 = arith.constant dense<0.000000e+00> : vector<2x96xf32>
    %930 = tpu.matmul %929, %531, %cst_160 {dimension_numbers = #tpu.dot_dimension_numbers<[1], [0], [0], [1], [0, 0, 1, 1], [], []>} : vector<2x32xf32>, vector<32x96xf32>, vector<2x96xf32> -> vector<2x96xf32>
    %931 = vector.broadcast %533 : vector<1x96xf32> to vector<2x96xf32>
    %932 = arith.addf %930, %931 : vector<2x96xf32>
    %933 = vector.extract_strided_slice %538 {offsets = [26, 0], sizes = [2, 96], strides = [1, 1]} : vector<32x96xf32> to vector<2x96xf32>
    %934 = vector.extract_strided_slice %933 {offsets = [0, 0], sizes = [2, 32], strides = [1, 1]} : vector<2x96xf32> to vector<2x32xf32>
    %935 = vector.extract_strided_slice %932 {offsets = [0, 0], sizes = [2, 32], strides = [1, 1]} : vector<2x96xf32> to vector<2x32xf32>
    %936 = arith.addf %934, %935 : vector<2x32xf32>
    %937 = arith.negf %936 : vector<2x32xf32>
    %938 = math.exp %937 : vector<2x32xf32>
    %cst_161 = arith.constant 1.000000e+00 : f32
    %939 = vector.broadcast %cst_161 : f32 to vector<2x32xf32>
    %940 = arith.addf %939, %938 : vector<2x32xf32>
    %941 = arith.divf %939, %940 : vector<2x32xf32>
    %942 = vector.extract_strided_slice %933 {offsets = [0, 32], sizes = [2, 32], strides = [1, 1]} : vector<2x96xf32> to vector<2x32xf32>
    %943 = vector.extract_strided_slice %932 {offsets = [0, 32], sizes = [2, 32], strides = [1, 1]} : vector<2x96xf32> to vector<2x32xf32>
    %944 = arith.addf %942, %943 : vector<2x32xf32>
    %945 = arith.negf %944 : vector<2x32xf32>
    %946 = math.exp %945 : vector<2x32xf32>
    %cst_162 = arith.constant 1.000000e+00 : f32
    %947 = vector.broadcast %cst_162 : f32 to vector<2x32xf32>
    %948 = arith.addf %947, %946 : vector<2x32xf32>
    %949 = arith.divf %947, %948 : vector<2x32xf32>
    %950 = vector.extract_strided_slice %933 {offsets = [0, 64], sizes = [2, 32], strides = [1, 1]} : vector<2x96xf32> to vector<2x32xf32>
    %951 = vector.extract_strided_slice %932 {offsets = [0, 64], sizes = [2, 32], strides = [1, 1]} : vector<2x96xf32> to vector<2x32xf32>
    %952 = arith.mulf %941, %951 : vector<2x32xf32>
    %953 = arith.addf %950, %952 : vector<2x32xf32>
    %954 = math.tanh %953 : vector<2x32xf32>
    %cst_163 = arith.constant 1.000000e+00 : f32
    %955 = vector.broadcast %cst_163 : f32 to vector<2x32xf32>
    %956 = arith.subf %955, %949 : vector<2x32xf32>
    %957 = arith.mulf %956, %954 : vector<2x32xf32>
    %958 = arith.mulf %949, %929 : vector<2x32xf32>
    %959 = arith.addf %957, %958 : vector<2x32xf32>
    %cst_164 = arith.constant dense<0.000000e+00> : vector<2x96xf32>
    %960 = tpu.matmul %959, %531, %cst_164 {dimension_numbers = #tpu.dot_dimension_numbers<[1], [0], [0], [1], [0, 0, 1, 1], [], []>} : vector<2x32xf32>, vector<32x96xf32>, vector<2x96xf32> -> vector<2x96xf32>
    %961 = vector.broadcast %533 : vector<1x96xf32> to vector<2x96xf32>
    %962 = arith.addf %960, %961 : vector<2x96xf32>
    %963 = vector.extract_strided_slice %538 {offsets = [28, 0], sizes = [2, 96], strides = [1, 1]} : vector<32x96xf32> to vector<2x96xf32>
    %964 = vector.extract_strided_slice %963 {offsets = [0, 0], sizes = [2, 32], strides = [1, 1]} : vector<2x96xf32> to vector<2x32xf32>
    %965 = vector.extract_strided_slice %962 {offsets = [0, 0], sizes = [2, 32], strides = [1, 1]} : vector<2x96xf32> to vector<2x32xf32>
    %966 = arith.addf %964, %965 : vector<2x32xf32>
    %967 = arith.negf %966 : vector<2x32xf32>
    %968 = math.exp %967 : vector<2x32xf32>
    %cst_165 = arith.constant 1.000000e+00 : f32
    %969 = vector.broadcast %cst_165 : f32 to vector<2x32xf32>
    %970 = arith.addf %969, %968 : vector<2x32xf32>
    %971 = arith.divf %969, %970 : vector<2x32xf32>
    %972 = vector.extract_strided_slice %963 {offsets = [0, 32], sizes = [2, 32], strides = [1, 1]} : vector<2x96xf32> to vector<2x32xf32>
    %973 = vector.extract_strided_slice %962 {offsets = [0, 32], sizes = [2, 32], strides = [1, 1]} : vector<2x96xf32> to vector<2x32xf32>
    %974 = arith.addf %972, %973 : vector<2x32xf32>
    %975 = arith.negf %974 : vector<2x32xf32>
    %976 = math.exp %975 : vector<2x32xf32>
    %cst_166 = arith.constant 1.000000e+00 : f32
    %977 = vector.broadcast %cst_166 : f32 to vector<2x32xf32>
    %978 = arith.addf %977, %976 : vector<2x32xf32>
    %979 = arith.divf %977, %978 : vector<2x32xf32>
    %980 = vector.extract_strided_slice %963 {offsets = [0, 64], sizes = [2, 32], strides = [1, 1]} : vector<2x96xf32> to vector<2x32xf32>
    %981 = vector.extract_strided_slice %962 {offsets = [0, 64], sizes = [2, 32], strides = [1, 1]} : vector<2x96xf32> to vector<2x32xf32>
    %982 = arith.mulf %971, %981 : vector<2x32xf32>
    %983 = arith.addf %980, %982 : vector<2x32xf32>
    %984 = math.tanh %983 : vector<2x32xf32>
    %cst_167 = arith.constant 1.000000e+00 : f32
    %985 = vector.broadcast %cst_167 : f32 to vector<2x32xf32>
    %986 = arith.subf %985, %979 : vector<2x32xf32>
    %987 = arith.mulf %986, %984 : vector<2x32xf32>
    %988 = arith.mulf %979, %959 : vector<2x32xf32>
    %989 = arith.addf %987, %988 : vector<2x32xf32>
    %cst_168 = arith.constant dense<0.000000e+00> : vector<2x96xf32>
    %990 = tpu.matmul %989, %531, %cst_168 {dimension_numbers = #tpu.dot_dimension_numbers<[1], [0], [0], [1], [0, 0, 1, 1], [], []>} : vector<2x32xf32>, vector<32x96xf32>, vector<2x96xf32> -> vector<2x96xf32>
    %991 = vector.broadcast %533 : vector<1x96xf32> to vector<2x96xf32>
    %992 = arith.addf %990, %991 : vector<2x96xf32>
    %993 = vector.extract_strided_slice %538 {offsets = [30, 0], sizes = [2, 96], strides = [1, 1]} : vector<32x96xf32> to vector<2x96xf32>
    %994 = vector.extract_strided_slice %993 {offsets = [0, 0], sizes = [2, 32], strides = [1, 1]} : vector<2x96xf32> to vector<2x32xf32>
    %995 = vector.extract_strided_slice %992 {offsets = [0, 0], sizes = [2, 32], strides = [1, 1]} : vector<2x96xf32> to vector<2x32xf32>
    %996 = arith.addf %994, %995 : vector<2x32xf32>
    %997 = arith.negf %996 : vector<2x32xf32>
    %998 = math.exp %997 : vector<2x32xf32>
    %cst_169 = arith.constant 1.000000e+00 : f32
    %999 = vector.broadcast %cst_169 : f32 to vector<2x32xf32>
    %1000 = arith.addf %999, %998 : vector<2x32xf32>
    %1001 = arith.divf %999, %1000 : vector<2x32xf32>
    %1002 = vector.extract_strided_slice %993 {offsets = [0, 32], sizes = [2, 32], strides = [1, 1]} : vector<2x96xf32> to vector<2x32xf32>
    %1003 = vector.extract_strided_slice %992 {offsets = [0, 32], sizes = [2, 32], strides = [1, 1]} : vector<2x96xf32> to vector<2x32xf32>
    %1004 = arith.addf %1002, %1003 : vector<2x32xf32>
    %1005 = arith.negf %1004 : vector<2x32xf32>
    %1006 = math.exp %1005 : vector<2x32xf32>
    %cst_170 = arith.constant 1.000000e+00 : f32
    %1007 = vector.broadcast %cst_170 : f32 to vector<2x32xf32>
    %1008 = arith.addf %1007, %1006 : vector<2x32xf32>
    %1009 = arith.divf %1007, %1008 : vector<2x32xf32>
    %1010 = vector.extract_strided_slice %993 {offsets = [0, 64], sizes = [2, 32], strides = [1, 1]} : vector<2x96xf32> to vector<2x32xf32>
    %1011 = vector.extract_strided_slice %992 {offsets = [0, 64], sizes = [2, 32], strides = [1, 1]} : vector<2x96xf32> to vector<2x32xf32>
    %1012 = arith.mulf %1001, %1011 : vector<2x32xf32>
    %1013 = arith.addf %1010, %1012 : vector<2x32xf32>
    %1014 = math.tanh %1013 : vector<2x32xf32>
    %cst_171 = arith.constant 1.000000e+00 : f32
    %1015 = vector.broadcast %cst_171 : f32 to vector<2x32xf32>
    %1016 = arith.subf %1015, %1009 : vector<2x32xf32>
    %1017 = arith.mulf %1016, %1014 : vector<2x32xf32>
    %1018 = arith.mulf %1009, %989 : vector<2x32xf32>
    %1019 = arith.addf %1017, %1018 : vector<2x32xf32>
    %1020 = tpu.concatenate %569, %599, %629, %659, %689, %719, %749, %779, %809, %839, %869, %899, %929, %959, %989, %1019 in 0 : vector<2x32xf32>, vector<2x32xf32>, vector<2x32xf32>, vector<2x32xf32>, vector<2x32xf32>, vector<2x32xf32>, vector<2x32xf32>, vector<2x32xf32>, vector<2x32xf32>, vector<2x32xf32>, vector<2x32xf32>, vector<2x32xf32>, vector<2x32xf32>, vector<2x32xf32>, vector<2x32xf32>, vector<2x32xf32> -> vector<32x32xf32>
    %cst_172 = arith.constant dense<0.000000e+00> : vector<32xf32>
    %1021 = vector.multi_reduction <add>, %1020, %cst_172 [1] : vector<32x32xf32> to vector<32xf32>
    %1022 = vector.shape_cast %1021 : vector<32xf32> to vector<32x1xf32>
    %cst_173 = arith.constant 3.200000e+01 : f32
    %1023 = vector.broadcast %cst_173 : f32 to vector<32x1xf32>
    %1024 = arith.divf %1022, %1023 : vector<32x1xf32>
    %1025 = vector.broadcast %1024 : vector<32x1xf32> to vector<32x32xf32>
    %1026 = arith.subf %1020, %1025 : vector<32x32xf32>
    %1027 = arith.mulf %1026, %1026 : vector<32x32xf32>
    %cst_174 = arith.constant dense<0.000000e+00> : vector<32xf32>
    %1028 = vector.multi_reduction <add>, %1027, %cst_174 [1] : vector<32x32xf32> to vector<32xf32>
    %1029 = vector.shape_cast %1028 : vector<32xf32> to vector<32x1xf32>
    %cst_175 = arith.constant 3.200000e+01 : f32
    %1030 = vector.broadcast %cst_175 : f32 to vector<32x1xf32>
    %1031 = arith.divf %1029, %1030 : vector<32x1xf32>
    %1032 = vector.broadcast %1024 : vector<32x1xf32> to vector<32x32xf32>
    %1033 = arith.subf %1020, %1032 : vector<32x32xf32>
    %cst_176 = arith.constant 9.99999974E-6 : f32
    %1034 = vector.broadcast %cst_176 : f32 to vector<32x1xf32>
    %1035 = arith.addf %1031, %1034 : vector<32x1xf32>
    %1036 = math.rsqrt %1035 : vector<32x1xf32>
    %1037 = vector.broadcast %1036 : vector<32x1xf32> to vector<32x32xf32>
    %1038 = arith.mulf %1033, %1037 : vector<32x32xf32>
    %1039 = vector.broadcast %534 : vector<1x32xf32> to vector<32x32xf32>
    %1040 = arith.mulf %1038, %1039 : vector<32x32xf32>
    %1041 = vector.broadcast %535 : vector<1x32xf32> to vector<32x32xf32>
    %1042 = arith.addf %1040, %1041 : vector<32x32xf32>
    %c0_177 = arith.constant 0 : index
    %c0_178 = arith.constant 0 : index
    %1043 = vector.load %arg17[%c0_177, %c0_178] : memref<32x32xf32, #tpu.memory_space<vmem>>, vector<32x32xf32>
    %cst_179 = arith.constant dense<0.000000e+00> : vector<32x32xf32>
    %1044 = tpu.matmul %1042, %1043, %cst_179 {dimension_numbers = #tpu.dot_dimension_numbers<[1], [0], [0], [1], [0, 0, 1, 1], [], []>} : vector<32x32xf32>, vector<32x32xf32>, vector<32x32xf32> -> vector<32x32xf32>
    %c0_180 = arith.constant 0 : index
    %c0_181 = arith.constant 0 : index
    %1045 = vector.load %arg18[%c0_180, %c0_181] : memref<1x32xf32, #tpu.memory_space<vmem>>, vector<1x32xf32>
    %1046 = vector.broadcast %1045 : vector<1x32xf32> to vector<32x32xf32>
    %1047 = arith.addf %1044, %1046 : vector<32x32xf32>
    %cst_182 = arith.constant 0.000000e+00 : f32
    %1048 = vector.broadcast %cst_182 : f32 to vector<32x32xf32>
    %1049 = arith.maximumf %1047, %1048 : vector<32x32xf32>
    %1050 = vector.extract_strided_slice %1049 {offsets = [0, 0], sizes = [32, 16], strides = [1, 1]} : vector<32x32xf32> to vector<32x16xf32>
    %1051 = vector.extract_strided_slice %1049 {offsets = [0, 16], sizes = [32, 16], strides = [1, 1]} : vector<32x32xf32> to vector<32x16xf32>
    %1052 = arith.subf %1050, %1051 : vector<32x16xf32>
    %1053 = arith.negf %1052 : vector<32x16xf32>
    %1054 = math.exp %1053 : vector<32x16xf32>
    %cst_183 = arith.constant 1.000000e+00 : f32
    %1055 = vector.broadcast %cst_183 : f32 to vector<32x16xf32>
    %1056 = arith.addf %1055, %1054 : vector<32x16xf32>
    %1057 = arith.divf %1055, %1056 : vector<32x16xf32>
    %1058 = arith.mulf %1057, %5 : vector<32x16xf32>
    %1059 = arith.subf %5, %1058 : vector<32x16xf32>
    %1060 = vector.extract_strided_slice %1058 {offsets = [0, 0], sizes = [2, 16], strides = [1, 1]} : vector<32x16xf32> to vector<2x16xf32>
    %1061 = vector.extract_strided_slice %1058 {offsets = [2, 0], sizes = [2, 16], strides = [1, 1]} : vector<32x16xf32> to vector<2x16xf32>
    %1062 = vector.extract_strided_slice %1058 {offsets = [4, 0], sizes = [2, 16], strides = [1, 1]} : vector<32x16xf32> to vector<2x16xf32>
    %1063 = vector.extract_strided_slice %1058 {offsets = [6, 0], sizes = [2, 16], strides = [1, 1]} : vector<32x16xf32> to vector<2x16xf32>
    %1064 = vector.extract_strided_slice %1058 {offsets = [8, 0], sizes = [2, 16], strides = [1, 1]} : vector<32x16xf32> to vector<2x16xf32>
    %1065 = vector.extract_strided_slice %1058 {offsets = [10, 0], sizes = [2, 16], strides = [1, 1]} : vector<32x16xf32> to vector<2x16xf32>
    %1066 = vector.extract_strided_slice %1058 {offsets = [12, 0], sizes = [2, 16], strides = [1, 1]} : vector<32x16xf32> to vector<2x16xf32>
    %1067 = vector.extract_strided_slice %1058 {offsets = [14, 0], sizes = [2, 16], strides = [1, 1]} : vector<32x16xf32> to vector<2x16xf32>
    %1068 = vector.extract_strided_slice %1058 {offsets = [16, 0], sizes = [2, 16], strides = [1, 1]} : vector<32x16xf32> to vector<2x16xf32>
    %1069 = vector.extract_strided_slice %1058 {offsets = [18, 0], sizes = [2, 16], strides = [1, 1]} : vector<32x16xf32> to vector<2x16xf32>
    %1070 = vector.extract_strided_slice %1058 {offsets = [20, 0], sizes = [2, 16], strides = [1, 1]} : vector<32x16xf32> to vector<2x16xf32>
    %1071 = vector.extract_strided_slice %1058 {offsets = [22, 0], sizes = [2, 16], strides = [1, 1]} : vector<32x16xf32> to vector<2x16xf32>
    %1072 = vector.extract_strided_slice %1058 {offsets = [24, 0], sizes = [2, 16], strides = [1, 1]} : vector<32x16xf32> to vector<2x16xf32>
    %1073 = vector.extract_strided_slice %1058 {offsets = [26, 0], sizes = [2, 16], strides = [1, 1]} : vector<32x16xf32> to vector<2x16xf32>
    %1074 = vector.extract_strided_slice %1058 {offsets = [28, 0], sizes = [2, 16], strides = [1, 1]} : vector<32x16xf32> to vector<2x16xf32>
    %1075 = vector.extract_strided_slice %1058 {offsets = [30, 0], sizes = [2, 16], strides = [1, 1]} : vector<32x16xf32> to vector<2x16xf32>
    %1076 = tpu.concatenate %1060, %1061, %1062, %1063, %1064, %1065, %1066, %1067, %1068, %1069, %1070, %1071, %1072, %1073, %1074, %1075 in 1 : vector<2x16xf32>, vector<2x16xf32>, vector<2x16xf32>, vector<2x16xf32>, vector<2x16xf32>, vector<2x16xf32>, vector<2x16xf32>, vector<2x16xf32>, vector<2x16xf32>, vector<2x16xf32>, vector<2x16xf32>, vector<2x16xf32>, vector<2x16xf32>, vector<2x16xf32>, vector<2x16xf32>, vector<2x16xf32> -> vector<2x256xf32>
    %1077 = vector.extract_strided_slice %1059 {offsets = [0, 0], sizes = [2, 16], strides = [1, 1]} : vector<32x16xf32> to vector<2x16xf32>
    %1078 = vector.extract_strided_slice %1059 {offsets = [2, 0], sizes = [2, 16], strides = [1, 1]} : vector<32x16xf32> to vector<2x16xf32>
    %1079 = vector.extract_strided_slice %1059 {offsets = [4, 0], sizes = [2, 16], strides = [1, 1]} : vector<32x16xf32> to vector<2x16xf32>
    %1080 = vector.extract_strided_slice %1059 {offsets = [6, 0], sizes = [2, 16], strides = [1, 1]} : vector<32x16xf32> to vector<2x16xf32>
    %1081 = vector.extract_strided_slice %1059 {offsets = [8, 0], sizes = [2, 16], strides = [1, 1]} : vector<32x16xf32> to vector<2x16xf32>
    %1082 = vector.extract_strided_slice %1059 {offsets = [10, 0], sizes = [2, 16], strides = [1, 1]} : vector<32x16xf32> to vector<2x16xf32>
    %1083 = vector.extract_strided_slice %1059 {offsets = [12, 0], sizes = [2, 16], strides = [1, 1]} : vector<32x16xf32> to vector<2x16xf32>
    %1084 = vector.extract_strided_slice %1059 {offsets = [14, 0], sizes = [2, 16], strides = [1, 1]} : vector<32x16xf32> to vector<2x16xf32>
    %1085 = vector.extract_strided_slice %1059 {offsets = [16, 0], sizes = [2, 16], strides = [1, 1]} : vector<32x16xf32> to vector<2x16xf32>
    %1086 = vector.extract_strided_slice %1059 {offsets = [18, 0], sizes = [2, 16], strides = [1, 1]} : vector<32x16xf32> to vector<2x16xf32>
    %1087 = vector.extract_strided_slice %1059 {offsets = [20, 0], sizes = [2, 16], strides = [1, 1]} : vector<32x16xf32> to vector<2x16xf32>
    %1088 = vector.extract_strided_slice %1059 {offsets = [22, 0], sizes = [2, 16], strides = [1, 1]} : vector<32x16xf32> to vector<2x16xf32>
    %1089 = vector.extract_strided_slice %1059 {offsets = [24, 0], sizes = [2, 16], strides = [1, 1]} : vector<32x16xf32> to vector<2x16xf32>
    %1090 = vector.extract_strided_slice %1059 {offsets = [26, 0], sizes = [2, 16], strides = [1, 1]} : vector<32x16xf32> to vector<2x16xf32>
    %1091 = vector.extract_strided_slice %1059 {offsets = [28, 0], sizes = [2, 16], strides = [1, 1]} : vector<32x16xf32> to vector<2x16xf32>
    %1092 = vector.extract_strided_slice %1059 {offsets = [30, 0], sizes = [2, 16], strides = [1, 1]} : vector<32x16xf32> to vector<2x16xf32>
    %1093 = tpu.concatenate %1077, %1078, %1079, %1080, %1081, %1082, %1083, %1084, %1085, %1086, %1087, %1088, %1089, %1090, %1091, %1092 in 1 : vector<2x16xf32>, vector<2x16xf32>, vector<2x16xf32>, vector<2x16xf32>, vector<2x16xf32>, vector<2x16xf32>, vector<2x16xf32>, vector<2x16xf32>, vector<2x16xf32>, vector<2x16xf32>, vector<2x16xf32>, vector<2x16xf32>, vector<2x16xf32>, vector<2x16xf32>, vector<2x16xf32>, vector<2x16xf32> -> vector<2x256xf32>
    %1094 = tpu.concatenate %1076, %1093 in 0 : vector<2x256xf32>, vector<2x256xf32> -> vector<4x256xf32>
    %c0_184 = arith.constant 0 : index
    %c0_185 = arith.constant 0 : index
    %1095 = vector.load %arg19[%c0_184, %c0_185] : memref<256x128xf32, #tpu.memory_space<vmem>>, vector<256x128xf32>
    %cst_186 = arith.constant dense<0.000000e+00> : vector<4x128xf32>
    %1096 = tpu.matmul %1094, %1095, %cst_186 {dimension_numbers = #tpu.dot_dimension_numbers<[1], [0], [0], [1], [0, 0, 1, 1], [], []>} : vector<4x256xf32>, vector<256x128xf32>, vector<4x128xf32> -> vector<4x128xf32>
    %c0_187 = arith.constant 0 : index
    %c0_188 = arith.constant 0 : index
    %1097 = vector.load %arg20[%c0_187, %c0_188] : memref<1x128xf32, #tpu.memory_space<vmem>>, vector<1x128xf32>
    %1098 = vector.broadcast %1097 : vector<1x128xf32> to vector<4x128xf32>
    %1099 = arith.addf %1096, %1098 : vector<4x128xf32>
    %c0_189 = arith.constant 0 : index
    %c0_190 = arith.constant 0 : index
    %1100 = vector.load %arg21[%c0_189, %c0_190] : memref<4x128xf32, #tpu.memory_space<vmem>>, vector<4x128xf32>
    tpu.vector_store %arg21[%c0_189, %c0_190], %1099 {strides = array<i32>} : memref<4x128xf32, #tpu.memory_space<vmem>>, vector<4x128xf32>,
    return
  }
}

</mosaic_0001>

<bundles_post_ra>
// kernel: svsrnn_forward.1
= control target key start
LH: loop header
LB: loop body
LE: loop exit
PB: predicated region body
PF: predicated region fallthrough
CT: control target
= control target key end

     0   :  { %s5748_s25 = smov 16   ;;  %vm217_vm0 = vcmask 1045504   ;;  %vm204_vm1 = vcmask 1041408   ;;  %vm252_vm2 = vcmask 130048   ;;  %vm257_vm3 = vcmask 261120   ;;  %s7192_s1 = inlined_call_operand.vmem [shape: f32[256,16], index: 1, kind: input, shape index: {}]   ;;  %s7193_s0 = inlined_call_operand.vmem [shape: f32[32,256], index: 0, kind: input, shape index: {}]   ;;  %s7194_s3 = inlined_call_operand.vmem [shape: f32[48,32], index: 3, kind: input, shape index: {}]   ;;  %s7195_s2 = inlined_call_operand.vmem [shape: f32[1,16], index: 2, kind: input, shape index: {}]   ;;  %s7196_s5 = inlined_call_operand.vmem [shape: f32[32,96], index: 5, kind: input, shape index: {}]   ;;  %s7197_s6 = inlined_call_operand.vmem [shape: f32[32,96], index: 6, kind: input, shape index: {}]   ;;  %s7198_s4 = inlined_call_operand.vmem [shape: f32[1,32], index: 4, kind: input, shape index: {}]   ;;  %s7199_s7 = inlined_call_operand.vmem [shape: f32[1,96], index: 7, kind: input, shape index: {}]   ;;  %s7200_s8 = inlined_call_operand.vmem [shape: f32[1,96], index: 8, kind: input, shape index: {}]   ;;  %s7201_s9 = inlined_call_operand.vmem [shape: f32[1,32], index: 9, kind: input, shape index: {}]   ;;  %s7202_s10 = inlined_call_operand.vmem [shape: f32[1,32], index: 10, kind: input, shape index: {}]   ;;  %s7203_s11 = inlined_call_operand.vmem [shape: f32[32,96], index: 11, kind: input, shape index: {}]   ;;  %s7204_s12 = inlined_call_operand.vmem [shape: f32[32,96], index: 12, kind: input, shape index: {}]   ;;  %s7205_s14 = inlined_call_operand.vmem [shape: f32[1,96], index: 14, kind: input, shape index: {}]   ;;  %s7206_s13 = inlined_call_operand.vmem [shape: f32[1,96], index: 13, kind: input, shape index: {}]   ;;  %s7207_s15 = inlined_call_operand.vmem [shape: f32[1,32], index: 15, kind: input, shape index: {}]   ;;  %s7208_s16 = inlined_call_operand.vmem [shape: f32[1,32], index: 16, kind: input, shape index: {}]   ;;  %s7209_s17 = inlined_call_operand.vmem [shape: f32[32,32], index: 17, kind: input, shape index: {}]   ;;  %s7210_s18 = inlined_call_operand.vmem [shape: f32[1,32], index: 18, kind: input, shape index: {}]   ;;  %s7211_s19 = inlined_call_operand.vmem [shape: f32[256,128], index: 19, kind: input, shape index: {}]   ;;  %s7212_s20 = inlined_call_operand.vmem [shape: f32[1,128], index: 20, kind: input, shape index: {}]   ;;  %s7213_s21 = inlined_call_operand.vmem [shape: f32[4,128], index: 21, kind: output, shape index: {}]  }
   0x1   :  { %7219 = sst [smem:[#allocation2_spill]] %s7192_s1  ;;  %vm275_vm4 = vcmask 392192   ;;  %vm5751_vm5 = vmmov 0   ;;  %vm2171_vm6 = vcmask 1043456   ;;  %vm4447_vm7 = vcmask 523264  }
   0x2   :  { %7220 = sst [smem:[#allocation3_spill]] %s7193_s0  ;;  %vm4449_vm8 = vcmask 654336   ;;  %vm4451_vm9 = vcmask 785408   ;;  %vm4453_vm10 = vcmask 916480  }
   0x3   :  { %7221 = sst [smem:[#allocation4_spill]] %s7194_s3 }
   0x4   :  { %7222 = sst [smem:[#allocation5_spill]] %s7195_s2  ;;  %s5754_s2 = smov 112  }
   0x5   :  { %7223 = sst [smem:[#allocation6_spill]] %s7196_s5 }
   0x6   :  { %7224 = sst [smem:[#allocation7_spill]] %s7197_s6 }
   0x7   :  { %s7225_s26 = sld [smem:[#allocation2_spill]] }
   0x8   :  { %s7226_s3 = sld [smem:[#allocation3_spill]] }
   0x9   :  { %s7227_s27 = sld [smem:[#allocation4_spill]] }
   0xa   :  { %s7228_s23 = sld [smem:[#allocation5_spill]] }
   0xb   :  { %s7229_s29 = sld [smem:[#allocation6_spill]] }
   0xc   :  { %s7230_s0 = sld [smem:[#allocation7_spill]] }
   0xd   :  { %v107_v0 = vld [vmem:[%s7225_s26 + $0xf8] sm:$0xff]  ;;  %v106_v2 = vld [vmem:[%s7225_s26 + $0xf0] sm:$0xff]  ;;  %v105_v4 = vld [vmem:[%s7225_s26 + $0xe8] sm:$0xff] }
   0xe   :  { %v91_v1 = vld [vmem:[%s7225_s26 + $0x78] sm:$0xff]  ;;  %4750 = vmatprep.subr.mxu0 %v107_v0  ;;  %v90_v3 = vld [vmem:[%s7225_s26 + $0x70] sm:$0xff]  ;;  %v89_v5 = vld [vmem:[%s7225_s26 + $0x68] sm:$0xff] }
   0xf   :  { %4751 = vmatpush3.msra.mxu0 %v91_v1  ;;  %v104_v6 = vld [vmem:[%s7225_s26 + $0xe0] sm:$0xff]  ;;  %v103_v8 = vld [vmem:[%s7225_s26 + $0xd8] sm:$0xff]  ;;  %v102_v10 = vld [vmem:[%s7225_s26 + $0xd0] sm:$0xff] }
  0x10   :  { %4752 = vmatprep.subr.mxu0 %v106_v2  ;;  %v88_v7 = vld [vmem:[%s7225_s26 + $0x60] sm:$0xff]  ;;  %v87_v9 = vld [vmem:[%s7225_s26 + $0x58] sm:$0xff]  ;;  %v86_v11 = vld [vmem:[%s7225_s26 + $0x50] sm:$0xff] }
  0x11   :  { %4753 = vmatpush3.msra.mxu0 %v90_v3  ;;  %v101_v12 = vld [vmem:[%s7225_s26 + $0xc8] sm:$0xff]  ;;  %v100_v15 = vld [vmem:[%s7225_s26 + $0xc0] sm:$0xff]  ;;  %v99_v17 = vld [vmem:[%s7225_s26 + $0xb8] sm:$0xff] }
  0x12   :  { %4754 = vmatprep.subr.mxu0 %v105_v4  ;;  %v69_v13 = vld [vmem:[%s7226_s3 + $0x8] sm:$0xff]  ;;  %v84_v16 = vld [vmem:[%s7225_s26 + $0x40] sm:$0xff]  ;;  %v83_v18 = vld [vmem:[%s7225_s26 + $0x38] sm:$0xff] }
  0x13   :  { %4755 = vmatpush3.msra.mxu0 %v89_v5  ;;  %v85_v14 = vld [vmem:[%s7225_s26 + $0x48] sm:$0xff]  ;;  %179 = vmatprep.mubr.f32.mxu0 %v69_v13  ;;  %v98_v19 = vld [vmem:[%s7225_s26 + $0xb0] sm:$0xff]  ;;  %v96_v23 = vld [vmem:[%s7225_s26 + $0xa0] sm:$0xff] }
  0x14   :  { %4756 = vmatprep.subr.mxu0 %v104_v6  ;;  %v82_v20 = vld [vmem:[%s7225_s26 + $0x30] sm:$0xff]  ;;  %v97_v21 = vld [vmem:[%s7225_s26 + $0xa8] sm:$0xff]  ;;  %v80_v24 = vld [vmem:[%s7225_s26 + $0x20] sm:$0xff] }
  0x15   :  { %4757 = vmatpush3.msra.mxu0 %v88_v7  ;;  %v81_v22 = vld [vmem:[%s7225_s26 + $0x28] sm:$0xff]  ;;  %v95_v25 = vld [vmem:[%s7225_s26 + $0x98] sm:$0xff]  ;;  %v94_v27 = vld [vmem:[%s7225_s26 + $0x90] sm:$0xff] }
  0x16   :  { %4758 = vmatprep.subr.mxu0 %v103_v8  ;;  %v79_v26 = vld [vmem:[%s7225_s26 + $0x18] sm:$0xff]  ;;  %v78_v28 = vld [vmem:[%s7225_s26 + $0x10] sm:$0xff]  ;;  %v93_v29 = vld [vmem:[%s7225_s26 + $0x88] sm:$0xff] }
  0x17   :  { %4759 = vmatpush3.msra.mxu0 %v87_v9  ;;  %v77_v30 = vld [vmem:[%s7225_s26 + $0x8] sm:$0xff]  ;;  %v92_v31 = vld [vmem:[%s7225_s26 + $0x80] sm:$0xff]  ;;  %v71_v34 = vld [vmem:[%s7226_s3 + $0x18] sm:$0xff] }
  0x18   :  { %4760 = vmatprep.subr.mxu0 %v102_v10  ;;  %v76_v32 = vld [vmem:[%s7225_s26] sm:$0xff]  ;;  %v70_v35 = vld [vmem:[%s7226_s3 + $0x10] sm:$0xff]  ;;  %v73_v36 = vld [vmem:[%s7226_s3 + $0x28] sm:$0xff]  ;;  %s5756_s26 = smov 48  }
  0x19   :  { %4761 = vmatpush3.msra.mxu0 %v86_v11  ;;  %v68_v33 = vld [vmem:[%s7226_s3] sm:$0xff]  ;;  %v75_v38 = vld [vmem:[%s7226_s3 + $0x38] sm:$0xff]  ;;  %v74_v39 = vld [vmem:[%s7226_s3 + $0x30] sm:$0xff] }
  0x1a   :  { %4762 = vmatprep.subr.mxu0 %v101_v12  ;;  %v72_v37 = vld [vmem:[%s7226_s3 + $0x20] sm:$0xff]  ;;  %v267_v40 = vld [vmem:[%s7227_s27 + $0x28] sm:$0xff]  ;;  %v265_v42 = vld [vmem:[%s7227_s27 + $0x18] sm:$0xff] }
  0x1b   :  { %4763 = vmatpush3.msra.mxu0 %v85_v14  ;;  %v266_v41 = vld [vmem:[%s7227_s27 + $0x20] sm:$0xff]  ;;  %v264_v43 = vld [vmem:[%s7227_s27 + $0x10] sm:$0xff]  ;;  %v263_v45 = vld [vmem:[%s7227_s27 + $0x8] sm:$0xff] }
  0x1c   :  { %4764 = vmatprep.subr.mxu0 %v100_v15  ;;  %v4656_v46 = vld [vmem:[%s7228_s23] ss:$0 sm:$0xff]  ;;  %v376_v2 = vld [vmem:[%s7229_s29 + $0x18] sm:$0xff]  ;;  %s5753_s23 = smov 96  }
  0x1d   :  { %4765 = vmatpush3.msra.mxu0 %v84_v16  ;;  %v262_v48 = vld [vmem:[%s7227_s27] sm:$0xff]  ;;  %s5749_s27 = smov 32   ;;  %5041 = vmatprep.subr.mxu1 %v376_v2 }
  0x1e   :  { %4766 = vmatprep.subr.mxu0 %v99_v17  ;;  %5042 = vmatpush3.msra.mxu1 %v376_v2 }
  0x1f   :  { %4767 = vmatpush3.msra.mxu0 %v83_v18 }
  0x20   :  { %4768 = vmatprep.subr.mxu0 %v98_v19 }
  0x21   :  { %4769 = vmatpush3.msra.mxu0 %v82_v20 }
  0x22   :  { %4770 = vmatprep.subr.mxu0 %v97_v21 }
  0x23   :  { %4771 = vmatpush3.msra.mxu0 %v81_v22 }
  0x24   :  { %4772 = vmatprep.subr.mxu0 %v96_v23 }
  0x25   :  { %4773 = vmatpush3.msra.mxu0 %v80_v24 }
  0x26   :  { %4774 = vmatprep.subr.mxu0 %v95_v25 }
  0x27   :  { %4775 = vmatpush3.msra.mxu0 %v79_v26 }
  0x28   :  { %4776 = vmatprep.subr.mxu0 %v94_v27 }
  0x29   :  { %4777 = vmatpush3.msra.mxu0 %v78_v28 }
  0x2a   :  { %4778 = vmatprep.subr.mxu0 %v93_v29 }
  0x2b   :  { %4779 = vmatpush3.msra.mxu0 %v77_v30 }
  0x2c   :  { %4780 = vmatprep.subr.mxu0 %v92_v31 }
  0x2d   :  { %4781 = vmatpush3.msra.mxu0 %v76_v32  ;;  %v375_v32 = vld [vmem:[%s7229_s29 + $0x10] sm:$0xff] }
  0x2e   :  { %180 = vmatmul.mubr.f32.vlgmr.msra.gmra.mxu0 %v68_v33  ;;  %5023 = vmatprep.subr.mxu0 %v267_v40  ;;  %v374_v33 = vld [vmem:[%s7229_s29 + $0x8] sm:$0xff] }
  0x2f   :  { %184 = vmatprep.mubr.f32.mxu0 %v71_v34  ;;  %5024 = vmatpush3.msra.mxu0 %v267_v40  ;;  %v373_v34 = vld [vmem:[%s7229_s29] sm:$0xff] }
  0x30   :  { %5025 = vmatprep.subr.mxu0 %v266_v41  ;;  %5043 = vmatprep.subr.mxu1 %v375_v32 }
  0x31   :  { %5026 = vmatpush3.msra.mxu0 %v266_v41  ;;  %5044 = vmatpush3.msra.mxu1 %v375_v32  ;;  %v4657_v41 = vld [vmem:[%s7198_s4] ss:$0 sm:$0xff] }
  0x32   :  { %185 = vmatmul.mubr.f32.gmra.mxu0 %v70_v35  ;;  %5027 = vmatprep.subr.mxu0 %v265_v42  ;;  %v5750_v35 = vmov 0.0  }
  0x33   :  { %189 = vmatprep.mubr.f32.mxu0 %v73_v36  ;;  %5028 = vmatpush3.msra.mxu0 %v265_v42  ;;  %v6072_v36 = vld [vmem:[%s7230_s0 + $0x18] sm:$0xff] }
  0x34   :  { %5029 = vmatprep.subr.mxu0 %v264_v43  ;;  %5045 = vmatprep.subr.mxu1 %v374_v33 }
  0x35   :  { %5030 = vmatpush3.msra.mxu0 %v264_v43  ;;  %5046 = vmatpush3.msra.mxu1 %v374_v33 }
  0x36   :  { %190 = vmatmul.mubr.f32.gmra.mxu0 %v72_v37  ;;  %5031 = vmatprep.subr.mxu0 %v263_v45  ;;  %v6079_v37 = vld [vmem:[%s7230_s0 + $0x10] sm:$0xff] }
  0x37   :  { %194 = vmatprep.mubr.f32.mxu0 %v75_v38  ;;  %5032 = vmatpush3.msra.mxu0 %v263_v45  ;;  %v6086_v38 = vld [vmem:[%s7230_s0 + $0x8] sm:$0xff] }
  0x38   :  { %5033 = vmatprep.subr.mxu0 %v262_v48  ;;  %5047 = vmatprep.subr.mxu1 %v373_v34 }
  0x39   :  { %5034 = vmatpush3.msra.mxu0 %v262_v48  ;;  %5048 = vmatpush3.msra.mxu1 %v373_v34 }
  0x3a   :  { %195 = vmatmul.mubr.f32.gmra.mxu0 %v74_v39  ;;  %5055 = vmatprep.subr.mxu1 %v5750_v35  ;;  %v6095_v39 = vld [vmem:[%s7230_s0] sm:$0xff] }
  0x3b   :  { %5088 = vmatprep.subr.mxu0 %v5750_v35 }
  0xee   :  { %v4782_v44 = vpop.f32.mrf.mxu0 }
  0xf0   :  { %v4783_v47 = vpop.f32.mrf.mxu0 }
  0xf1   :  { %v4784_v49 = vadd.f32 %v4783_v47, %v4782_v44 }
  0xf2   :  { %v4785_v50 = vpop.f32.mrf.mxu0 }
  0xf3   :  { %v6008_v51 = vadd.f32 %v4784_v49, %v4656_v46  ;;  %v4662_v49 = vld [vmem:[%s7199_s7] ss:$0 sm:$0xff]  ;;  %s5752_s7 = smov 64  }
  0xf4   :  { %v4786_v52 = vpop.f32.mrf.mxu0 }
  0xf5   :  { %v4787_v53 = vadd.f32 %v4786_v52, %v4785_v50  ;;  %227 = vrot.lane.b32.xlu0 %v6008_v51, %s5748_s25  ;;  %v218_v58 = vrot.slane %v6008_v51, 2  ;;  %v205_v9 = vrot.slane %v6008_v51, 6 }
  0xf6   :  { %v4788_v54 = vpop.f32.mrf.mxu0 }
  0xf7   :  { %v6012_v55 = vadd.f32 %v4787_v53, %v4656_v46  ;;  %v216_v11 = vsel %vm204_vm1, 0.0, %v205_v9 }
  0xf8   :  { %v4789_v56 = vpop.f32.mrf.mxu0 }
  0xf9   :  { %v4790_v57 = vadd.f32 %v4789_v56, %v4788_v54  ;;  %229 = vrot.lane.b32.xlu0 %v6012_v55, %s5748_s25  ;;  %v219_v59 = vrot.slane %v6012_v55, 2  ;;  %v206_v12 = vrot.slane %v6012_v55, 6 }
  0xfa   :  { %v4791_v60 = vpop.f32.mrf.mxu0 }
  0xfb   :  { %v6018_v61 = vadd.f32 %v4790_v57, %v4656_v46  ;;  %v220_v62 = vsel %vm217_vm0, %v218_v58, %v219_v59  ;;  %v207_v16 = vsel %vm204_vm1, %v205_v9, %v206_v12  ;;  %v6138_v58 = vld [vmem:[%s7200_s8] ss:$0 sm:$0xff] }
  0xfc   :  { %v4792_v63 = vpop.f32.mrf.mxu0  ;;  %240 = vrot.lane.b32.xlu1 %v220_v62, %s5749_s27 }
  0xfd   :  { %v4793_v0 = vadd.f32 %v4792_v63, %v4791_v60  ;;  %231 = vrot.lane.b32.xlu0 %v6018_v61, %s5748_s25  ;;  %v221_v1 = vrot.slane %v6018_v61, 2  ;;  %v208_v17 = vrot.slane %v6018_v61, 6 }
  0xff   :  { %v6028_v3 = vadd.f32 %v4793_v0, %v4656_v46  ;;  %v222_v4 = vsel %vm217_vm0, %v219_v59, %v221_v1  ;;  %v209_v22 = vsel %vm204_vm1, %v206_v12, %v208_v17 }
 0x100   :  { %242 = vrot.lane.b32.xlu1 %v222_v4, %s5749_s27 }
 0x101   :  { %v223_v5 = vrot.slane %v6028_v3, 2  ;;  %v210_v23 = vrot.slane %v6028_v3, 6 }
 0x103   :  { %v224_v6 = vsel %vm217_vm0, %v221_v1, %v223_v5  ;;  %v226_v7 = vsel %vm217_vm0, %v223_v5, 0.0  ;;  %v211_v28 = vsel %vm204_vm1, %v208_v17, %v210_v23 }
 0x104   :  { %244 = vrot.lane.b32.xlu0 %v224_v6, %s5749_s27  ;;  %233 = vrot.lane.b32.xlu1 %v6028_v3, %s5748_s25 }
 0x108   :  { %246 = vrot.lane.b32.xlu1 %v226_v7, %s5749_s27 }
 0x167   :  { %v228_v8 = vpop.permute.xlu0 %227 }
 0x168   :  { %v253_v13 = vsel %vm252_vm2, %v216_v11, %v228_v8 }
 0x16b   :  { %v230_v10 = vpop.permute.xlu0 %229 }
 0x16c   :  { %v254_v18 = vsel %vm252_vm2, %v207_v16, %v230_v10 }
 0x16e   :  { %v241_v14 = vpop.permute.xlu1 %240 }
 0x16f   :  { %v258_v15 = vsel %vm257_vm3, %v253_v13, %v241_v14  ;;  %v232_v19 = vpop.permute.xlu0 %231 }
 0x170   :  { %5035 = vmatprep.mubr.msk.f32.mxu0 %vm275_vm4, %v258_v15  ;;  %v255_v24 = vsel %vm252_vm2, %v209_v22, %v232_v19 }
 0x172   :  { %v243_v20 = vpop.permute.xlu1 %242 }
 0x173   :  { %v259_v21 = vsel %vm257_vm3, %v254_v18, %v243_v20 }
 0x174   :  { %5036 = vmatmul.mubr.msk.f32.vlgmr.msra.gmra.mxu0 %vm275_vm4, %v259_v21 }
 0x175   :  { %5089 = vmatpush3.msra.mxu0 %v6072_v36 }
 0x176   :  { %v245_v25 = vpop.permute.xlu0 %244  ;;  %v234_v26 = vpop.permute.xlu1 %233  ;;  %5090 = vmatprep.subr.mxu0 %v5750_v35 }
 0x177   :  { %v260_v27 = vsel %vm257_vm3, %v255_v24, %v245_v25  ;;  %v256_v29 = vsel %vm252_vm2, %v211_v28, %v234_v26  ;;  %5091 = vmatpush3.msra.mxu0 %v6079_v37 }
 0x178   :  { %5038 = vmatprep.mubr.msk.f32.mxu0 %vm275_vm4, %v260_v27  ;;  %5092 = vmatprep.subr.mxu0 %v5750_v35 }
 0x179   :  { %5093 = vmatpush3.msra.mxu0 %v6086_v38 }
 0x17a   :  { %v247_v30 = vpop.permute.xlu1 %246  ;;  %5094 = vmatprep.subr.mxu0 %v5750_v35 }
 0x17b   :  { %v261_v31 = vsel %vm257_vm3, %v256_v29, %v247_v30  ;;  %5095 = vmatpush3.msra.mxu0 %v6095_v39 }
 0x17c   :  { %5039 = vmatmul.mubr.msk.f32.gmra.mxu0 %vm275_vm4, %v261_v31  ;;  %5110 = vmatprep.subr.mxu0 %v5750_v35 }
 0x17d   :  { %5096 = vmatprep.mubr.msk.f32.mxu0 %vm5751_vm5, %v5750_v35 }
 0x234   :  { %v5037_v40 = vpop.f32.mrf.mxu0 }
 0x235   :  { %v360_v44 = vadd.f32 %v5037_v40, %v4657_v41 }
 0x236   :  { %v354_v42 = vpop.f32.mrf.mxu0 }
 0x237   :  { %v355_v43 = vadd.f32 %v4657_v41, %v354_v42 }
 0x239   :  { %5049 = vmatprep.mubr.msk.f32.mxu1 %vm257_vm3, %v355_v43 }
 0x23a   :  { %5050 = vmatmul.mubr.msk.f32.vlgmr.msra.gmra.mxu1 %vm257_vm3, %v360_v44 }
 0x23b   :  { %5056 = vmatpush3.msra.mxu1 %v6072_v36 }
 0x23c   :  { %v5040_v45 = vpop.f32.mrf.mxu0  ;;  %5057 = vmatprep.subr.mxu1 %v5750_v35 }
 0x23d   :  { %5058 = vmatpush3.msra.mxu1 %v6079_v37  ;;  %v370_v48 = vadd.f32 %v5040_v45, %v4657_v41 }
 0x23e   :  { %v364_v46 = vpop.f32.mrf.mxu0  ;;  %5059 = vmatprep.subr.mxu1 %v5750_v35 }
 0x23f   :  { %v365_v47 = vadd.f32 %v4657_v41, %v364_v46  ;;  %5060 = vmatpush3.msra.mxu1 %v6086_v38 }
 0x240   :  { %5061 = vmatprep.subr.mxu1 %v5750_v35 }
 0x241   :  { %5052 = vmatprep.mubr.msk.f32.mxu1 %vm257_vm3, %v365_v47  ;;  %5062 = vmatpush3.msra.mxu1 %v6095_v39 }
 0x242   :  { %5053 = vmatmul.mubr.msk.f32.gmra.mxu1 %vm257_vm3, %v370_v48  ;;  %5066 = vmatprep.subr.mxu1 %v5750_v35 }
 0x243   :  { %5063 = vmatprep.mubr.msk.f32.mxu1 %vm5751_vm5, %v5750_v35 }
 0x246   :  { %5064 = vmatmul.mubr.f32.vlgmr.msra.gmra.mxu1 %v5750_v35 }
 0x247   :  { %5067 = vmatpush3.msra.mxu1 %v6072_v36  ;;  %5074 = vmatprep.mubr.msk.f32.mxu1 %vm5751_vm5, %v5750_v35 }
 0x248   :  { %5068 = vmatprep.subr.mxu1 %v5750_v35 }
 0x249   :  { %5069 = vmatpush3.msra.mxu1 %v6079_v37 }
 0x24a   :  { %5070 = vmatprep.subr.mxu1 %v5750_v35 }
 0x24b   :  { %5071 = vmatpush3.msra.mxu1 %v6086_v38 }
 0x24c   :  { %5072 = vmatprep.subr.mxu1 %v5750_v35 }
 0x24d   :  { %5073 = vmatpush3.msra.mxu1 %v6095_v39 }
 0x24e   :  { %5077 = vmatprep.subr.mxu1 %v5750_v35 }
 0x2fa   :  { %v5051_v50 = vpop.f32.mrf.mxu1 }
 0x2fb   :  { %v6131_v52 = vadd.f32 %v5051_v50, %v4662_v49 }
 0x2fc   :  { %v469_v53 = vpop.f32.mrf.mxu1 }
 0x2fd   :  { %v6144_v0 = vadd.f32 %v4662_v49, %v469_v53 }
 0x302   :  { %v5054_v54 = vpop.f32.mrf.mxu1 }
 0x303   :  { %v6133_v56 = vadd.f32 %v5054_v54, %v4662_v49 }
 0x304   :  { %v479_v57 = vpop.f32.mrf.mxu1 }
 0x305   :  { %v6140_v59 = vadd.f32 %v4662_v49, %v479_v57 }
 0x306   :  { %v563_v60 = vpop.f32.mrf.mxu1 }
 0x307   :  { %v564_v62 = vadd.f32 %v6138_v58, %v563_v60 }
 0x308   :  { %v5065_v63 = vpop.f32.mrf.mxu1 }
 0x309   :  { %575 = vrot.lane.b32.xlu0 %v564_v62, %s5752_s7  ;;  %v567_v1 = vadd.f32 %v564_v62, %v6144_v0 }
 0x30b   :  { %v4668_v2 = vmul.f32 -1.442695, %v567_v1 }
 0x30d   :  { %5514 = vpow2.f32 %v4668_v2 }
 0x31a   :  { %v5515_v4 = vpop.eup %5514 }
 0x31b   :  { %v571_v5 = vadd.f32 1.0, %v5515_v4 }
 0x31d   :  { %5516 = vrcp.f32 %v571_v5 }
 0x32a   :  { %v5517_v6 = vpop.eup %5516 }
 0x32b   :  { %v585_v12 = vsub.f32 1.0, %v5517_v6  ;;  %v591_v14 = vmul.f32 0.0, %v5517_v6 }
 0x37b   :  { %v576_v7 = vpop.permute.xlu0 %575 }
 0x37c   :  { %v578_v8 = vmul.f32 %v5517_v6, %v576_v7 }
 0x37e   :  { %580 = vrot.lane.b32.xlu1 %v578_v8, %s5752_s7 }
 0x3f0   :  { %v581_v9 = vpop.permute.xlu1 %580 }
 0x3f1   :  { %v583_v10 = vadd.f32 %v581_v9, %v6144_v0 }
 0x3f3   :  { %5518 = vtanh.f32 %v583_v10 }
 0x400   :  { %v5519_v11 = vpop.eup %5518 }
 0x401   :  { %587 = vrot.lane.b32.xlu0 %v5519_v11, %s5753_s23 }
 0x473   :  { %v588_v13 = vpop.permute.xlu0 %587 }
 0x474   :  { %v590_v15 = vmul.f32 %v588_v13, %v585_v12 }
 0x476   :  { %v6150_v16 = vadd.f32 %v591_v14, %v590_v15 }
 0x478   :  { %594 = vrot.lane.b32.xlu1 %v6150_v16, %s5753_s23  ;;  %v694_v33 = vrot.slane %v6150_v16, 6 }
 0x4ea   :  { %v595_v17 = vpop.permute.xlu1 %594 }
 0x4eb   :  { %5075 = vmatmul.mubr.msk.f32.vlgmr.msra.gmra.mxu1 %vm257_vm3, %v595_v17 }
 0x4ec   :  { %5078 = vmatpush3.msra.mxu1 %v6072_v36  ;;  %5085 = vmatprep.mubr.msk.f32.mxu1 %vm5751_vm5, %v5750_v35 }
 0x4ed   :  { %5079 = vmatprep.subr.mxu1 %v5750_v35 }
 0x4ee   :  { %5080 = vmatpush3.msra.mxu1 %v6079_v37 }
 0x4ef   :  { %5081 = vmatprep.subr.mxu1 %v5750_v35 }
 0x4f0   :  { %5082 = vmatpush3.msra.mxu1 %v6086_v38 }
 0x4f1   :  { %5083 = vmatprep.subr.mxu1 %v5750_v35 }
 0x4f2   :  { %5084 = vmatpush3.msra.mxu1 %v6095_v39 }
 0x4f3   :  { %5099 = vmatprep.subr.mxu1 %v5750_v35 }
 0x5ab   :  { %v664_v18 = vpop.f32.mrf.mxu1 }
 0x5ac   :  { %v665_v19 = vadd.f32 %v6138_v58, %v664_v18 }
 0x5ad   :  { %v5076_v20 = vpop.f32.mrf.mxu1 }
 0x5ae   :  { %v669_v21 = vrot.slane %v665_v19, 6 }
 0x5b0   :  { %678 = vrot.lane.b32.xlu0 %v669_v21, %s5752_s7  ;;  %v671_v22 = vadd.f32 %v669_v21, %v6144_v0 }
 0x5b2   :  { %v4670_v23 = vmul.f32 -1.442695, %v671_v22 }
 0x5b4   :  { %5520 = vpow2.f32 %v4670_v23 }
 0x5c1   :  { %v5521_v24 = vpop.eup %5520 }
 0x5c2   :  { %v675_v25 = vadd.f32 1.0, %v5521_v24 }
 0x5c4   :  { %5522 = vrcp.f32 %v675_v25 }
 0x5d1   :  { %v5523_v26 = vpop.eup %5522 }
 0x5d2   :  { %v688_v32 = vsub.f32 1.0, %v5523_v26  ;;  %v696_v41 = vmul.f32 %v5523_v26, %v694_v33 }
 0x622   :  { %v679_v27 = vpop.permute.xlu0 %678 }
 0x623   :  { %v681_v28 = vmul.f32 %v5523_v26, %v679_v27 }
 0x625   :  { %683 = vrot.lane.b32.xlu1 %v681_v28, %s5752_s7 }
 0x697   :  { %v684_v29 = vpop.permute.xlu1 %683 }
 0x698   :  { %v686_v30 = vadd.f32 %v684_v29, %v6144_v0 }
 0x69a   :  { %5524 = vtanh.f32 %v686_v30 }
 0x6a7   :  { %v5525_v31 = vpop.eup %5524 }
 0x6a8   :  { %690 = vrot.lane.b32.xlu0 %v5525_v31, %s5753_s23 }
 0x71a   :  { %v691_v34 = vpop.permute.xlu0 %690 }
 0x71b   :  { %v693_v40 = vmul.f32 %v691_v34, %v688_v32 }
 0x71d   :  { %v697_v42 = vadd.f32 %v696_v41, %v693_v40 }
 0x71f   :  { %v699_v43 = vrot.slane %v697_v42, 2  ;;  %v800_v5 = vrot.slane %v697_v42, 6  ;;  %v2170_v10 = vsel %vm204_vm1, %v6150_v16, %v697_v42 }
 0x721   :  { %700 = vrot.lane.b32.xlu1 %v699_v43, %s5753_s23 }
 0x793   :  { %v701_v44 = vpop.permute.xlu1 %700 }
 0x794   :  { %5086 = vmatmul.mubr.msk.f32.vlgmr.msra.gmra.mxu1 %vm257_vm3, %v701_v44 }
 0x795   :  { %5100 = vmatpush3.msra.mxu1 %v6072_v36  ;;  %5107 = vmatprep.mubr.msk.f32.mxu1 %vm5751_vm5, %v5750_v35 }
 0x796   :  { %5101 = vmatprep.subr.mxu1 %v5750_v35 }
 0x797   :  { %5102 = vmatpush3.msra.mxu1 %v6079_v37 }
 0x798   :  { %5103 = vmatprep.subr.mxu1 %v5750_v35 }
 0x799   :  { %5104 = vmatpush3.msra.mxu1 %v6086_v38 }
 0x79a   :  { %5105 = vmatprep.subr.mxu1 %v5750_v35 }
 0x79b   :  { %5106 = vmatpush3.msra.mxu1 %v6095_v39 }
 0x79c   :  { %5121 = vmatprep.subr.mxu1 %v5750_v35 }
 0x854   :  { %v770_v45 = vpop.f32.mrf.mxu1 }
 0x855   :  { %v771_v46 = vadd.f32 %v6138_v58, %v770_v45 }
 0x856   :  { %v5087_v47 = vpop.f32.mrf.mxu1 }
 0x857   :  { %v775_v48 = vrot.slane %v771_v46, 4 }
 0x859   :  { %784 = vrot.lane.b32.xlu0 %v775_v48, %s5752_s7  ;;  %v777_v49 = vadd.f32 %v775_v48, %v6144_v0 }
 0x85b   :  { %v4672_v50 = vmul.f32 -1.442695, %v777_v49 }
 0x85d   :  { %5526 = vpow2.f32 %v4672_v50 }
 0x86a   :  { %v5527_v53 = vpop.eup %5526 }
 0x86b   :  { %v781_v54 = vadd.f32 1.0, %v5527_v53 }
 0x86d   :  { %5528 = vrcp.f32 %v781_v54 }
 0x87a   :  { %v5529_v57 = vpop.eup %5528 }
 0x87b   :  { %v794_v4 = vsub.f32 1.0, %v5529_v57  ;;  %v802_v7 = vmul.f32 %v5529_v57, %v800_v5 }
 0x8cb   :  { %v785_v60 = vpop.permute.xlu0 %784 }
 0x8cc   :  { %v787_v62 = vmul.f32 %v5529_v57, %v785_v60 }
 0x8ce   :  { %789 = vrot.lane.b32.xlu1 %v787_v62, %s5752_s7 }
 0x940   :  { %v790_v63 = vpop.permute.xlu1 %789 }
 0x941   :  { %v792_v1 = vadd.f32 %v790_v63, %v6144_v0 }
 0x943   :  { %5530 = vtanh.f32 %v792_v1 }
 0x950   :  { %v5531_v2 = vpop.eup %5530 }
 0x951   :  { %796 = vrot.lane.b32.xlu0 %v5531_v2, %s5753_s23 }
 0x9c3   :  { %v797_v6 = vpop.permute.xlu0 %796 }
 0x9c4   :  { %v799_v8 = vmul.f32 %v797_v6, %v794_v4 }
 0x9c6   :  { %v803_v9 = vadd.f32 %v802_v7, %v799_v8 }
 0x9c8   :  { %v805_v11 = vrot.slane %v803_v9, 4  ;;  %v2172_v12 = vsel %vm2171_vm6, %v2170_v10, %v803_v9  ;;  %v906_v29 = vrot.slane %v803_v9, 6 }
 0x9ca   :  { %806 = vrot.lane.b32.xlu1 %v805_v11, %s5753_s23 }
 0xa3c   :  { %v807_v13 = vpop.permute.xlu1 %806 }
 0xa3d   :  { %5097 = vmatmul.mubr.msk.f32.vlgmr.msra.gmra.mxu0 %vm257_vm3, %v807_v13 }
 0xa3e   :  { %5111 = vmatpush3.msra.mxu0 %v6072_v36  ;;  %5118 = vmatprep.mubr.msk.f32.mxu0 %vm5751_vm5, %v5750_v35 }
 0xa3f   :  { %5112 = vmatprep.subr.mxu0 %v5750_v35 }
 0xa40   :  { %5113 = vmatpush3.msra.mxu0 %v6079_v37 }
 0xa41   :  { %5114 = vmatprep.subr.mxu0 %v5750_v35 }
 0xa42   :  { %5115 = vmatpush3.msra.mxu0 %v6086_v38 }
 0xa43   :  { %5116 = vmatprep.subr.mxu0 %v5750_v35 }
 0xa44   :  { %5117 = vmatpush3.msra.mxu0 %v6095_v39 }
 0xa45   :  { %5132 = vmatprep.subr.mxu0 %v5750_v35 }
 0xafd   :  { %v876_v14 = vpop.f32.mrf.mxu0 }
 0xafe   :  { %v877_v15 = vadd.f32 %v6138_v58, %v876_v14 }
 0xaff   :  { %v5098_v16 = vpop.f32.mrf.mxu0 }
 0xb00   :  { %v881_v17 = vrot.slane %v877_v15, 2 }
 0xb02   :  { %890 = vrot.lane.b32.xlu0 %v881_v17, %s5752_s7  ;;  %v883_v18 = vadd.f32 %v881_v17, %v6144_v0 }
 0xb04   :  { %v4674_v19 = vmul.f32 -1.442695, %v883_v18 }
 0xb06   :  { %5532 = vpow2.f32 %v4674_v19 }
 0xb13   :  { %v5533_v20 = vpop.eup %5532 }
 0xb14   :  { %v887_v21 = vadd.f32 1.0, %v5533_v20 }
 0xb16   :  { %5534 = vrcp.f32 %v887_v21 }
 0xb23   :  { %v5535_v22 = vpop.eup %5534 }
 0xb24   :  { %v900_v28 = vsub.f32 1.0, %v5535_v22  ;;  %v908_v31 = vmul.f32 %v5535_v22, %v906_v29 }
 0xb74   :  { %v891_v23 = vpop.permute.xlu0 %890 }
 0xb75   :  { %v893_v24 = vmul.f32 %v5535_v22, %v891_v23 }
 0xb77   :  { %895 = vrot.lane.b32.xlu1 %v893_v24, %s5752_s7 }
 0xbe9   :  { %v896_v25 = vpop.permute.xlu1 %895 }
 0xbea   :  { %v898_v26 = vadd.f32 %v896_v25, %v6144_v0 }
 0xbec   :  { %5536 = vtanh.f32 %v898_v26 }
 0xbf9   :  { %v5537_v27 = vpop.eup %5536 }
 0xbfa   :  { %902 = vrot.lane.b32.xlu0 %v5537_v27, %s5753_s23 }
 0xc6c   :  { %v903_v30 = vpop.permute.xlu0 %902 }
 0xc6d   :  { %v905_v32 = vmul.f32 %v903_v30, %v900_v28 }
 0xc6f   :  { %v909_v33 = vadd.f32 %v908_v31, %v905_v32 }
 0xc71   :  { %v911_v34 = vrot.slane %v909_v33, 6  ;;  %v6212_v40 = vsel %vm217_vm0, %v2172_v12, %v909_v33 }
 0xc73   :  { %912 = vrot.lane.b32.xlu1 %v911_v34, %s5753_s23 }
 0xce5   :  { %v913_v41 = vpop.permute.xlu1 %912 }
 0xce6   :  { %5108 = vmatmul.mubr.msk.f32.vlgmr.msra.gmra.mxu1 %vm257_vm3, %v913_v41 }
 0xce7   :  { %5122 = vmatpush3.msra.mxu1 %v6072_v36  ;;  %5129 = vmatprep.mubr.msk.f32.mxu1 %vm5751_vm5, %v5750_v35 }
 0xce8   :  { %5123 = vmatprep.subr.mxu1 %v5750_v35 }
 0xce9   :  { %5124 = vmatpush3.msra.mxu1 %v6079_v37 }
 0xcea   :  { %5125 = vmatprep.subr.mxu1 %v5750_v35 }
 0xceb   :  { %5126 = vmatpush3.msra.mxu1 %v6086_v38 }
 0xcec   :  { %5127 = vmatprep.subr.mxu1 %v5750_v35 }
 0xced   :  { %5128 = vmatpush3.msra.mxu1 %v6095_v39 }
 0xcee   :  { %5143 = vmatprep.subr.mxu1 %v5750_v35 }
 0xda6   :  { %v982_v0 = vpop.f32.mrf.mxu1 }
 0xda7   :  { %v983_v42 = vadd.f32 %v6138_v58, %v982_v0 }
 0xda8   :  { %v5109_v43 = vpop.f32.mrf.mxu1 }
 0xda9   :  { %994 = vrot.lane.b32.xlu0 %v983_v42, %s5752_s7  ;;  %v986_v44 = vadd.f32 %v983_v42, %v6131_v52 }
 0xdab   :  { %v4676_v45 = vmul.f32 -1.442695, %v986_v44 }
 0xdad   :  { %5538 = vpow2.f32 %v4676_v45 }
 0xdba   :  { %v5539_v46 = vpop.eup %5538 }
 0xdbb   :  { %v990_v47 = vadd.f32 1.0, %v5539_v46 }
 0xdbd   :  { %5540 = vrcp.f32 %v990_v47 }
 0xdca   :  { %v5541_v48 = vpop.eup %5540 }
 0xdcb   :  { %v1004_v60 = vsub.f32 1.0, %v5541_v48  ;;  %v1011_v63 = vmul.f32 %v5541_v48, %v911_v34 }
 0xe1b   :  { %v995_v49 = vpop.permute.xlu0 %994 }
 0xe1c   :  { %v997_v50 = vmul.f32 %v5541_v48, %v995_v49 }
 0xe1e   :  { %999 = vrot.lane.b32.xlu1 %v997_v50, %s5752_s7 }
 0xe90   :  { %v1000_v53 = vpop.permute.xlu1 %999 }
 0xe91   :  { %v1002_v54 = vadd.f32 %v1000_v53, %v6131_v52 }
 0xe93   :  { %5542 = vtanh.f32 %v1002_v54 }
 0xea0   :  { %v5543_v57 = vpop.eup %5542 }
 0xea1   :  { %1006 = vrot.lane.b32.xlu0 %v5543_v57, %s5753_s23 }
 0xf13   :  { %v1007_v62 = vpop.permute.xlu0 %1006 }
 0xf14   :  { %v1009_v1 = vmul.f32 %v1007_v62, %v1004_v60 }
 0xf16   :  { %v6232_v2 = vadd.f32 %v1011_v63, %v1009_v1 }
 0xf18   :  { %1014 = vrot.lane.b32.xlu1 %v6232_v2, %s5753_s23  ;;  %v1114_v20 = vrot.slane %v6232_v2, 6 }
 0xf8a   :  { %v1015_v4 = vpop.permute.xlu1 %1014 }
 0xf8b   :  { %5119 = vmatmul.mubr.msk.f32.vlgmr.msra.gmra.mxu0 %vm257_vm3, %v1015_v4 }
 0xf8c   :  { %5133 = vmatpush3.msra.mxu0 %v6072_v36  ;;  %5140 = vmatprep.mubr.msk.f32.mxu0 %vm5751_vm5, %v5750_v35 }
 0xf8d   :  { %5134 = vmatprep.subr.mxu0 %v5750_v35 }
 0xf8e   :  { %5135 = vmatpush3.msra.mxu0 %v6079_v37 }
 0xf8f   :  { %5136 = vmatprep.subr.mxu0 %v5750_v35 }
 0xf90   :  { %5137 = vmatpush3.msra.mxu0 %v6086_v38 }
 0xf91   :  { %5138 = vmatprep.subr.mxu0 %v5750_v35 }
 0xf92   :  { %5139 = vmatpush3.msra.mxu0 %v6095_v39 }
 0xf93   :  { %5154 = vmatprep.subr.mxu0 %v5750_v35 }
0x104b   :  { %v1084_v5 = vpop.f32.mrf.mxu0 }
0x104c   :  { %v1085_v6 = vadd.f32 %v6138_v58, %v1084_v5 }
0x104d   :  { %v5120_v7 = vpop.f32.mrf.mxu0 }
0x104e   :  { %v1089_v8 = vrot.slane %v1085_v6, 6 }
0x1050   :  { %1098 = vrot.lane.b32.xlu0 %v1089_v8, %s5752_s7  ;;  %v1091_v9 = vadd.f32 %v1089_v8, %v6131_v52 }
0x1052   :  { %v4678_v10 = vmul.f32 -1.442695, %v1091_v9 }
0x1054   :  { %5544 = vpow2.f32 %v4678_v10 }
0x1061   :  { %v5545_v11 = vpop.eup %5544 }
0x1062   :  { %v1095_v12 = vadd.f32 1.0, %v5545_v11 }
0x1064   :  { %5546 = vrcp.f32 %v1095_v12 }
0x1071   :  { %v5547_v13 = vpop.eup %5546 }
0x1072   :  { %v1108_v19 = vsub.f32 1.0, %v5547_v13  ;;  %v1116_v23 = vmul.f32 %v5547_v13, %v1114_v20 }
0x10c2   :  { %v1099_v14 = vpop.permute.xlu0 %1098 }
0x10c3   :  { %v1101_v15 = vmul.f32 %v5547_v13, %v1099_v14 }
0x10c5   :  { %1103 = vrot.lane.b32.xlu1 %v1101_v15, %s5752_s7 }
0x1137   :  { %v1104_v16 = vpop.permute.xlu1 %1103 }
0x1138   :  { %v1106_v17 = vadd.f32 %v1104_v16, %v6131_v52 }
0x113a   :  { %5548 = vtanh.f32 %v1106_v17 }
0x1147   :  { %v5549_v18 = vpop.eup %5548 }
0x1148   :  { %1110 = vrot.lane.b32.xlu0 %v5549_v18, %s5753_s23 }
0x11ba   :  { %v1111_v21 = vpop.permute.xlu0 %1110 }
0x11bb   :  { %v1113_v22 = vmul.f32 %v1111_v21, %v1108_v19 }
0x11bd   :  { %v1117_v24 = vadd.f32 %v1116_v23, %v1113_v22 }
0x11bf   :  { %v1119_v25 = vrot.slane %v1117_v24, 2  ;;  %v1220_v47 = vrot.slane %v1117_v24, 6  ;;  %v2174_v54 = vsel %vm204_vm1, %v6232_v2, %v1117_v24 }
0x11c1   :  { %1120 = vrot.lane.b32.xlu1 %v1119_v25, %s5753_s23 }
0x1233   :  { %v1121_v26 = vpop.permute.xlu1 %1120 }
0x1234   :  { %5130 = vmatmul.mubr.msk.f32.vlgmr.msra.gmra.mxu1 %vm257_vm3, %v1121_v26 }
0x1235   :  { %5144 = vmatpush3.msra.mxu1 %v6072_v36  ;;  %5151 = vmatprep.mubr.msk.f32.mxu1 %vm5751_vm5, %v5750_v35 }
0x1236   :  { %5145 = vmatprep.subr.mxu1 %v5750_v35 }
0x1237   :  { %5146 = vmatpush3.msra.mxu1 %v6079_v37 }
0x1238   :  { %5147 = vmatprep.subr.mxu1 %v5750_v35 }
0x1239   :  { %5148 = vmatpush3.msra.mxu1 %v6086_v38 }
0x123a   :  { %5149 = vmatprep.subr.mxu1 %v5750_v35 }
0x123b   :  { %5150 = vmatpush3.msra.mxu1 %v6095_v39 }
0x123c   :  { %5165 = vmatprep.subr.mxu1 %v5750_v35 }
0x12f4   :  { %v1190_v27 = vpop.f32.mrf.mxu1 }
0x12f5   :  { %v1191_v28 = vadd.f32 %v6138_v58, %v1190_v27 }
0x12f6   :  { %v5131_v29 = vpop.f32.mrf.mxu1 }
0x12f7   :  { %v1195_v30 = vrot.slane %v1191_v28, 4 }
0x12f9   :  { %1204 = vrot.lane.b32.xlu0 %v1195_v30, %s5752_s7  ;;  %v1197_v31 = vadd.f32 %v1195_v30, %v6131_v52 }
0x12fb   :  { %v4680_v32 = vmul.f32 -1.442695, %v1197_v31 }
0x12fd   :  { %5550 = vpow2.f32 %v4680_v32 }
0x130a   :  { %v5551_v33 = vpop.eup %5550 }
0x130b   :  { %v1201_v34 = vadd.f32 1.0, %v5551_v33 }
0x130d   :  { %5552 = vrcp.f32 %v1201_v34 }
0x131a   :  { %v5553_v41 = vpop.eup %5552 }
0x131b   :  { %v1214_v46 = vsub.f32 1.0, %v5553_v41  ;;  %v1222_v49 = vmul.f32 %v5553_v41, %v1220_v47 }
0x136b   :  { %v1205_v0 = vpop.permute.xlu0 %1204 }
0x136c   :  { %v1207_v42 = vmul.f32 %v5553_v41, %v1205_v0 }
0x136e   :  { %1209 = vrot.lane.b32.xlu1 %v1207_v42, %s5752_s7 }
0x13e0   :  { %v1210_v43 = vpop.permute.xlu1 %1209 }
0x13e1   :  { %v1212_v44 = vadd.f32 %v1210_v43, %v6131_v52 }
0x13e3   :  { %5554 = vtanh.f32 %v1212_v44 }
0x13f0   :  { %v5555_v45 = vpop.eup %5554 }
0x13f1   :  { %1216 = vrot.lane.b32.xlu0 %v5555_v45, %s5753_s23 }
0x1463   :  { %v1217_v48 = vpop.permute.xlu0 %1216 }
0x1464   :  { %v1219_v50 = vmul.f32 %v1217_v48, %v1214_v46 }
0x1466   :  { %v1223_v53 = vadd.f32 %v1222_v49, %v1219_v50 }
0x1468   :  { %v1225_v57 = vrot.slane %v1223_v53, 4  ;;  %v2175_v60 = vsel %vm2171_vm6, %v2174_v54, %v1223_v53  ;;  %v1326_v16 = vrot.slane %v1223_v53, 6 }
0x146a   :  { %1226 = vrot.lane.b32.xlu1 %v1225_v57, %s5753_s23 }
0x14dc   :  { %v1227_v62 = vpop.permute.xlu1 %1226 }
0x14dd   :  { %5141 = vmatmul.mubr.msk.f32.vlgmr.msra.gmra.mxu0 %vm257_vm3, %v1227_v62 }
0x14de   :  { %5155 = vmatpush3.msra.mxu0 %v6072_v36  ;;  %5162 = vmatprep.mubr.msk.f32.mxu0 %vm5751_vm5, %v5750_v35 }
0x14df   :  { %5156 = vmatprep.subr.mxu0 %v5750_v35 }
0x14e0   :  { %5157 = vmatpush3.msra.mxu0 %v6079_v37 }
0x14e1   :  { %5158 = vmatprep.subr.mxu0 %v5750_v35 }
0x14e2   :  { %5159 = vmatpush3.msra.mxu0 %v6086_v38 }
0x14e3   :  { %5160 = vmatprep.subr.mxu0 %v5750_v35 }
0x14e4   :  { %5161 = vmatpush3.msra.mxu0 %v6095_v39 }
0x14e5   :  { %5176 = vmatprep.subr.mxu0 %v5750_v35 }
0x159d   :  { %v1296_v63 = vpop.f32.mrf.mxu0 }
0x159e   :  { %v1297_v1 = vadd.f32 %v6138_v58, %v1296_v63 }
0x159f   :  { %v5142_v2 = vpop.f32.mrf.mxu0 }
0x15a0   :  { %v1301_v4 = vrot.slane %v1297_v1, 2 }
0x15a2   :  { %1310 = vrot.lane.b32.xlu0 %v1301_v4, %s5752_s7  ;;  %v1303_v5 = vadd.f32 %v1301_v4, %v6131_v52 }
0x15a4   :  { %v4682_v6 = vmul.f32 -1.442695, %v1303_v5 }
0x15a6   :  { %5556 = vpow2.f32 %v4682_v6 }
0x15b3   :  { %v5557_v7 = vpop.eup %5556 }
0x15b4   :  { %v1307_v8 = vadd.f32 1.0, %v5557_v7 }
0x15b6   :  { %5558 = vrcp.f32 %v1307_v8 }
0x15c3   :  { %v5559_v9 = vpop.eup %5558 }
0x15c4   :  { %v1320_v15 = vsub.f32 1.0, %v5559_v9  ;;  %v1328_v18 = vmul.f32 %v5559_v9, %v1326_v16 }
0x1614   :  { %v1311_v10 = vpop.permute.xlu0 %1310 }
0x1615   :  { %v1313_v11 = vmul.f32 %v5559_v9, %v1311_v10 }
0x1617   :  { %1315 = vrot.lane.b32.xlu1 %v1313_v11, %s5752_s7 }
0x1689   :  { %v1316_v12 = vpop.permute.xlu1 %1315 }
0x168a   :  { %v1318_v13 = vadd.f32 %v1316_v12, %v6131_v52 }
0x168c   :  { %5560 = vtanh.f32 %v1318_v13 }
0x1699   :  { %v5561_v14 = vpop.eup %5560 }
0x169a   :  { %1322 = vrot.lane.b32.xlu0 %v5561_v14, %s5753_s23 }
0x170c   :  { %v1323_v17 = vpop.permute.xlu0 %1322 }
0x170d   :  { %v1325_v19 = vmul.f32 %v1323_v17, %v1320_v15 }
0x170f   :  { %v1329_v20 = vadd.f32 %v1328_v18, %v1325_v19 }
0x1711   :  { %v1331_v21 = vrot.slane %v1329_v20, 6  ;;  %v6294_v22 = vsel %vm217_vm0, %v2175_v60, %v1329_v20 }
0x1713   :  { %1332 = vrot.lane.b32.xlu1 %v1331_v21, %s5753_s23 }
0x1785   :  { %v1333_v23 = vpop.permute.xlu1 %1332 }
0x1786   :  { %5152 = vmatmul.mubr.msk.f32.vlgmr.msra.gmra.mxu1 %vm257_vm3, %v1333_v23 }
0x1787   :  { %5166 = vmatpush3.msra.mxu1 %v6072_v36  ;;  %5173 = vmatprep.mubr.msk.f32.mxu1 %vm5751_vm5, %v5750_v35 }
0x1788   :  { %5167 = vmatprep.subr.mxu1 %v5750_v35 }
0x1789   :  { %5168 = vmatpush3.msra.mxu1 %v6079_v37 }
0x178a   :  { %5169 = vmatprep.subr.mxu1 %v5750_v35 }
0x178b   :  { %5170 = vmatpush3.msra.mxu1 %v6086_v38 }
0x178c   :  { %5171 = vmatprep.subr.mxu1 %v5750_v35 }
0x178d   :  { %5172 = vmatpush3.msra.mxu1 %v6095_v39 }
0x178e   :  { %5187 = vmatprep.subr.mxu1 %v5750_v35 }
0x1846   :  { %v1402_v52 = vpop.f32.mrf.mxu1 }
0x1847   :  { %v1403_v24 = vadd.f32 %v6138_v58, %v1402_v52 }
0x1848   :  { %v5153_v25 = vpop.f32.mrf.mxu1 }
0x1849   :  { %1414 = vrot.lane.b32.xlu0 %v1403_v24, %s5752_s7  ;;  %v1406_v26 = vadd.f32 %v1403_v24, %v6140_v59 }
0x184b   :  { %v4684_v27 = vmul.f32 -1.442695, %v1406_v26 }
0x184d   :  { %5562 = vpow2.f32 %v4684_v27 }
0x185a   :  { %v5563_v28 = vpop.eup %5562 }
0x185b   :  { %v1410_v29 = vadd.f32 1.0, %v5563_v28 }
0x185d   :  { %5564 = vrcp.f32 %v1410_v29 }
0x186a   :  { %v5565_v30 = vpop.eup %5564 }
0x186b   :  { %v1424_v0 = vsub.f32 1.0, %v5565_v30  ;;  %v1431_v43 = vmul.f32 %v5565_v30, %v1331_v21 }
0x18bb   :  { %v1415_v31 = vpop.permute.xlu0 %1414 }
0x18bc   :  { %v1417_v32 = vmul.f32 %v5565_v30, %v1415_v31 }
0x18be   :  { %1419 = vrot.lane.b32.xlu1 %v1417_v32, %s5752_s7 }
0x1930   :  { %v1420_v33 = vpop.permute.xlu1 %1419 }
0x1931   :  { %v1422_v34 = vadd.f32 %v1420_v33, %v6140_v59 }
0x1933   :  { %5566 = vtanh.f32 %v1422_v34 }
0x1940   :  { %v5567_v41 = vpop.eup %5566 }
0x1941   :  { %1426 = vrot.lane.b32.xlu0 %v5567_v41, %s5753_s23 }
0x19b3   :  { %v1427_v42 = vpop.permute.xlu0 %1426 }
0x19b4   :  { %v1429_v44 = vmul.f32 %v1427_v42, %v1424_v0 }
0x19b6   :  { %v6314_v45 = vadd.f32 %v1431_v43, %v1429_v44 }
0x19b8   :  { %1434 = vrot.lane.b32.xlu1 %v6314_v45, %s5753_s23  ;;  %v1534_v7 = vrot.slane %v6314_v45, 6 }
0x1a2a   :  { %v1435_v46 = vpop.permute.xlu1 %1434 }
0x1a2b   :  { %5163 = vmatmul.mubr.msk.f32.vlgmr.msra.gmra.mxu0 %vm257_vm3, %v1435_v46 }
0x1a2c   :  { %5177 = vmatpush3.msra.mxu0 %v6072_v36  ;;  %5184 = vmatprep.mubr.msk.f32.mxu0 %vm5751_vm5, %v5750_v35 }
0x1a2d   :  { %5178 = vmatprep.subr.mxu0 %v5750_v35 }
0x1a2e   :  { %5179 = vmatpush3.msra.mxu0 %v6079_v37 }
0x1a2f   :  { %5180 = vmatprep.subr.mxu0 %v5750_v35 }
0x1a30   :  { %5181 = vmatpush3.msra.mxu0 %v6086_v38 }
0x1a31   :  { %5182 = vmatprep.subr.mxu0 %v5750_v35 }
0x1a32   :  { %5183 = vmatpush3.msra.mxu0 %v6095_v39 }
0x1a33   :  { %5198 = vmatprep.subr.mxu0 %v5750_v35 }
0x1aeb   :  { %v1504_v47 = vpop.f32.mrf.mxu0 }
0x1aec   :  { %v1505_v48 = vadd.f32 %v6138_v58, %v1504_v47 }
0x1aed   :  { %v5164_v49 = vpop.f32.mrf.mxu0 }
0x1aee   :  { %v1509_v50 = vrot.slane %v1505_v48, 6 }
0x1af0   :  { %1518 = vrot.lane.b32.xlu0 %v1509_v50, %s5752_s7  ;;  %v1511_v53 = vadd.f32 %v1509_v50, %v6140_v59 }
0x1af2   :  { %v4686_v54 = vmul.f32 -1.442695, %v1511_v53 }
0x1af4   :  { %5568 = vpow2.f32 %v4686_v54 }
0x1b01   :  { %v5569_v57 = vpop.eup %5568 }
0x1b02   :  { %v1515_v60 = vadd.f32 1.0, %v5569_v57 }
0x1b04   :  { %5570 = vrcp.f32 %v1515_v60 }
0x1b11   :  { %v5571_v62 = vpop.eup %5570 }
0x1b12   :  { %v1528_v6 = vsub.f32 1.0, %v5571_v62  ;;  %v1536_v10 = vmul.f32 %v5571_v62, %v1534_v7  ;;  %v5739_v7 = vld [vmem:[%s7230_s0 + $0x10] sm:$0xff] }
0x1b62   :  { %v1519_v63 = vpop.permute.xlu0 %1518 }
0x1b63   :  { %v1521_v1 = vmul.f32 %v5571_v62, %v1519_v63 }
0x1b65   :  { %1523 = vrot.lane.b32.xlu1 %v1521_v1, %s5752_s7 }
0x1bd7   :  { %v1524_v2 = vpop.permute.xlu1 %1523 }
0x1bd8   :  { %v1526_v4 = vadd.f32 %v1524_v2, %v6140_v59 }
0x1bda   :  { %5572 = vtanh.f32 %v1526_v4 }
0x1be7   :  { %v5573_v5 = vpop.eup %5572 }
0x1be8   :  { %1530 = vrot.lane.b32.xlu0 %v5573_v5, %s5753_s23 }
0x1c5a   :  { %v1531_v8 = vpop.permute.xlu0 %1530 }
0x1c5b   :  { %v1533_v9 = vmul.f32 %v1531_v8, %v1528_v6  ;;  %v5740_v8 = vld [vmem:[%s7230_s0 + $0x8] sm:$0xff] }
0x1c5d   :  { %v1537_v11 = vadd.f32 %v1536_v10, %v1533_v9  ;;  %v5741_v9 = vld [vmem:[%s7230_s0] sm:$0xff] }
0x1c5f   :  { %v1539_v12 = vrot.slane %v1537_v11, 2  ;;  %v1640_v29 = vrot.slane %v1537_v11, 6  ;;  %v2177_v34 = vsel %vm204_vm1, %v6314_v45, %v1537_v11 }
0x1c61   :  { %1540 = vrot.lane.b32.xlu1 %v1539_v12, %s5753_s23 }
0x1cd3   :  { %v1541_v13 = vpop.permute.xlu1 %1540 }
0x1cd4   :  { %5174 = vmatmul.mubr.msk.f32.vlgmr.msra.gmra.mxu1 %vm257_vm3, %v1541_v13 }
0x1cd5   :  { %5188 = vmatpush3.msra.mxu1 %v6072_v36  ;;  %5195 = vmatprep.mubr.msk.f32.mxu1 %vm5751_vm5, %v5750_v35 }
0x1cd6   :  { %5189 = vmatprep.subr.mxu1 %v5750_v35 }
0x1cd7   :  { %5190 = vmatpush3.msra.mxu1 %v6079_v37 }
0x1cd8   :  { %5191 = vmatprep.subr.mxu1 %v5750_v35 }
0x1cd9   :  { %5192 = vmatpush3.msra.mxu1 %v6086_v38 }
0x1cda   :  { %5193 = vmatprep.subr.mxu1 %v5750_v35 }
0x1cdb   :  { %5194 = vmatpush3.msra.mxu1 %v6095_v39 }
0x1cdc   :  { %5209 = vmatprep.subr.mxu1 %v5750_v35 }
0x1d94   :  { %v1610_v14 = vpop.f32.mrf.mxu1 }
0x1d95   :  { %v1611_v15 = vadd.f32 %v6138_v58, %v1610_v14 }
0x1d96   :  { %v5175_v16 = vpop.f32.mrf.mxu1 }
0x1d97   :  { %v1615_v17 = vrot.slane %v1611_v15, 4 }
0x1d99   :  { %1624 = vrot.lane.b32.xlu0 %v1615_v17, %s5752_s7  ;;  %v1617_v18 = vadd.f32 %v1615_v17, %v6140_v59 }
0x1d9b   :  { %v4688_v19 = vmul.f32 -1.442695, %v1617_v18 }
0x1d9d   :  { %5574 = vpow2.f32 %v4688_v19 }
0x1daa   :  { %v5575_v20 = vpop.eup %5574 }
0x1dab   :  { %v1621_v21 = vadd.f32 1.0, %v5575_v20 }
0x1dad   :  { %5576 = vrcp.f32 %v1621_v21 }
0x1dba   :  { %v5577_v23 = vpop.eup %5576 }
0x1dbb   :  { %v1634_v28 = vsub.f32 1.0, %v5577_v23  ;;  %v1642_v31 = vmul.f32 %v5577_v23, %v1640_v29 }
0x1e0b   :  { %v1625_v52 = vpop.permute.xlu0 %1624 }
0x1e0c   :  { %v1627_v24 = vmul.f32 %v5577_v23, %v1625_v52 }
0x1e0e   :  { %1629 = vrot.lane.b32.xlu1 %v1627_v24, %s5752_s7 }
0x1e80   :  { %v1630_v25 = vpop.permute.xlu1 %1629 }
0x1e81   :  { %v1632_v26 = vadd.f32 %v1630_v25, %v6140_v59 }
0x1e83   :  { %5578 = vtanh.f32 %v1632_v26 }
0x1e90   :  { %v5579_v27 = vpop.eup %5578 }
0x1e91   :  { %1636 = vrot.lane.b32.xlu0 %v5579_v27, %s5753_s23 }
0x1f03   :  { %v1637_v30 = vpop.permute.xlu0 %1636 }
0x1f04   :  { %v1639_v32 = vmul.f32 %v1637_v30, %v1634_v28 }
0x1f06   :  { %v1643_v33 = vadd.f32 %v1642_v31, %v1639_v32 }
0x1f08   :  { %v1645_v41 = vrot.slane %v1643_v33, 4  ;;  %v2178_v0 = vsel %vm2171_vm6, %v2177_v34, %v1643_v33  ;;  %v1746_v60 = vrot.slane %v1643_v33, 6 }
0x1f0a   :  { %1646 = vrot.lane.b32.xlu1 %v1645_v41, %s5753_s23 }
0x1f7c   :  { %v1647_v42 = vpop.permute.xlu1 %1646 }
0x1f7d   :  { %5185 = vmatmul.mubr.msk.f32.vlgmr.msra.gmra.mxu0 %vm257_vm3, %v1647_v42 }
0x1f7e   :  { %5199 = vmatpush3.msra.mxu0 %v6072_v36  ;;  %5206 = vmatprep.mubr.msk.f32.mxu0 %vm5751_vm5, %v5750_v35 }
0x1f7f   :  { %5200 = vmatprep.subr.mxu0 %v5750_v35 }
0x1f80   :  { %5201 = vmatpush3.msra.mxu0 %v6079_v37 }
0x1f81   :  { %5202 = vmatprep.subr.mxu0 %v5750_v35 }
0x1f82   :  { %5203 = vmatpush3.msra.mxu0 %v6086_v38 }
0x1f83   :  { %5204 = vmatprep.subr.mxu0 %v5750_v35 }
0x1f84   :  { %5205 = vmatpush3.msra.mxu0 %v6095_v39 }
0x1f85   :  { %5220 = vmatprep.subr.mxu0 %v5750_v35 }
0x203d   :  { %v1716_v43 = vpop.f32.mrf.mxu0 }
0x203e   :  { %v1717_v36 = vadd.f32 %v6138_v58, %v1716_v43 }
0x203f   :  { %v5186_v44 = vpop.f32.mrf.mxu0 }
0x2040   :  { %v1721_v45 = vrot.slane %v1717_v36, 2 }
0x2042   :  { %1730 = vrot.lane.b32.xlu0 %v1721_v45, %s5752_s7  ;;  %v1723_v46 = vadd.f32 %v1721_v45, %v6140_v59 }
0x2044   :  { %v4690_v37 = vmul.f32 -1.442695, %v1723_v46 }
0x2046   :  { %5580 = vpow2.f32 %v4690_v37 }
0x2053   :  { %v5581_v47 = vpop.eup %5580 }
0x2054   :  { %v1727_v48 = vadd.f32 1.0, %v5581_v47 }
0x2056   :  { %5582 = vrcp.f32 %v1727_v48 }
0x2063   :  { %v5583_v38 = vpop.eup %5582 }
0x2064   :  { %v1740_v57 = vsub.f32 1.0, %v5583_v38  ;;  %v1748_v63 = vmul.f32 %v5583_v38, %v1746_v60 }
0x20b4   :  { %v1731_v49 = vpop.permute.xlu0 %1730 }
0x20b5   :  { %v1733_v50 = vmul.f32 %v5583_v38, %v1731_v49 }
0x20b7   :  { %1735 = vrot.lane.b32.xlu1 %v1733_v50, %s5752_s7 }
0x2129   :  { %v1736_v39 = vpop.permute.xlu1 %1735 }
0x212a   :  { %v1738_v53 = vadd.f32 %v1736_v39, %v6140_v59  ;;  %v5738_v59 = vld [vmem:[%s7230_s0 + $0x18] sm:$0xff] }
0x212c   :  { %5584 = vtanh.f32 %v1738_v53 }
0x2139   :  { %v5585_v54 = vpop.eup %5584 }
0x213a   :  { %1742 = vrot.lane.b32.xlu0 %v5585_v54, %s5753_s23  ;;  %v6426_v54 = vld [vmem:[%s7200_s8] ss:$0 sm:$0xff] }
0x21ac   :  { %v1743_v62 = vpop.permute.xlu0 %1742 }
0x21ad   :  { %v1745_v1 = vmul.f32 %v1743_v62, %v1740_v57 }
0x21af   :  { %v1749_v2 = vadd.f32 %v1748_v63, %v1745_v1 }
0x21b1   :  { %v1751_v4 = vrot.slane %v1749_v2, 6  ;;  %v6376_v5 = vsel %vm217_vm0, %v2178_v0, %v1749_v2 }
0x21b3   :  { %1752 = vrot.lane.b32.xlu1 %v1751_v4, %s5753_s23 }
0x2225   :  { %v1753_v6 = vpop.permute.xlu1 %1752 }
0x2226   :  { %5196 = vmatmul.mubr.msk.f32.vlgmr.msra.gmra.mxu1 %vm257_vm3, %v1753_v6 }
0x2227   :  { %5210 = vmatpush3.msra.mxu1 %v5738_v59  ;;  %5217 = vmatprep.mubr.msk.f32.mxu1 %vm5751_vm5, %v5750_v35 }
0x2228   :  { %5211 = vmatprep.subr.mxu1 %v5750_v35 }
0x2229   :  { %5212 = vmatpush3.msra.mxu1 %v5739_v7 }
0x222a   :  { %5213 = vmatprep.subr.mxu1 %v5750_v35 }
0x222b   :  { %5214 = vmatpush3.msra.mxu1 %v5740_v8 }
0x222c   :  { %5215 = vmatprep.subr.mxu1 %v5750_v35 }
0x222d   :  { %5216 = vmatpush3.msra.mxu1 %v5741_v9 }
0x22e6   :  { %v1822_v10 = vpop.f32.mrf.mxu1 }
0x22e7   :  { %v1823_v11 = vadd.f32 %v6138_v58, %v1822_v10 }
0x22e8   :  { %v5197_v12 = vpop.f32.mrf.mxu1 }
0x22e9   :  { %1834 = vrot.lane.b32.xlu0 %v1823_v11, %s5752_s7  ;;  %v1826_v13 = vadd.f32 %v1823_v11, %v6133_v56 }
0x22eb   :  { %v4692_v14 = vmul.f32 -1.442695, %v1826_v13 }
0x22ed   :  { %5586 = vpow2.f32 %v4692_v14 }
0x22fa   :  { %v5587_v15 = vpop.eup %5586 }
0x22fb   :  { %v1830_v16 = vadd.f32 1.0, %v5587_v15 }
0x22fd   :  { %5588 = vrcp.f32 %v1830_v16 }
0x230a   :  { %v5589_v17 = vpop.eup %5588 }
0x230b   :  { %v1844_v52 = vsub.f32 1.0, %v5589_v17  ;;  %v1851_v25 = vmul.f32 %v5589_v17, %v1751_v4 }
0x235b   :  { %v1835_v18 = vpop.permute.xlu0 %1834 }
0x235c   :  { %v1837_v19 = vmul.f32 %v5589_v17, %v1835_v18 }
0x235e   :  { %1839 = vrot.lane.b32.xlu1 %v1837_v19, %s5752_s7 }
0x23d0   :  { %v1840_v20 = vpop.permute.xlu1 %1839 }
0x23d1   :  { %v1842_v21 = vadd.f32 %v1840_v20, %v6133_v56 }
0x23d3   :  { %5590 = vtanh.f32 %v1842_v21 }
0x23e0   :  { %v5591_v23 = vpop.eup %5590 }
0x23e1   :  { %1846 = vrot.lane.b32.xlu0 %v5591_v23, %s5753_s23 }
0x2453   :  { %v1847_v24 = vpop.permute.xlu0 %1846 }
0x2454   :  { %v1849_v26 = vmul.f32 %v1847_v24, %v1844_v52 }
0x2456   :  { %v6403_v27 = vadd.f32 %v1851_v25, %v1849_v26 }
0x2458   :  { %1854 = vrot.lane.b32.xlu1 %v6403_v27, %s5753_s23  ;;  %v1954_v37 = vrot.slane %v6403_v27, 6 }
0x24ca   :  { %v1855_v28 = vpop.permute.xlu1 %1854 }
0x24cb   :  { %5207 = vmatmul.mubr.msk.f32.vlgmr.msra.gmra.mxu0 %vm257_vm3, %v1855_v28 }
0x24cc   :  { %5221 = vmatpush3.msra.mxu0 %v5738_v59  ;;  %5228 = vmatprep.mubr.msk.f32.mxu0 %vm5751_vm5, %v5750_v35 }
0x24cd   :  { %5222 = vmatprep.subr.mxu0 %v5750_v35 }
0x24ce   :  { %5223 = vmatpush3.msra.mxu0 %v5739_v7 }
0x24cf   :  { %5224 = vmatprep.subr.mxu0 %v5750_v35 }
0x24d0   :  { %5225 = vmatpush3.msra.mxu0 %v5740_v8 }
0x24d1   :  { %5226 = vmatprep.subr.mxu0 %v5750_v35 }
0x24d2   :  { %5227 = vmatpush3.msra.mxu0 %v5741_v9 }
0x24d3   :  { %5245 = vmatprep.subr.mxu0 %v5750_v35 }
0x258b   :  { %v1924_v29 = vpop.f32.mrf.mxu0 }
0x258c   :  { %v1925_v30 = vadd.f32 %v6138_v58, %v1924_v29 }
0x258d   :  { %v5208_v31 = vpop.f32.mrf.mxu0 }
0x258e   :  { %v1929_v32 = vrot.slane %v1925_v30, 6 }
0x2590   :  { %1938 = vrot.lane.b32.xlu0 %v1929_v32, %s5752_s7  ;;  %v1931_v33 = vadd.f32 %v1929_v32, %v6133_v56 }
0x2592   :  { %v4694_v34 = vmul.f32 -1.442695, %v1931_v33 }
0x2594   :  { %5592 = vpow2.f32 %v4694_v34 }
0x25a1   :  { %v5593_v41 = vpop.eup %5592 }
0x25a2   :  { %v1935_v0 = vadd.f32 1.0, %v5593_v41  ;;  %v4700_v41 = vld [vmem:[%s7202_s10] ss:$0 sm:$0xff] }
0x25a4   :  { %5594 = vrcp.f32 %v1935_v0 }
0x25b1   :  { %v5595_v42 = vpop.eup %5594 }
0x25b2   :  { %v1948_v46 = vsub.f32 1.0, %v5595_v42  ;;  %v1956_v38 = vmul.f32 %v5595_v42, %v1954_v37 }
0x2602   :  { %v1939_v43 = vpop.permute.xlu0 %1938 }
0x2603   :  { %v1941_v36 = vmul.f32 %v5595_v42, %v1939_v43 }
0x2605   :  { %1943 = vrot.lane.b32.xlu1 %v1941_v36, %s5752_s7 }
0x2677   :  { %v1944_v44 = vpop.permute.xlu1 %1943 }
0x2678   :  { %v1946_v45 = vadd.f32 %v1944_v44, %v6133_v56 }
0x267a   :  { %5596 = vtanh.f32 %v1946_v45 }
0x2687   :  { %v5597_v58 = vpop.eup %5596 }
0x2688   :  { %1950 = vrot.lane.b32.xlu0 %v5597_v58, %s5753_s23 }
0x26fa   :  { %v1951_v47 = vpop.permute.xlu0 %1950 }
0x26fb   :  { %v1953_v48 = vmul.f32 %v1951_v47, %v1948_v46 }
0x26fd   :  { %v1957_v49 = vadd.f32 %v1956_v38, %v1953_v48 }
0x26ff   :  { %v1959_v50 = vrot.slane %v1957_v49, 2  ;;  %v2060_v12 = vrot.slane %v1957_v49, 6  ;;  %v2180_v18 = vsel %vm204_vm1, %v6403_v27, %v1957_v49 }
0x2701   :  { %1960 = vrot.lane.b32.xlu1 %v1959_v50, %s5753_s23 }
0x2773   :  { %v1961_v39 = vpop.permute.xlu1 %1960 }
0x2774   :  { %5218 = vmatmul.mubr.msk.f32.vlgmr.msra.gmra.mxu1 %vm257_vm3, %v1961_v39 }
0x2834   :  { %v2030_v53 = vpop.f32.mrf.mxu1 }
0x2835   :  { %v2031_v57 = vadd.f32 %v6426_v54, %v2030_v53 }
0x2836   :  { %v5219_v60 = vpop.f32.mrf.mxu1 }
0x2837   :  { %v2035_v62 = vrot.slane %v2031_v57, 4  ;;  %v2295_v60 = vld [vmem:[%s7203_s11 + $0x18] sm:$0xff] }
0x2838   :  { %5231 = vmatprep.subr.mxu1 %v2295_v60 }
0x2839   :  { %2044 = vrot.lane.b32.xlu0 %v2035_v62, %s5752_s7  ;;  %v2037_v63 = vadd.f32 %v2035_v62, %v6133_v56  ;;  %v2294_v62 = vld [vmem:[%s7203_s11 + $0x10] sm:$0xff]  ;;  %5232 = vmatpush3.msra.mxu1 %v2295_v60 }
0x283a   :  { %5233 = vmatprep.subr.mxu1 %v2294_v62 }
0x283b   :  { %v4696_v1 = vmul.f32 -1.442695, %v2037_v63  ;;  %v6490_v63 = vld [vmem:[%s7204_s12 + $0x18] sm:$0xff]  ;;  %5234 = vmatpush3.msra.mxu1 %v2294_v62 }
0x283d   :  { %5598 = vpow2.f32 %v4696_v1  ;;  %v6496_v1 = vld [vmem:[%s7204_s12 + $0x10] sm:$0xff] }
0x284a   :  { %v5599_v2 = vpop.eup %5598 }
0x284b   :  { %v2041_v4 = vadd.f32 1.0, %v5599_v2  ;;  %v2293_v2 = vld [vmem:[%s7203_s11 + $0x8] sm:$0xff] }
0x284c   :  { %5235 = vmatprep.subr.mxu1 %v2293_v2 }
0x284d   :  { %5600 = vrcp.f32 %v2041_v4  ;;  %5236 = vmatpush3.msra.mxu1 %v2293_v2 }
0x285a   :  { %v5601_v6 = vpop.eup %5600 }
0x285b   :  { %v2054_v11 = vsub.f32 1.0, %v5601_v6  ;;  %v2062_v14 = vmul.f32 %v5601_v6, %v2060_v12  ;;  %v6519_v12 = vld [vmem:[%s7204_s12] sm:$0xff] }
0x28ab   :  { %v2045_v59 = vpop.permute.xlu0 %2044 }
0x28ac   :  { %v2047_v7 = vmul.f32 %v5601_v6, %v2045_v59  ;;  %v2292_v59 = vld [vmem:[%s7203_s11] sm:$0xff] }
0x28ad   :  { %5237 = vmatprep.subr.mxu1 %v2292_v59 }
0x28ae   :  { %2049 = vrot.lane.b32.xlu1 %v2047_v7, %s5752_s7  ;;  %5238 = vmatpush3.msra.mxu1 %v2292_v59 }
0x28af   :  { %5256 = vmatprep.subr.mxu1 %v5750_v35 }
0x2920   :  { %v2050_v8 = vpop.permute.xlu1 %2049 }
0x2921   :  { %v2052_v9 = vadd.f32 %v2050_v8, %v6133_v56 }
0x2923   :  { %5602 = vtanh.f32 %v2052_v9 }
0x2930   :  { %v5603_v10 = vpop.eup %5602 }
0x2931   :  { %2056 = vrot.lane.b32.xlu0 %v5603_v10, %s5753_s23 }
0x2935   :  { %2187 = vrot.lane.b32.xlu0 %v6212_v40, %s5753_s23 }
0x29a3   :  { %v2057_v13 = vpop.permute.xlu0 %2056 }
0x29a4   :  { %v2059_v15 = vmul.f32 %v2057_v13, %v2054_v11  ;;  %v6512_v11 = vld [vmem:[%s7204_s12 + $0x8] sm:$0xff] }
0x29a6   :  { %v6436_v16 = vadd.f32 %v2062_v14, %v2059_v15 }
0x29a7   :  { %v2188_v17 = vpop.permute.xlu0 %2187 }
0x29a8   :  { %v2199_v19 = vsel %vm257_vm3, %v2188_v17, 0.0  ;;  %v2065_v20 = vrot.slane %v6436_v16, 4  ;;  %v6444_v21 = vsel %vm2171_vm6, %v2180_v18, %v6436_v16 }
0x29a9   :  { %2200 = vadd.xlane.f32.xlu0 %v2199_v19 }
0x29aa   :  { %2066 = vrot.lane.b32.xlu1 %v2065_v20, %s5753_s23 }
0x29ae   :  { %2189 = vrot.lane.b32.xlu1 %v6294_v22, %s5753_s23 }
0x2a1c   :  { %v2067_v23 = vpop.permute.xlu1 %2066 }
0x2a1d   :  { %5229 = vmatmul.mubr.msk.f32.vlgmr.msra.gmra.mxu0 %vm257_vm3, %v2067_v23 }
0x2a1e   :  { %5253 = vmatprep.mubr.msk.f32.mxu0 %vm5751_vm5, %v5750_v35  ;;  %5246 = vmatpush3.msra.mxu0 %v6490_v63 }
0x2a1f   :  { %5247 = vmatprep.subr.mxu0 %v5750_v35 }
0x2a20   :  { %v2190_v52 = vpop.permute.xlu1 %2189  ;;  %5248 = vmatpush3.msra.mxu0 %v6496_v1 }
0x2a21   :  { %v2202_v24 = vsel %vm257_vm3, %v2190_v52, 0.0  ;;  %5249 = vmatprep.subr.mxu0 %v5750_v35 }
0x2a22   :  { %2203 = vadd.xlane.f32.xlu1 %v2202_v24  ;;  %5250 = vmatpush3.msra.mxu0 %v6512_v11 }
0x2a23   :  { %5251 = vmatprep.subr.mxu0 %v5750_v35 }
0x2a24   :  { %5252 = vmatpush3.msra.mxu0 %v6519_v12 }
0x2a25   :  { %5254 = vmatmul.mubr.f32.vlgmr.msra.gmra.mxu0 %v5750_v35  ;;  %5267 = vmatprep.subr.mxu0 %v5750_v35 }
0x2a26   :  { %5268 = vmatpush3.msra.mxu0 %v6490_v63  ;;  %5275 = vmatprep.mubr.msk.f32.mxu0 %vm5751_vm5, %v5750_v35 }
0x2a27   :  { %5269 = vmatprep.subr.mxu0 %v5750_v35 }
0x2a28   :  { %5270 = vmatpush3.msra.mxu0 %v6496_v1 }
0x2a29   :  { %5271 = vmatprep.subr.mxu0 %v5750_v35 }
0x2a2a   :  { %5272 = vmatpush3.msra.mxu0 %v6512_v11 }
0x2a2b   :  { %5273 = vmatprep.subr.mxu0 %v5750_v35 }
0x2a2c   :  { %5274 = vmatpush3.msra.mxu0 %v6519_v12 }
0x2a2d   :  { %5289 = vmatprep.subr.mxu0 %v5750_v35 }
0x2a32   :  { %v2201_v25 = vpop.xlane.xlu0 %2200 }
0x2a33   :  { %v2212_v26 = vmul.f32 0.03125, %v2201_v25 }
0x2a35   :  { %v2216_v27 = vsub.f32 %v6212_v40, %v2212_v26  ;;  %v4699_v40 = vld [vmem:[%s7201_s9] ss:$0 sm:$0xff]  ;;  %s5755_s9 = smov 80  }
0x2a37   :  { %v2220_v28 = vmul.f32 %v2216_v27, %v2216_v27 }
0x2a39   :  { %2228 = vrot.lane.b32.xlu0 %v2220_v28, %s5753_s23  ;;  %v2166_v28 = vrot.slane %v6436_v16, 6  ;;  %v6563_v16 = vld [vmem:[%s7205_s14] ss:$0 sm:$0xff] }
0x2aab   :  { %v2204_v29 = vpop.xlane.xlu1 %2203  ;;  %v2229_v30 = vpop.permute.xlu0 %2228 }
0x2aac   :  { %v2213_v31 = vmul.f32 0.03125, %v2204_v29  ;;  %v2240_v32 = vsel %vm257_vm3, %v2229_v30, 0.0 }
0x2aad   :  { %2241 = vadd.xlane.f32.xlu0 %v2240_v32 }
0x2aae   :  { %v6457_v33 = vsub.f32 %v6294_v22, %v2213_v31 }
0x2ab0   :  { %v2221_v34 = vmul.f32 %v6457_v33, %v6457_v33 }
0x2ab2   :  { %2230 = vrot.lane.b32.xlu1 %v2221_v34, %s5753_s23 }
0x2ac3   :  { %2273 = vrot.lane.b32.xlu0 %v4699_v40, %s5749_s27 }
0x2ac7   :  { %2285 = vrot.lane.b32.xlu0 %v4700_v41, %s5749_s27 }
0x2add   :  { %v2136_v0 = vpop.f32.mrf.mxu0 }
0x2ade   :  { %v2137_v36 = vadd.f32 %v6426_v54, %v2136_v0 }
0x2adf   :  { %v5230_v22 = vpop.f32.mrf.mxu0 }
0x2ae0   :  { %v2141_v44 = vrot.slane %v2137_v36, 2 }
0x2ae2   :  { %v2143_v39 = vadd.f32 %v2141_v44, %v6133_v56 }
0x2ae4   :  { %v4698_v53 = vmul.f32 -1.442695, %v2143_v39 }
0x2b24   :  { %v2231_v42 = vpop.permute.xlu1 %2230 }
0x2b25   :  { %v2243_v43 = vsel %vm257_vm3, %v2231_v42, 0.0 }
0x2b26   :  { %2244 = vadd.xlane.f32.xlu1 %v2243_v43 }
0x2b36   :  { %v2242_v45 = vpop.xlane.xlu0 %2241 }
0x2b37   :  { %v2252_v58 = vmul.f32 0.03125, %v2242_v45  ;;  %2150 = vrot.lane.b32.xlu1 %v2141_v44, %s5752_s7 }
0x2b39   :  { %v2256_v46 = vadd.f32 1e-05, %v2252_v58 }
0x2b3a   :  { %v6473_v37 = vpop.permute.xlu0 %2273 }
0x2b3b   :  { %5604 = vrsqrt.f32 %v2256_v46 }
0x2b3c   :  { %5606 = vpow2.f32 %v4698_v53 }
0x2b3e   :  { %v6475_v38 = vpop.permute.xlu0 %2285 }
0x2b48   :  { %v5605_v47 = vpop.eup %5604 }
0x2b49   :  { %v2264_v48 = vmul.f32 %v5605_v47, %v2216_v27  ;;  %v5607_v54 = vpop.eup %5606 }
0x2b4a   :  { %v2147_v57 = vadd.f32 1.0, %v5607_v54 }
0x2b4b   :  { %v2276_v49 = vmul.f32 %v6473_v37, %v2264_v48 }
0x2b4c   :  { %5608 = vrcp.f32 %v2147_v57 }
0x2b4d   :  { %v2288_v50 = vadd.f32 %v6475_v38, %v2276_v49 }
0x2b4f   :  { %2314 = vrot.lane.b32.xlu0 %v2288_v50, %s5753_s23 }
0x2b59   :  { %v5609_v8 = vpop.eup %5608 }
0x2b5a   :  { %v2160_v27 = vsub.f32 1.0, %v5609_v8  ;;  %v2168_v30 = vmul.f32 %v5609_v8, %v2166_v28 }
0x2baf   :  { %v2245_v4 = vpop.xlane.xlu1 %2244 }
0x2bb0   :  { %v2253_v6 = vmul.f32 0.03125, %v2245_v4 }
0x2bb2   :  { %v2257_v7 = vadd.f32 1e-05, %v2253_v6 }
0x2bb3   :  { %v2151_v9 = vpop.permute.xlu1 %2150 }
0x2bb4   :  { %5610 = vrsqrt.f32 %v2257_v7  ;;  %v2153_v10 = vmul.f32 %v5609_v8, %v2151_v9 }
0x2bb6   :  { %2155 = vrot.lane.b32.xlu1 %v2153_v10, %s5752_s7 }
0x2bc1   :  { %v5611_v13 = vpop.eup %5610  ;;  %v2315_v14 = vpop.permute.xlu0 %2314 }
0x2bc2   :  { %5239 = vmatprep.mubr.msk.f32.mxu1 %vm257_vm3, %v2315_v14  ;;  %v2265_v15 = vmul.f32 %v5611_v13, %v6457_v33 }
0x2bc4   :  { %v2277_v17 = vmul.f32 %v6473_v37, %v2265_v15 }
0x2bc6   :  { %v2289_v18 = vadd.f32 %v6475_v38, %v2277_v17 }
0x2bc8   :  { %2316 = vrot.lane.b32.xlu1 %v2289_v18, %s5753_s23 }
0x2bcc   :  { %2191 = vrot.lane.b32.xlu1 %v6376_v5, %s5753_s23 }
0x2c28   :  { %v2156_v19 = vpop.permute.xlu1 %2155 }
0x2c29   :  { %v2158_v20 = vadd.f32 %v2156_v19, %v6133_v56  ;;  %v2487_v56 = vpop.f32.mrf.mxu0 }
0x2c2b   :  { %5612 = vtanh.f32 %v2158_v20  ;;  %v5255_v26 = vpop.f32.mrf.mxu0 }
0x2c38   :  { %v5613_v23 = vpop.eup %5612 }
0x2c39   :  { %2162 = vrot.lane.b32.xlu0 %v5613_v23, %s5753_s23 }
0x2c3a   :  { %v2317_v52 = vpop.permute.xlu1 %2316 }
0x2c3b   :  { %5240 = vmatmul.mubr.msk.f32.vlgmr.msra.gmra.mxu1 %vm257_vm3, %v2317_v52 }
0x2c3c   :  { %5257 = vmatpush3.msra.mxu1 %v6490_v63 }
0x2c3d   :  { %5258 = vmatprep.subr.mxu1 %v5750_v35 }
0x2c3e   :  { %v2192_v24 = vpop.permute.xlu1 %2191  ;;  %5259 = vmatpush3.msra.mxu1 %v6496_v1 }
0x2c3f   :  { %v2205_v25 = vsel %vm257_vm3, %v2192_v24, 0.0  ;;  %5260 = vmatprep.subr.mxu1 %v5750_v35 }
0x2c40   :  { %2206 = vadd.xlane.f32.xlu1 %v2205_v25  ;;  %5261 = vmatpush3.msra.mxu1 %v6512_v11 }
0x2c41   :  { %5262 = vmatprep.subr.mxu1 %v5750_v35 }
0x2c42   :  { %5263 = vmatpush3.msra.mxu1 %v6519_v12 }
0x2c43   :  { %5278 = vmatprep.subr.mxu1 %v5750_v35 }
0x2cab   :  { %v2163_v29 = vpop.permute.xlu0 %2162 }
0x2cac   :  { %v2165_v31 = vmul.f32 %v2163_v29, %v2160_v27 }
0x2cae   :  { %v2169_v32 = vadd.f32 %v2168_v30, %v2165_v31 }
0x2cb0   :  { %v2182_v33 = vsel %vm217_vm0, %v6444_v21, %v2169_v32  ;;  %v2488_v21 = vadd.f32 %v6563_v16, %v2487_v56 }
0x2cb1   :  { %2193 = vrot.lane.b32.xlu0 %v2182_v33, %s5753_s23 }
0x2cc9   :  { %v2207_v34 = vpop.xlane.xlu1 %2206 }
0x2cca   :  { %v2214_v40 = vmul.f32 0.03125, %v2207_v34 }
0x2ccc   :  { %v2218_v41 = vsub.f32 %v6376_v5, %v2214_v40  ;;  %v6572_v5 = vld [vmem:[%s7206_s13] ss:$0 sm:$0xff] }
0x2cce   :  { %v2222_v0 = vmul.f32 %v2218_v41, %v2218_v41 }
0x2cd0   :  { %2232 = vrot.lane.b32.xlu1 %v2222_v0, %s5753_s23 }
0x2cfb   :  { %v6567_v43 = vpop.f32.mrf.mxu1 }
0x2cfd   :  { %v2396_v36 = vpop.f32.mrf.mxu1 }
0x2cfe   :  { %v6575_v44 = vadd.f32 %v6572_v5, %v2396_v36 }
0x2d00   :  { %v2491_v45 = vadd.f32 %v2488_v21, %v6575_v44 }
0x2d02   :  { %v4707_v58 = vmul.f32 -1.442695, %v2491_v45 }
0x2d04   :  { %5614 = vpow2.f32 %v4707_v58 }
0x2d11   :  { %v5615_v46 = vpop.eup %5614 }
0x2d12   :  { %v2495_v47 = vadd.f32 1.0, %v5615_v46 }
0x2d14   :  { %5616 = vrcp.f32 %v2495_v47 }
0x2d21   :  { %v5617_v39 = vpop.eup %5616 }
0x2d22   :  { %v2509_v23 = vsub.f32 1.0, %v5617_v39  ;;  %v2515_v24 = vmul.f32 0.0, %v5617_v39 }
0x2d23   :  { %v2194_v22 = vpop.permute.xlu0 %2193 }
0x2d24   :  { %v2208_v42 = vsel %vm257_vm3, %v2194_v22, 0.0 }
0x2d25   :  { %2209 = vadd.xlane.f32.xlu0 %v2208_v42 }
0x2d3b   :  { %2499 = vrot.lane.b32.xlu0 %v2488_v21, %s5752_s7 }
0x2d42   :  { %v2233_v60 = vpop.permute.xlu1 %2232 }
0x2d43   :  { %v2246_v62 = vsel %vm257_vm3, %v2233_v60, 0.0 }
0x2dae   :  { %v2210_v48 = vpop.xlane.xlu0 %2209 }
0x2daf   :  { %v2215_v49 = vmul.f32 0.03125, %v2210_v48 }
0x2db1   :  { %v2219_v50 = vsub.f32 %v2182_v33, %v2215_v49 }
0x2db2   :  { %v2500_v53 = vpop.permute.xlu0 %2499 }
0x2db3   :  { %v2502_v54 = vmul.f32 %v5617_v39, %v2500_v53  ;;  %v2223_v57 = vmul.f32 %v2219_v50, %v2219_v50 }
0x2db5   :  { %2234 = vrot.lane.b32.xlu1 %v2223_v57, %s5753_s23  ;;  %2504 = vrot.lane.b32.xlu0 %v2502_v54, %s5752_s7 }
0x2dd9   :  { %2247 = vadd.xlane.f32.xlu1 %v2246_v62 }
0x2e27   :  { %v2235_v2 = vpop.permute.xlu1 %2234  ;;  %v2505_v6 = vpop.permute.xlu0 %2504 }
0x2e28   :  { %v2249_v4 = vsel %vm257_vm3, %v2235_v2, 0.0  ;;  %v2507_v59 = vadd.f32 %v2505_v6, %v6575_v44 }
0x2e29   :  { %2250 = vadd.xlane.f32.xlu0 %v2249_v4 }
0x2e2a   :  { %5618 = vtanh.f32 %v2507_v59 }
0x2e37   :  { %v5619_v7 = vpop.eup %5618 }
0x2e3f   :  { %2511 = vrot.lane.b32.xlu0 %v5619_v7, %s5753_s23 }
0x2e62   :  { %v2248_v8 = vpop.xlane.xlu1 %2247 }
0x2e63   :  { %v2254_v9 = vmul.f32 0.03125, %v2248_v8 }
0x2e65   :  { %v2258_v10 = vadd.f32 1e-05, %v2254_v9 }
0x2e67   :  { %5620 = vrsqrt.f32 %v2258_v10 }
0x2e74   :  { %v5621_v13 = vpop.eup %5620 }
0x2e75   :  { %v2266_v14 = vmul.f32 %v5621_v13, %v2218_v41 }
0x2e77   :  { %v2278_v15 = vmul.f32 %v6473_v37, %v2266_v14 }
0x2e79   :  { %v2290_v17 = vadd.f32 %v6475_v38, %v2278_v15 }
0x2e7b   :  { %2318 = vrot.lane.b32.xlu1 %v2290_v17, %s5753_s23 }
0x2eb2   :  { %v2251_v18 = vpop.xlane.xlu0 %2250 }
0x2eb3   :  { %v2255_v19 = vmul.f32 0.03125, %v2251_v18 }
0x2eb5   :  { %v2259_v20 = vadd.f32 1e-05, %v2255_v19 }
0x2eb6   :  { %v2512_v52 = vpop.permute.xlu0 %2511 }
0x2eb7   :  { %5622 = vrsqrt.f32 %v2259_v20  ;;  %v2514_v25 = vmul.f32 %v2512_v52, %v2509_v23 }
0x2eb9   :  { %v6587_v56 = vadd.f32 %v2515_v24, %v2514_v25 }
0x2ebb   :  { %2518 = vrot.lane.b32.xlu0 %v6587_v56, %s5753_s23 }
0x2ec4   :  { %v5623_v26 = vpop.eup %5622 }
0x2ec5   :  { %v2267_v27 = vmul.f32 %v5623_v26, %v2219_v50  ;;  %v2618_v50 = vrot.slane %v6587_v56, 6 }
0x2ec7   :  { %v2279_v28 = vmul.f32 %v6473_v37, %v2267_v27 }
0x2ec9   :  { %v2291_v29 = vadd.f32 %v6475_v38, %v2279_v28 }
0x2ecb   :  { %2320 = vrot.lane.b32.xlu1 %v2291_v29, %s5753_s23 }
0x2eed   :  { %v2319_v30 = vpop.permute.xlu1 %2318 }
0x2eee   :  { %5242 = vmatprep.mubr.msk.f32.mxu1 %vm257_vm3, %v2319_v30 }
0x2f2d   :  { %v2519_v32 = vpop.permute.xlu0 %2518 }
0x2f3d   :  { %v2321_v31 = vpop.permute.xlu1 %2320 }
0x2f3e   :  { %5243 = vmatmul.mubr.msk.f32.gmra.mxu1 %vm257_vm3, %v2321_v31 }
0x2f3f   :  { %5264 = vmatprep.mubr.msk.f32.mxu1 %vm5751_vm5, %v5750_v35 }
0x2f42   :  { %5265 = vmatmul.mubr.msk.f32.vlgmr.msra.gmra.mxu1 %vm257_vm3, %v2519_v32 }
0x2f43   :  { %5279 = vmatpush3.msra.mxu1 %v6490_v63  ;;  %5286 = vmatprep.mubr.msk.f32.mxu1 %vm5751_vm5, %v5750_v35 }
0x2f44   :  { %5280 = vmatprep.subr.mxu1 %v5750_v35 }
0x2f45   :  { %5281 = vmatpush3.msra.mxu1 %v6496_v1 }
0x2f46   :  { %5282 = vmatprep.subr.mxu1 %v5750_v35 }
0x2f47   :  { %5283 = vmatpush3.msra.mxu1 %v6512_v11 }
0x2f48   :  { %5284 = vmatprep.subr.mxu1 %v5750_v35 }
0x2f49   :  { %5285 = vmatpush3.msra.mxu1 %v6519_v12 }
0x2f4a   :  { %5300 = vmatprep.subr.mxu1 %v5750_v35 }
0x2ffe   :  { %v6609_v37 = vpop.f32.mrf.mxu1 }
0x3000   :  { %v6611_v38 = vpop.f32.mrf.mxu1 }
0x3002   :  { %v2588_v33 = vpop.f32.mrf.mxu1 }
0x3003   :  { %v2589_v34 = vadd.f32 %v6563_v16, %v2588_v33 }
0x3004   :  { %v5266_v40 = vpop.f32.mrf.mxu1 }
0x3005   :  { %v2593_v41 = vrot.slane %v2589_v34, 6 }
0x3007   :  { %2602 = vrot.lane.b32.xlu1 %v2593_v41, %s5752_s7  ;;  %v2595_v0 = vadd.f32 %v2593_v41, %v6575_v44 }
0x3009   :  { %v4709_v22 = vmul.f32 -1.442695, %v2595_v0 }
0x300b   :  { %5624 = vpow2.f32 %v4709_v22 }
0x3018   :  { %v5625_v42 = vpop.eup %5624 }
0x3019   :  { %v2599_v21 = vadd.f32 1.0, %v5625_v42 }
0x301b   :  { %5626 = vrcp.f32 %v2599_v21 }
0x3028   :  { %v5627_v36 = vpop.eup %5626 }
0x3029   :  { %v2612_v49 = vsub.f32 1.0, %v5627_v36  ;;  %v2620_v54 = vmul.f32 %v5627_v36, %v2618_v50 }
0x3079   :  { %v2603_v45 = vpop.permute.xlu1 %2602 }
0x307a   :  { %v2605_v58 = vmul.f32 %v5627_v36, %v2603_v45 }
0x307c   :  { %2607 = vrot.lane.b32.xlu0 %v2605_v58, %s5752_s7 }
0x30ee   :  { %v2608_v46 = vpop.permute.xlu0 %2607 }
0x30ef   :  { %v2610_v47 = vadd.f32 %v2608_v46, %v6575_v44 }
0x30f1   :  { %5628 = vtanh.f32 %v2610_v47 }
0x30fe   :  { %v5629_v48 = vpop.eup %5628 }
0x30ff   :  { %2614 = vrot.lane.b32.xlu1 %v5629_v48, %s5753_s23 }
0x3171   :  { %v2615_v39 = vpop.permute.xlu1 %2614 }
0x3172   :  { %v2617_v53 = vmul.f32 %v2615_v39, %v2612_v49 }
0x3174   :  { %v2621_v57 = vadd.f32 %v2620_v54, %v2617_v53 }
0x3176   :  { %v2623_v60 = vrot.slane %v2621_v57, 2  ;;  %v2724_v23 = vrot.slane %v2621_v57, 6  ;;  %v4094_v27 = vsel %vm204_vm1, %v6587_v56, %v2621_v57 }
0x3178   :  { %2624 = vrot.lane.b32.xlu0 %v2623_v60, %s5753_s23 }
0x31ea   :  { %v2625_v62 = vpop.permute.xlu0 %2624 }
0x31eb   :  { %5276 = vmatmul.mubr.msk.f32.vlgmr.msra.gmra.mxu0 %vm257_vm3, %v2625_v62 }
0x31ec   :  { %5290 = vmatpush3.msra.mxu0 %v6490_v63  ;;  %5297 = vmatprep.mubr.msk.f32.mxu0 %vm5751_vm5, %v5750_v35 }
0x31ed   :  { %5291 = vmatprep.subr.mxu0 %v5750_v35 }
0x31ee   :  { %5292 = vmatpush3.msra.mxu0 %v6496_v1 }
0x31ef   :  { %5293 = vmatprep.subr.mxu0 %v5750_v35 }
0x31f0   :  { %5294 = vmatpush3.msra.mxu0 %v6512_v11 }
0x31f1   :  { %5295 = vmatprep.subr.mxu0 %v5750_v35 }
0x31f2   :  { %5296 = vmatpush3.msra.mxu0 %v6519_v12 }
0x31f3   :  { %5311 = vmatprep.subr.mxu0 %v5750_v35 }
0x32ab   :  { %v2694_v2 = vpop.f32.mrf.mxu0 }
0x32ac   :  { %v2695_v4 = vadd.f32 %v6563_v16, %v2694_v2  ;;  %v6678_v2 = vadd.f32 %v6567_v43, %v6572_v5 }
0x32ad   :  { %v5277_v6 = vpop.f32.mrf.mxu0 }
0x32ae   :  { %v2699_v59 = vrot.slane %v2695_v4, 4 }
0x32b0   :  { %2708 = vrot.lane.b32.xlu1 %v2699_v59, %s5752_s7  ;;  %v2701_v7 = vadd.f32 %v2699_v59, %v6575_v44 }
0x32b2   :  { %v4711_v8 = vmul.f32 -1.442695, %v2701_v7 }
0x32b4   :  { %5630 = vpow2.f32 %v4711_v8 }
0x32c1   :  { %v5631_v9 = vpop.eup %5630 }
0x32c2   :  { %v2705_v10 = vadd.f32 1.0, %v5631_v9 }
0x32c4   :  { %5632 = vrcp.f32 %v2705_v10 }
0x32d1   :  { %v5633_v13 = vpop.eup %5632 }
0x32d2   :  { %v2718_v20 = vsub.f32 1.0, %v5633_v13  ;;  %v2726_v24 = vmul.f32 %v5633_v13, %v2724_v23 }
0x3322   :  { %v2709_v14 = vpop.permute.xlu1 %2708 }
0x3323   :  { %v2711_v15 = vmul.f32 %v5633_v13, %v2709_v14 }
0x3325   :  { %2713 = vrot.lane.b32.xlu0 %v2711_v15, %s5752_s7 }
0x3397   :  { %v2714_v17 = vpop.permute.xlu0 %2713 }
0x3398   :  { %v2716_v18 = vadd.f32 %v2714_v17, %v6575_v44 }
0x339a   :  { %5634 = vtanh.f32 %v2716_v18 }
0x33a7   :  { %v5635_v19 = vpop.eup %5634 }
0x33a8   :  { %2720 = vrot.lane.b32.xlu1 %v5635_v19, %s5753_s23 }
0x341a   :  { %v2721_v52 = vpop.permute.xlu1 %2720 }
0x341b   :  { %v2723_v25 = vmul.f32 %v2721_v52, %v2718_v20 }
0x341d   :  { %v2727_v26 = vadd.f32 %v2726_v24, %v2723_v25 }
0x341f   :  { %v2729_v28 = vrot.slane %v2727_v26, 4  ;;  %v4095_v29 = vsel %vm2171_vm6, %v4094_v27, %v2727_v26  ;;  %v2830_v47 = vrot.slane %v2727_v26, 6 }
0x3421   :  { %2730 = vrot.lane.b32.xlu0 %v2729_v28, %s5753_s23 }
0x3493   :  { %v2731_v30 = vpop.permute.xlu0 %2730 }
0x3494   :  { %5287 = vmatmul.mubr.msk.f32.vlgmr.msra.gmra.mxu1 %vm257_vm3, %v2731_v30 }
0x3495   :  { %5301 = vmatpush3.msra.mxu1 %v6490_v63  ;;  %5308 = vmatprep.mubr.msk.f32.mxu1 %vm5751_vm5, %v5750_v35 }
0x3496   :  { %5302 = vmatprep.subr.mxu1 %v5750_v35 }
0x3497   :  { %5303 = vmatpush3.msra.mxu1 %v6496_v1 }
0x3498   :  { %5304 = vmatprep.subr.mxu1 %v5750_v35 }
0x3499   :  { %5305 = vmatpush3.msra.mxu1 %v6512_v11 }
0x349a   :  { %5306 = vmatprep.subr.mxu1 %v5750_v35 }
0x349b   :  { %5307 = vmatpush3.msra.mxu1 %v6519_v12 }
0x349c   :  { %5322 = vmatprep.subr.mxu1 %v5750_v35 }
0x3554   :  { %v2800_v56 = vpop.f32.mrf.mxu1 }
0x3555   :  { %v2801_v31 = vadd.f32 %v6563_v16, %v2800_v56 }
0x3556   :  { %v5288_v32 = vpop.f32.mrf.mxu1 }
0x3557   :  { %v2805_v33 = vrot.slane %v2801_v31, 2 }
0x3559   :  { %2814 = vrot.lane.b32.xlu1 %v2805_v33, %s5752_s7  ;;  %v2807_v34 = vadd.f32 %v2805_v33, %v6575_v44 }
0x355b   :  { %v4713_v40 = vmul.f32 -1.442695, %v2807_v34 }
0x355d   :  { %5636 = vpow2.f32 %v4713_v40 }
0x356a   :  { %v5637_v41 = vpop.eup %5636 }
0x356b   :  { %v2811_v0 = vadd.f32 1.0, %v5637_v41 }
0x356d   :  { %5638 = vrcp.f32 %v2811_v0 }
0x357a   :  { %v5639_v22 = vpop.eup %5638 }
0x357b   :  { %v2824_v46 = vsub.f32 1.0, %v5639_v22  ;;  %v2832_v49 = vmul.f32 %v5639_v22, %v2830_v47 }
0x35cb   :  { %v2815_v42 = vpop.permute.xlu1 %2814 }
0x35cc   :  { %v2817_v21 = vmul.f32 %v5639_v22, %v2815_v42 }
0x35ce   :  { %2819 = vrot.lane.b32.xlu0 %v2817_v21, %s5752_s7 }
0x3640   :  { %v2820_v36 = vpop.permute.xlu0 %2819 }
0x3641   :  { %v2822_v45 = vadd.f32 %v2820_v36, %v6575_v44 }
0x3643   :  { %5640 = vtanh.f32 %v2822_v45 }
0x3650   :  { %v5641_v58 = vpop.eup %5640 }
0x3651   :  { %2826 = vrot.lane.b32.xlu1 %v5641_v58, %s5753_s23 }
0x36c3   :  { %v2827_v48 = vpop.permute.xlu1 %2826 }
0x36c4   :  { %v2829_v50 = vmul.f32 %v2827_v48, %v2824_v46 }
0x36c6   :  { %v2833_v39 = vadd.f32 %v2832_v49, %v2829_v50 }
0x36c8   :  { %v2835_v53 = vrot.slane %v2833_v39, 6  ;;  %v6660_v54 = vsel %vm217_vm0, %v4095_v29, %v2833_v39 }
0x36ca   :  { %2836 = vrot.lane.b32.xlu0 %v2835_v53, %s5753_s23 }
0x373c   :  { %v2837_v57 = vpop.permute.xlu0 %2836 }
0x373d   :  { %5298 = vmatmul.mubr.msk.f32.vlgmr.msra.gmra.mxu0 %vm257_vm3, %v2837_v57 }
0x373e   :  { %5312 = vmatpush3.msra.mxu0 %v6490_v63  ;;  %5319 = vmatprep.mubr.msk.f32.mxu0 %vm5751_vm5, %v5750_v35 }
0x373f   :  { %5313 = vmatprep.subr.mxu0 %v5750_v35 }
0x3740   :  { %5314 = vmatpush3.msra.mxu0 %v6496_v1 }
0x3741   :  { %5315 = vmatprep.subr.mxu0 %v5750_v35 }
0x3742   :  { %5316 = vmatpush3.msra.mxu0 %v6512_v11 }
0x3743   :  { %5317 = vmatprep.subr.mxu0 %v5750_v35 }
0x3744   :  { %5318 = vmatpush3.msra.mxu0 %v6519_v12 }
0x3745   :  { %5333 = vmatprep.subr.mxu0 %v5750_v35 }
0x37fd   :  { %v2906_v44 = vpop.f32.mrf.mxu0 }
0x37fe   :  { %v2907_v60 = vadd.f32 %v6563_v16, %v2906_v44 }
0x37ff   :  { %v5299_v62 = vpop.f32.mrf.mxu0 }
0x3800   :  { %2918 = vrot.lane.b32.xlu1 %v2907_v60, %s5752_s7  ;;  %v2910_v4 = vadd.f32 %v2907_v60, %v6678_v2 }
0x3802   :  { %v4715_v6 = vmul.f32 -1.442695, %v2910_v4 }
0x3804   :  { %5642 = vpow2.f32 %v4715_v6 }
0x3811   :  { %v5643_v59 = vpop.eup %5642 }
0x3812   :  { %v2914_v7 = vadd.f32 1.0, %v5643_v59 }
0x3814   :  { %5644 = vrcp.f32 %v2914_v7 }
0x3821   :  { %v5645_v8 = vpop.eup %5644 }
0x3822   :  { %v2928_v43 = vsub.f32 1.0, %v5645_v8  ;;  %v2935_v18 = vmul.f32 %v5645_v8, %v2835_v53 }
0x3872   :  { %v2919_v9 = vpop.permute.xlu1 %2918 }
0x3873   :  { %v2921_v10 = vmul.f32 %v5645_v8, %v2919_v9 }
0x3875   :  { %2923 = vrot.lane.b32.xlu0 %v2921_v10, %s5752_s7 }
0x38e7   :  { %v2924_v13 = vpop.permute.xlu0 %2923 }
0x38e8   :  { %v2926_v14 = vadd.f32 %v2924_v13, %v6678_v2 }
0x38ea   :  { %5646 = vtanh.f32 %v2926_v14 }
0x38f7   :  { %v5647_v15 = vpop.eup %5646 }
0x38f8   :  { %2930 = vrot.lane.b32.xlu1 %v5647_v15, %s5753_s23 }
0x396a   :  { %v2931_v17 = vpop.permute.xlu1 %2930 }
0x396b   :  { %v2933_v19 = vmul.f32 %v2931_v17, %v2928_v43 }
0x396d   :  { %v6684_v20 = vadd.f32 %v2935_v18, %v2933_v19 }
0x396f   :  { %2938 = vrot.lane.b32.xlu0 %v6684_v20, %s5753_s23  ;;  %v3038_v0 = vrot.slane %v6684_v20, 6 }
0x39e1   :  { %v2939_v23 = vpop.permute.xlu0 %2938 }
0x39e2   :  { %5309 = vmatmul.mubr.msk.f32.vlgmr.msra.gmra.mxu1 %vm257_vm3, %v2939_v23 }
0x39e3   :  { %5323 = vmatpush3.msra.mxu1 %v6490_v63  ;;  %5330 = vmatprep.mubr.msk.f32.mxu1 %vm5751_vm5, %v5750_v35 }
0x39e4   :  { %5324 = vmatprep.subr.mxu1 %v5750_v35 }
0x39e5   :  { %5325 = vmatpush3.msra.mxu1 %v6496_v1 }
0x39e6   :  { %5326 = vmatprep.subr.mxu1 %v5750_v35 }
0x39e7   :  { %5327 = vmatpush3.msra.mxu1 %v6512_v11 }
0x39e8   :  { %5328 = vmatprep.subr.mxu1 %v5750_v35 }
0x39e9   :  { %5329 = vmatpush3.msra.mxu1 %v6519_v12 }
0x39ea   :  { %5344 = vmatprep.subr.mxu1 %v5750_v35 }
0x3aa2   :  { %v3008_v52 = vpop.f32.mrf.mxu1 }
0x3aa3   :  { %v3009_v24 = vadd.f32 %v6563_v16, %v3008_v52 }
0x3aa4   :  { %v5310_v25 = vpop.f32.mrf.mxu1 }
0x3aa5   :  { %v3013_v26 = vrot.slane %v3009_v24, 6 }
0x3aa7   :  { %3022 = vrot.lane.b32.xlu1 %v3013_v26, %s5752_s7  ;;  %v3015_v27 = vadd.f32 %v3013_v26, %v6678_v2 }
0x3aa9   :  { %v4717_v28 = vmul.f32 -1.442695, %v3015_v27 }
0x3aab   :  { %5648 = vpow2.f32 %v4717_v28 }
0x3ab8   :  { %v5649_v29 = vpop.eup %5648 }
0x3ab9   :  { %v3019_v30 = vadd.f32 1.0, %v5649_v29 }
0x3abb   :  { %5650 = vrcp.f32 %v3019_v30 }
0x3ac8   :  { %v5651_v56 = vpop.eup %5650 }
0x3ac9   :  { %v3032_v41 = vsub.f32 1.0, %v5651_v56  ;;  %v3040_v21 = vmul.f32 %v5651_v56, %v3038_v0 }
0x3b19   :  { %v3023_v31 = vpop.permute.xlu1 %3022 }
0x3b1a   :  { %v3025_v32 = vmul.f32 %v5651_v56, %v3023_v31 }
0x3b1c   :  { %3027 = vrot.lane.b32.xlu0 %v3025_v32, %s5752_s7 }
0x3b8e   :  { %v3028_v33 = vpop.permute.xlu0 %3027 }
0x3b8f   :  { %v3030_v34 = vadd.f32 %v3028_v33, %v6678_v2 }
0x3b91   :  { %5652 = vtanh.f32 %v3030_v34 }
0x3b9e   :  { %v5653_v40 = vpop.eup %5652 }
0x3b9f   :  { %3034 = vrot.lane.b32.xlu1 %v5653_v40, %s5753_s23 }
0x3c11   :  { %v3035_v22 = vpop.permute.xlu1 %3034 }
0x3c12   :  { %v3037_v42 = vmul.f32 %v3035_v22, %v3032_v41 }
0x3c14   :  { %v3041_v36 = vadd.f32 %v3040_v21, %v3037_v42 }
0x3c16   :  { %v3043_v45 = vrot.slane %v3041_v36, 2  ;;  %v3144_v8 = vrot.slane %v3041_v36, 6  ;;  %v4097_v15 = vsel %vm204_vm1, %v6684_v20, %v3041_v36 }
0x3c18   :  { %3044 = vrot.lane.b32.xlu0 %v3043_v45, %s5753_s23 }
0x3c8a   :  { %v3045_v58 = vpop.permute.xlu0 %3044 }
0x3c8b   :  { %5320 = vmatmul.mubr.msk.f32.vlgmr.msra.gmra.mxu0 %vm257_vm3, %v3045_v58 }
0x3c8c   :  { %5334 = vmatpush3.msra.mxu0 %v6490_v63  ;;  %5341 = vmatprep.mubr.msk.f32.mxu0 %vm5751_vm5, %v5750_v35 }
0x3c8d   :  { %5335 = vmatprep.subr.mxu0 %v5750_v35 }
0x3c8e   :  { %5336 = vmatpush3.msra.mxu0 %v6496_v1 }
0x3c8f   :  { %5337 = vmatprep.subr.mxu0 %v5750_v35 }
0x3c90   :  { %5338 = vmatpush3.msra.mxu0 %v6512_v11 }
0x3c91   :  { %5339 = vmatprep.subr.mxu0 %v5750_v35 }
0x3c92   :  { %5340 = vmatpush3.msra.mxu0 %v6519_v12 }
0x3c93   :  { %5355 = vmatprep.subr.mxu0 %v5750_v35 }
0x3d4b   :  { %v3114_v46 = vpop.f32.mrf.mxu0 }
0x3d4c   :  { %v3115_v47 = vadd.f32 %v6563_v16, %v3114_v46  ;;  %v6764_v46 = vadd.f32 %v6572_v5, %v6611_v38 }
0x3d4d   :  { %v5321_v48 = vpop.f32.mrf.mxu0 }
0x3d4e   :  { %v3119_v49 = vrot.slane %v3115_v47, 4 }
0x3d50   :  { %3128 = vrot.lane.b32.xlu1 %v3119_v49, %s5752_s7  ;;  %v3121_v50 = vadd.f32 %v3119_v49, %v6678_v2 }
0x3d52   :  { %v4719_v39 = vmul.f32 -1.442695, %v3121_v50 }
0x3d54   :  { %5654 = vpow2.f32 %v4719_v39 }
0x3d61   :  { %v5655_v53 = vpop.eup %5654 }
0x3d62   :  { %v3125_v57 = vadd.f32 1.0, %v5655_v53 }
0x3d64   :  { %5656 = vrcp.f32 %v3125_v57 }
0x3d71   :  { %v5657_v44 = vpop.eup %5656 }
0x3d72   :  { %v3138_v7 = vsub.f32 1.0, %v5657_v44  ;;  %v3146_v10 = vmul.f32 %v5657_v44, %v3144_v8 }
0x3dc2   :  { %v3129_v60 = vpop.permute.xlu1 %3128 }
0x3dc3   :  { %v3131_v62 = vmul.f32 %v5657_v44, %v3129_v60 }
0x3dc5   :  { %3133 = vrot.lane.b32.xlu0 %v3131_v62, %s5752_s7 }
0x3e37   :  { %v3134_v4 = vpop.permute.xlu0 %3133 }
0x3e38   :  { %v3136_v6 = vadd.f32 %v3134_v4, %v6678_v2 }
0x3e3a   :  { %5658 = vtanh.f32 %v3136_v6 }
0x3e47   :  { %v5659_v59 = vpop.eup %5658 }
0x3e48   :  { %3140 = vrot.lane.b32.xlu1 %v5659_v59, %s5753_s23 }
0x3eba   :  { %v3141_v9 = vpop.permute.xlu1 %3140 }
0x3ebb   :  { %v3143_v13 = vmul.f32 %v3141_v9, %v3138_v7 }
0x3ebd   :  { %v3147_v14 = vadd.f32 %v3146_v10, %v3143_v13 }
0x3ebf   :  { %v3149_v43 = vrot.slane %v3147_v14, 4  ;;  %v4098_v17 = vsel %vm2171_vm6, %v4097_v15, %v3147_v14  ;;  %v3250_v34 = vrot.slane %v3147_v14, 6 }
0x3ec1   :  { %3150 = vrot.lane.b32.xlu0 %v3149_v43, %s5753_s23 }
0x3f33   :  { %v3151_v18 = vpop.permute.xlu0 %3150 }
0x3f34   :  { %5331 = vmatmul.mubr.msk.f32.vlgmr.msra.gmra.mxu1 %vm257_vm3, %v3151_v18 }
0x3f35   :  { %5345 = vmatpush3.msra.mxu1 %v6490_v63  ;;  %5352 = vmatprep.mubr.msk.f32.mxu1 %vm5751_vm5, %v5750_v35 }
0x3f36   :  { %5346 = vmatprep.subr.mxu1 %v5750_v35 }
0x3f37   :  { %5347 = vmatpush3.msra.mxu1 %v6496_v1 }
0x3f38   :  { %5348 = vmatprep.subr.mxu1 %v5750_v35 }
0x3f39   :  { %5349 = vmatpush3.msra.mxu1 %v6512_v11 }
0x3f3a   :  { %5350 = vmatprep.subr.mxu1 %v5750_v35 }
0x3f3b   :  { %5351 = vmatpush3.msra.mxu1 %v6519_v12 }
0x3f3c   :  { %5366 = vmatprep.subr.mxu1 %v5750_v35 }
0x3ff4   :  { %v3220_v19 = vpop.f32.mrf.mxu1 }
0x3ff5   :  { %v3221_v20 = vadd.f32 %v6563_v16, %v3220_v19 }
0x3ff6   :  { %v5332_v23 = vpop.f32.mrf.mxu1 }
0x3ff7   :  { %v3225_v52 = vrot.slane %v3221_v20, 2 }
0x3ff9   :  { %3234 = vrot.lane.b32.xlu1 %v3225_v52, %s5752_s7  ;;  %v3227_v24 = vadd.f32 %v3225_v52, %v6678_v2 }
0x3ffb   :  { %v4721_v25 = vmul.f32 -1.442695, %v3227_v24 }
0x3ffd   :  { %5660 = vpow2.f32 %v4721_v25 }
0x400a   :  { %v5661_v26 = vpop.eup %5660 }
0x400b   :  { %v3231_v27 = vadd.f32 1.0, %v5661_v26 }
0x400d   :  { %5662 = vrcp.f32 %v3231_v27 }
0x401a   :  { %v5663_v28 = vpop.eup %5662 }
0x401b   :  { %v3244_v33 = vsub.f32 1.0, %v5663_v28  ;;  %v3252_v41 = vmul.f32 %v5663_v28, %v3250_v34 }
0x406b   :  { %v3235_v29 = vpop.permute.xlu1 %3234 }
0x406c   :  { %v3237_v30 = vmul.f32 %v5663_v28, %v3235_v29 }
0x406e   :  { %3239 = vrot.lane.b32.xlu0 %v3237_v30, %s5752_s7 }
0x40e0   :  { %v3240_v56 = vpop.permute.xlu0 %3239 }
0x40e1   :  { %v3242_v31 = vadd.f32 %v3240_v56, %v6678_v2 }
0x40e3   :  { %5664 = vtanh.f32 %v3242_v31 }
0x40f0   :  { %v5665_v32 = vpop.eup %5664 }
0x40f1   :  { %3246 = vrot.lane.b32.xlu1 %v5665_v32, %s5753_s23 }
0x4163   :  { %v3247_v40 = vpop.permute.xlu1 %3246 }
0x4164   :  { %v3249_v0 = vmul.f32 %v3247_v40, %v3244_v33 }
0x4166   :  { %v3253_v22 = vadd.f32 %v3252_v41, %v3249_v0 }
0x4168   :  { %v3255_v42 = vrot.slane %v3253_v22, 6  ;;  %v6746_v21 = vsel %vm217_vm0, %v4098_v17, %v3253_v22 }
0x416a   :  { %3256 = vrot.lane.b32.xlu0 %v3255_v42, %s5753_s23 }
0x41dc   :  { %v3257_v36 = vpop.permute.xlu0 %3256 }
0x41dd   :  { %5342 = vmatmul.mubr.msk.f32.vlgmr.msra.gmra.mxu0 %vm257_vm3, %v3257_v36 }
0x41de   :  { %5356 = vmatpush3.msra.mxu0 %v6490_v63  ;;  %5363 = vmatprep.mubr.msk.f32.mxu0 %vm5751_vm5, %v5750_v35 }
0x41df   :  { %5357 = vmatprep.subr.mxu0 %v5750_v35 }
0x41e0   :  { %5358 = vmatpush3.msra.mxu0 %v6496_v1 }
0x41e1   :  { %5359 = vmatprep.subr.mxu0 %v5750_v35 }
0x41e2   :  { %5360 = vmatpush3.msra.mxu0 %v6512_v11 }
0x41e3   :  { %5361 = vmatprep.subr.mxu0 %v5750_v35 }
0x41e4   :  { %5362 = vmatpush3.msra.mxu0 %v6519_v12 }
0x41e5   :  { %5377 = vmatprep.subr.mxu0 %v5750_v35 }
0x429d   :  { %v3326_v2 = vpop.f32.mrf.mxu0 }
0x429e   :  { %v3327_v45 = vadd.f32 %v6563_v16, %v3326_v2 }
0x429f   :  { %v5343_v58 = vpop.f32.mrf.mxu0 }
0x42a0   :  { %3338 = vrot.lane.b32.xlu1 %v3327_v45, %s5752_s7  ;;  %v3330_v47 = vadd.f32 %v3327_v45, %v6764_v46 }
0x42a2   :  { %v4723_v48 = vmul.f32 -1.442695, %v3330_v47 }
0x42a4   :  { %5666 = vpow2.f32 %v4723_v48 }
0x42b1   :  { %v5667_v49 = vpop.eup %5666 }
0x42b2   :  { %v3334_v50 = vadd.f32 1.0, %v5667_v49 }
0x42b4   :  { %5668 = vrcp.f32 %v3334_v50 }
0x42c1   :  { %v5669_v39 = vpop.eup %5668 }
0x42c2   :  { %v3348_v38 = vsub.f32 1.0, %v5669_v39  ;;  %v3355_v6 = vmul.f32 %v5669_v39, %v3255_v42 }
0x4312   :  { %v3339_v53 = vpop.permute.xlu1 %3338 }
0x4313   :  { %v3341_v57 = vmul.f32 %v5669_v39, %v3339_v53 }
0x4315   :  { %3343 = vrot.lane.b32.xlu0 %v3341_v57, %s5752_s7 }
0x4387   :  { %v3344_v44 = vpop.permute.xlu0 %3343 }
0x4388   :  { %v3346_v60 = vadd.f32 %v3344_v44, %v6764_v46 }
0x438a   :  { %5670 = vtanh.f32 %v3346_v60 }
0x4397   :  { %v5671_v62 = vpop.eup %5670 }
0x4398   :  { %3350 = vrot.lane.b32.xlu1 %v5671_v62, %s5753_s23  ;;  %v6818_v62 = vld [vmem:[%s7204_s12 + $0x18] sm:$0xff] }
0x440a   :  { %v3351_v4 = vpop.permute.xlu1 %3350 }
0x440b   :  { %v3353_v59 = vmul.f32 %v3351_v4, %v3348_v38  ;;  %v6827_v38 = vld [vmem:[%s7204_s12 + $0x10] sm:$0xff]  ;;  %v6834_v4 = vld [vmem:[%s7204_s12 + $0x8] sm:$0xff] }
0x440d   :  { %v6770_v7 = vadd.f32 %v3355_v6, %v3353_v59  ;;  %v6841_v6 = vld [vmem:[%s7204_s12] sm:$0xff] }
0x440f   :  { %3358 = vrot.lane.b32.xlu0 %v6770_v7, %s5753_s23  ;;  %v3458_v27 = vrot.slane %v6770_v7, 6 }
0x4481   :  { %v3359_v8 = vpop.permute.xlu0 %3358 }
0x4482   :  { %5353 = vmatmul.mubr.msk.f32.vlgmr.msra.gmra.mxu1 %vm257_vm3, %v3359_v8 }
0x4483   :  { %5367 = vmatpush3.msra.mxu1 %v6490_v63  ;;  %5374 = vmatprep.mubr.msk.f32.mxu1 %vm5751_vm5, %v5750_v35 }
0x4484   :  { %5368 = vmatprep.subr.mxu1 %v5750_v35 }
0x4485   :  { %5369 = vmatpush3.msra.mxu1 %v6496_v1 }
0x4486   :  { %5370 = vmatprep.subr.mxu1 %v5750_v35 }
0x4487   :  { %5371 = vmatpush3.msra.mxu1 %v6512_v11 }
0x4488   :  { %5372 = vmatprep.subr.mxu1 %v5750_v35 }
0x4489   :  { %5373 = vmatpush3.msra.mxu1 %v6519_v12 }
0x448a   :  { %5388 = vmatprep.subr.mxu1 %v5750_v35 }
0x4542   :  { %v3428_v9 = vpop.f32.mrf.mxu1 }
0x4543   :  { %v3429_v10 = vadd.f32 %v6563_v16, %v3428_v9 }
0x4544   :  { %v5354_v13 = vpop.f32.mrf.mxu1 }
0x4545   :  { %v3433_v14 = vrot.slane %v3429_v10, 6 }
0x4547   :  { %3442 = vrot.lane.b32.xlu1 %v3433_v14, %s5752_s7  ;;  %v3435_v15 = vadd.f32 %v3433_v14, %v6764_v46 }
0x4549   :  { %v4725_v43 = vmul.f32 -1.442695, %v3435_v15 }
0x454b   :  { %5672 = vpow2.f32 %v4725_v43 }
0x4558   :  { %v5673_v17 = vpop.eup %5672 }
0x4559   :  { %v3439_v18 = vadd.f32 1.0, %v5673_v17 }
0x455b   :  { %5674 = vrcp.f32 %v3439_v18 }
0x4568   :  { %v5675_v19 = vpop.eup %5674 }
0x4569   :  { %v3452_v26 = vsub.f32 1.0, %v5675_v19  ;;  %v3460_v30 = vmul.f32 %v5675_v19, %v3458_v27 }
0x45b9   :  { %v3443_v20 = vpop.permute.xlu1 %3442 }
0x45ba   :  { %v3445_v23 = vmul.f32 %v5675_v19, %v3443_v20 }
0x45bc   :  { %3447 = vrot.lane.b32.xlu0 %v3445_v23, %s5752_s7 }
0x462e   :  { %v3448_v52 = vpop.permute.xlu0 %3447 }
0x462f   :  { %v3450_v24 = vadd.f32 %v3448_v52, %v6764_v46 }
0x4631   :  { %5676 = vtanh.f32 %v3450_v24 }
0x463e   :  { %v5677_v25 = vpop.eup %5676 }
0x463f   :  { %3454 = vrot.lane.b32.xlu1 %v5677_v25, %s5753_s23 }
0x46b1   :  { %v3455_v28 = vpop.permute.xlu1 %3454 }
0x46b2   :  { %v3457_v29 = vmul.f32 %v3455_v28, %v3452_v26 }
0x46b4   :  { %v3461_v56 = vadd.f32 %v3460_v30, %v3457_v29 }
0x46b6   :  { %v3463_v31 = vrot.slane %v3461_v56, 2  ;;  %v3564_v47 = vrot.slane %v3461_v56, 6  ;;  %v4100_v53 = vsel %vm204_vm1, %v6770_v7, %v3461_v56 }
0x46b8   :  { %3464 = vrot.lane.b32.xlu0 %v3463_v31, %s5753_s23 }
0x472a   :  { %v3465_v32 = vpop.permute.xlu0 %3464 }
0x472b   :  { %5364 = vmatmul.mubr.msk.f32.vlgmr.msra.gmra.mxu0 %vm257_vm3, %v3465_v32 }
0x472c   :  { %5378 = vmatpush3.msra.mxu0 %v6490_v63  ;;  %5385 = vmatprep.mubr.msk.f32.mxu0 %vm5751_vm5, %v5750_v35 }
0x472d   :  { %5379 = vmatprep.subr.mxu0 %v5750_v35 }
0x472e   :  { %5380 = vmatpush3.msra.mxu0 %v6496_v1 }
0x472f   :  { %5381 = vmatprep.subr.mxu0 %v5750_v35 }
0x4730   :  { %5382 = vmatpush3.msra.mxu0 %v6512_v11 }
0x4731   :  { %5383 = vmatprep.subr.mxu0 %v5750_v35 }
0x4732   :  { %5384 = vmatpush3.msra.mxu0 %v6519_v12 }
0x4733   :  { %5399 = vmatprep.subr.mxu0 %v5750_v35 }
0x47eb   :  { %v3534_v33 = vpop.f32.mrf.mxu0 }
0x47ec   :  { %v3535_v63 = vadd.f32 %v6563_v16, %v3534_v33  ;;  %v6869_v33 = vadd.f32 %v6609_v37, %v6572_v5 }
0x47ed   :  { %v5365_v34 = vpop.f32.mrf.mxu0 }
0x47ee   :  { %v3539_v40 = vrot.slane %v3535_v63, 4 }
0x47f0   :  { %3548 = vrot.lane.b32.xlu1 %v3539_v40, %s5752_s7  ;;  %v3541_v41 = vadd.f32 %v3539_v40, %v6764_v46 }
0x47f2   :  { %v4727_v1 = vmul.f32 -1.442695, %v3541_v41 }
0x47f4   :  { %5678 = vpow2.f32 %v4727_v1 }
0x4801   :  { %v5679_v0 = vpop.eup %5678 }
0x4802   :  { %v3545_v22 = vadd.f32 1.0, %v5679_v0 }
0x4804   :  { %5680 = vrcp.f32 %v3545_v22 }
0x4811   :  { %v5681_v11 = vpop.eup %5680 }
0x4812   :  { %v3558_v58 = vsub.f32 1.0, %v5681_v11  ;;  %v3566_v49 = vmul.f32 %v5681_v11, %v3564_v47  ;;  %v6892_v47 = vld [vmem:[%s7205_s14] ss:$0 sm:$0xff] }
0x4862   :  { %v3549_v42 = vpop.permute.xlu1 %3548 }
0x4863   :  { %v3551_v36 = vmul.f32 %v5681_v11, %v3549_v42 }
0x4865   :  { %3553 = vrot.lane.b32.xlu0 %v3551_v36, %s5752_s7 }
0x48d7   :  { %v3554_v12 = vpop.permute.xlu0 %3553 }
0x48d8   :  { %v3556_v2 = vadd.f32 %v3554_v12, %v6764_v46 }
0x48da   :  { %5682 = vtanh.f32 %v3556_v2 }
0x48e7   :  { %v5683_v45 = vpop.eup %5682 }
0x48e8   :  { %3560 = vrot.lane.b32.xlu1 %v5683_v45, %s5753_s23 }
0x495a   :  { %v3561_v48 = vpop.permute.xlu1 %3560 }
0x495b   :  { %v3563_v50 = vmul.f32 %v3561_v48, %v3558_v58 }
0x495d   :  { %v3567_v39 = vadd.f32 %v3566_v49, %v3563_v50 }
0x495f   :  { %v3569_v57 = vrot.slane %v3567_v39, 4  ;;  %v4101_v44 = vsel %vm2171_vm6, %v4100_v53, %v3567_v39  ;;  %v3670_v24 = vrot.slane %v3567_v39, 6 }
0x4961   :  { %3570 = vrot.lane.b32.xlu0 %v3569_v57, %s5753_s23 }
0x49d3   :  { %v3571_v60 = vpop.permute.xlu0 %3570 }
0x49d4   :  { %5375 = vmatmul.mubr.msk.f32.vlgmr.msra.gmra.mxu1 %vm257_vm3, %v3571_v60 }
0x49d5   :  { %5389 = vmatpush3.msra.mxu1 %v6818_v62  ;;  %5396 = vmatprep.mubr.msk.f32.mxu1 %vm5751_vm5, %v5750_v35 }
0x49d6   :  { %5390 = vmatprep.subr.mxu1 %v5750_v35 }
0x49d7   :  { %5391 = vmatpush3.msra.mxu1 %v6827_v38 }
0x49d8   :  { %5392 = vmatprep.subr.mxu1 %v5750_v35 }
0x49d9   :  { %5393 = vmatpush3.msra.mxu1 %v6834_v4 }
0x49da   :  { %5394 = vmatprep.subr.mxu1 %v5750_v35 }
0x49db   :  { %5395 = vmatpush3.msra.mxu1 %v6841_v6 }
0x49dc   :  { %5410 = vmatprep.subr.mxu1 %v5750_v35 }
0x4a94   :  { %v3640_v59 = vpop.f32.mrf.mxu1 }
0x4a95   :  { %v3641_v7 = vadd.f32 %v6563_v16, %v3640_v59 }
0x4a96   :  { %v5376_v8 = vpop.f32.mrf.mxu1 }
0x4a97   :  { %v3645_v9 = vrot.slane %v3641_v7, 2 }
0x4a99   :  { %3654 = vrot.lane.b32.xlu1 %v3645_v9, %s5752_s7  ;;  %v3647_v10 = vadd.f32 %v3645_v9, %v6764_v46 }
0x4a9b   :  { %v4729_v13 = vmul.f32 -1.442695, %v3647_v10 }
0x4a9d   :  { %5684 = vpow2.f32 %v4729_v13 }
0x4aaa   :  { %v5685_v14 = vpop.eup %5684 }
0x4aab   :  { %v3651_v15 = vadd.f32 1.0, %v5685_v14 }
0x4aad   :  { %5686 = vrcp.f32 %v3651_v15 }
0x4aba   :  { %v5687_v43 = vpop.eup %5686 }
0x4abb   :  { %v3664_v52 = vsub.f32 1.0, %v5687_v43  ;;  %v3672_v26 = vmul.f32 %v5687_v43, %v3670_v24 }
0x4b0b   :  { %v3655_v17 = vpop.permute.xlu1 %3654 }
0x4b0c   :  { %v3657_v18 = vmul.f32 %v5687_v43, %v3655_v17 }
0x4b0e   :  { %3659 = vrot.lane.b32.xlu0 %v3657_v18, %s5752_s7 }
0x4b80   :  { %v3660_v19 = vpop.permute.xlu0 %3659 }
0x4b81   :  { %v3662_v20 = vadd.f32 %v3660_v19, %v6764_v46 }
0x4b83   :  { %5688 = vtanh.f32 %v3662_v20 }
0x4b90   :  { %v5689_v23 = vpop.eup %5688 }
0x4b91   :  { %3666 = vrot.lane.b32.xlu1 %v5689_v23, %s5753_s23 }
0x4c03   :  { %v3667_v25 = vpop.permute.xlu1 %3666 }
0x4c04   :  { %v3669_v27 = vmul.f32 %v3667_v25, %v3664_v52 }
0x4c06   :  { %v3673_v28 = vadd.f32 %v3672_v26, %v3669_v27 }
0x4c08   :  { %v3675_v29 = vrot.slane %v3673_v28, 6  ;;  %v6852_v30 = vsel %vm217_vm0, %v4101_v44, %v3673_v28 }
0x4c0a   :  { %3676 = vrot.lane.b32.xlu0 %v3675_v29, %s5753_s23 }
0x4c7c   :  { %v3677_v56 = vpop.permute.xlu0 %3676 }
0x4c7d   :  { %5386 = vmatmul.mubr.msk.f32.vlgmr.msra.gmra.mxu0 %vm257_vm3, %v3677_v56 }
0x4c7e   :  { %5400 = vmatpush3.msra.mxu0 %v6818_v62  ;;  %5407 = vmatprep.mubr.msk.f32.mxu0 %vm5751_vm5, %v5750_v35 }
0x4c7f   :  { %5401 = vmatprep.subr.mxu0 %v5750_v35 }
0x4c80   :  { %5402 = vmatpush3.msra.mxu0 %v6827_v38 }
0x4c81   :  { %5403 = vmatprep.subr.mxu0 %v5750_v35 }
0x4c82   :  { %5404 = vmatpush3.msra.mxu0 %v6834_v4 }
0x4c83   :  { %5405 = vmatprep.subr.mxu0 %v5750_v35 }
0x4c84   :  { %5406 = vmatpush3.msra.mxu0 %v6841_v6 }
0x4d3d   :  { %v3746_v46 = vpop.f32.mrf.mxu0 }
0x4d3e   :  { %v3747_v31 = vadd.f32 %v6563_v16, %v3746_v46 }
0x4d3f   :  { %v5387_v32 = vpop.f32.mrf.mxu0 }
0x4d40   :  { %3758 = vrot.lane.b32.xlu1 %v3747_v31, %s5752_s7  ;;  %v3750_v63 = vadd.f32 %v3747_v31, %v6869_v33 }
0x4d42   :  { %v4731_v34 = vmul.f32 -1.442695, %v3750_v63 }
0x4d44   :  { %5690 = vpow2.f32 %v4731_v34 }
0x4d51   :  { %v5691_v40 = vpop.eup %5690 }
0x4d52   :  { %v3754_v41 = vadd.f32 1.0, %v5691_v40 }
0x4d54   :  { %5692 = vrcp.f32 %v3754_v41 }
0x4d61   :  { %v5693_v1 = vpop.eup %5692 }
0x4d62   :  { %v3768_v5 = vsub.f32 1.0, %v5693_v1  ;;  %v3775_v36 = vmul.f32 %v5693_v1, %v3675_v29 }
0x4db2   :  { %v3759_v0 = vpop.permute.xlu1 %3758 }
0x4db3   :  { %v3761_v22 = vmul.f32 %v5693_v1, %v3759_v0 }
0x4db5   :  { %3763 = vrot.lane.b32.xlu0 %v3761_v22, %s5752_s7 }
0x4e27   :  { %v3764_v16 = vpop.permute.xlu0 %3763 }
0x4e28   :  { %v3766_v11 = vadd.f32 %v3764_v16, %v6869_v33 }
0x4e2a   :  { %5694 = vtanh.f32 %v3766_v11 }
0x4e37   :  { %v5695_v42 = vpop.eup %5694 }
0x4e38   :  { %3770 = vrot.lane.b32.xlu1 %v5695_v42, %s5753_s23 }
0x4eaa   :  { %v3771_v37 = vpop.permute.xlu1 %3770 }
0x4eab   :  { %v3773_v12 = vmul.f32 %v3771_v37, %v3768_v5 }
0x4ead   :  { %v6875_v2 = vadd.f32 %v3775_v36, %v3773_v12 }
0x4eaf   :  { %3778 = vrot.lane.b32.xlu0 %v6875_v2, %s5753_s23  ;;  %v3878_v7 = vrot.slane %v6875_v2, 6 }
0x4f21   :  { %v3779_v45 = vpop.permute.xlu0 %3778 }
0x4f22   :  { %5397 = vmatmul.mubr.msk.f32.vlgmr.msra.gmra.mxu1 %vm257_vm3, %v3779_v45 }
0x4f23   :  { %5411 = vmatpush3.msra.mxu1 %v6818_v62  ;;  %5418 = vmatprep.mubr.msk.f32.mxu1 %vm5751_vm5, %v5750_v35 }
0x4f24   :  { %5412 = vmatprep.subr.mxu1 %v5750_v35 }
0x4f25   :  { %5413 = vmatpush3.msra.mxu1 %v6827_v38 }
0x4f26   :  { %5414 = vmatprep.subr.mxu1 %v5750_v35 }
0x4f27   :  { %5415 = vmatpush3.msra.mxu1 %v6834_v4 }
0x4f28   :  { %5416 = vmatprep.subr.mxu1 %v5750_v35 }
0x4f29   :  { %5417 = vmatpush3.msra.mxu1 %v6841_v6 }
0x4fe2   :  { %v3848_v58 = vpop.f32.mrf.mxu1 }
0x4fe3   :  { %v3849_v48 = vadd.f32 %v6892_v47, %v3848_v58 }
0x4fe4   :  { %v5398_v49 = vpop.f32.mrf.mxu1 }
0x4fe5   :  { %v3853_v50 = vrot.slane %v3849_v48, 6 }
0x4fe7   :  { %3862 = vrot.lane.b32.xlu1 %v3853_v50, %s5752_s7  ;;  %v3855_v39 = vadd.f32 %v3853_v50, %v6869_v33 }
0x4fe9   :  { %v4733_v53 = vmul.f32 -1.442695, %v3855_v39 }
0x4feb   :  { %5696 = vpow2.f32 %v4733_v53 }
0x4ff8   :  { %v5697_v57 = vpop.eup %5696 }
0x4ff9   :  { %v3859_v35 = vadd.f32 1.0, %v5697_v57 }
0x4ffb   :  { %5698 = vrcp.f32 %v3859_v35 }
0x5008   :  { %v5699_v44 = vpop.eup %5698 }
0x5009   :  { %v3872_v59 = vsub.f32 1.0, %v5699_v44  ;;  %v3880_v10 = vmul.f32 %v5699_v44, %v3878_v7 }
0x5059   :  { %v3863_v60 = vpop.permute.xlu1 %3862 }
0x505a   :  { %v3865_v62 = vmul.f32 %v5699_v44, %v3863_v60 }
0x505c   :  { %3867 = vrot.lane.b32.xlu0 %v3865_v62, %s5752_s7 }
0x50ce   :  { %v3868_v38 = vpop.permute.xlu0 %3867 }
0x50cf   :  { %v3870_v4 = vadd.f32 %v3868_v38, %v6869_v33 }
0x50d1   :  { %5700 = vtanh.f32 %v3870_v4 }
0x50de   :  { %v5701_v6 = vpop.eup %5700 }
0x50df   :  { %3874 = vrot.lane.b32.xlu1 %v5701_v6, %s5753_s23 }
0x5151   :  { %v3875_v8 = vpop.permute.xlu1 %3874 }
0x5152   :  { %v3877_v9 = vmul.f32 %v3875_v8, %v3872_v59 }
0x5154   :  { %v3881_v13 = vadd.f32 %v3880_v10, %v3877_v9 }
0x5156   :  { %v3883_v14 = vrot.slane %v3881_v13, 2  ;;  %v3984_v31 = vrot.slane %v3881_v13, 6  ;;  %v4103_v41 = vsel %vm204_vm1, %v6875_v2, %v3881_v13 }
0x5158   :  { %3884 = vrot.lane.b32.xlu0 %v3883_v14, %s5753_s23 }
0x51ca   :  { %v3885_v15 = vpop.permute.xlu0 %3884 }
0x51cb   :  { %5408 = vmatmul.mubr.msk.f32.vlgmr.msra.gmra.mxu0 %vm257_vm3, %v3885_v15 }
0x528b   :  { %v3954_v43 = vpop.f32.mrf.mxu0 }
0x528c   :  { %v3955_v17 = vadd.f32 %v6892_v47, %v3954_v43 }
0x528d   :  { %v5409_v18 = vpop.f32.mrf.mxu0 }
0x528e   :  { %v3959_v19 = vrot.slane %v3955_v17, 4 }
0x5290   :  { %3968 = vrot.lane.b32.xlu1 %v3959_v19, %s5752_s7  ;;  %v3961_v20 = vadd.f32 %v3959_v19, %v6869_v33 }
0x5292   :  { %v4735_v23 = vmul.f32 -1.442695, %v3961_v20 }
0x5294   :  { %5702 = vpow2.f32 %v4735_v23 }
0x52a1   :  { %v5703_v52 = vpop.eup %5702 }
0x52a2   :  { %v3965_v24 = vadd.f32 1.0, %v5703_v52 }
0x52a4   :  { %5704 = vrcp.f32 %v3965_v24 }
0x52b1   :  { %v5705_v25 = vpop.eup %5704 }
0x52b2   :  { %v3978_v46 = vsub.f32 1.0, %v5705_v25  ;;  %v3986_v63 = vmul.f32 %v5705_v25, %v3984_v31  ;;  %v4738_v31 = vld [vmem:[%s7207_s15] ss:$0 sm:$0xff] }
0x5302   :  { %v3969_v26 = vpop.permute.xlu1 %3968 }
0x5303   :  { %v3971_v27 = vmul.f32 %v5705_v25, %v3969_v26 }
0x5305   :  { %3973 = vrot.lane.b32.xlu0 %v3971_v27, %s5752_s7 }
0x5377   :  { %v3974_v28 = vpop.permute.xlu0 %3973 }
0x5378   :  { %v3976_v29 = vadd.f32 %v3974_v28, %v6869_v33 }
0x537a   :  { %5706 = vtanh.f32 %v3976_v29 }
0x5387   :  { %v5707_v56 = vpop.eup %5706 }
0x5388   :  { %3980 = vrot.lane.b32.xlu1 %v5707_v56, %s5753_s23 }
0x53fa   :  { %v3981_v32 = vpop.permute.xlu1 %3980 }
0x53fb   :  { %v3983_v34 = vmul.f32 %v3981_v32, %v3978_v46 }
0x53fd   :  { %v3987_v40 = vadd.f32 %v3986_v63, %v3983_v34  ;;  %v4739_v34 = vld [vmem:[%s7208_s16] ss:$0 sm:$0xff] }
0x53ff   :  { %v3989_v1 = vrot.slane %v3987_v40, 4  ;;  %v4104_v0 = vsel %vm2171_vm6, %v4103_v41, %v3987_v40  ;;  %v4090_v60 = vrot.slane %v3987_v40, 6  ;;  %v4217_v40 = vld [vmem:[%s7209_s17 + $0x18] sm:$0xff]  ;;  %v4216_v41 = vld [vmem:[%s7209_s17 + $0x10] sm:$0xff] }
0x5400   :  { %5421 = vmatprep.subr.mxu0 %v4217_v40 }
0x5401   :  { %3990 = vrot.lane.b32.xlu0 %v3989_v1, %s5753_s23  ;;  %5422 = vmatpush3.msra.mxu0 %v4217_v40 }
0x5402   :  { %5423 = vmatprep.subr.mxu0 %v4216_v41 }
0x5403   :  { %5424 = vmatpush3.msra.mxu0 %v4216_v41 }
0x5473   :  { %v3991_v22 = vpop.permute.xlu0 %3990 }
0x5474   :  { %5419 = vmatmul.mubr.msk.f32.vlgmr.msra.gmra.mxu1 %vm257_vm3, %v3991_v22 }
0x5534   :  { %v4060_v16 = vpop.f32.mrf.mxu1 }
0x5535   :  { %v4061_v11 = vadd.f32 %v6892_v47, %v4060_v16 }
0x5536   :  { %v5420_v42 = vpop.f32.mrf.mxu1 }
0x5537   :  { %v4065_v5 = vrot.slane %v4061_v11, 2 }
0x5539   :  { %4074 = vrot.lane.b32.xlu1 %v4065_v5, %s5752_s7  ;;  %v4067_v37 = vadd.f32 %v4065_v5, %v6869_v33 }
0x553b   :  { %v4737_v36 = vmul.f32 -1.442695, %v4067_v37 }
0x553d   :  { %5708 = vpow2.f32 %v4737_v36 }
0x554a   :  { %v5709_v12 = vpop.eup %5708 }
0x554b   :  { %v4071_v2 = vadd.f32 1.0, %v5709_v12  ;;  %v4215_v12 = vld [vmem:[%s7209_s17 + $0x8] sm:$0xff] }
0x554c   :  { %5425 = vmatprep.subr.mxu0 %v4215_v12 }
0x554d   :  { %5710 = vrcp.f32 %v4071_v2  ;;  %v4214_v2 = vld [vmem:[%s7209_s17] sm:$0xff]  ;;  %5426 = vmatpush3.msra.mxu0 %v4215_v12 }
0x554e   :  { %5427 = vmatprep.subr.mxu0 %v4214_v2 }
0x554f   :  { %5428 = vmatpush3.msra.mxu0 %v4214_v2  ;;  %v4557_v2 = vld [vmem:[%s7211_s19 + $0x78] sm:$0xff] }
0x555a   :  { %v5711_v45 = vpop.eup %5710 }
0x555b   :  { %v4084_v44 = vsub.f32 1.0, %v5711_v45  ;;  %v4092_v38 = vmul.f32 %v5711_v45, %v4090_v60 }
0x55ab   :  { %v4075_v58 = vpop.permute.xlu1 %4074 }
0x55ac   :  { %v4077_v48 = vmul.f32 %v5711_v45, %v4075_v58 }
0x55ae   :  { %4079 = vrot.lane.b32.xlu0 %v4077_v48, %s5752_s7 }
0x55b2   :  { %4110 = vrot.lane.b32.xlu0 %v6660_v54, %s5753_s23 }
0x55b6   :  { %4114 = vrot.lane.b32.xlu0 %v6852_v30, %s5753_s23 }
0x5620   :  { %v4080_v47 = vpop.permute.xlu0 %4079 }
0x5621   :  { %v4082_v49 = vadd.f32 %v4080_v47, %v6869_v33 }
0x5623   :  { %5712 = vtanh.f32 %v4082_v49 }
0x5624   :  { %v4111_v50 = vpop.permute.xlu0 %4110 }
0x5625   :  { %v4122_v39 = vsel %vm257_vm3, %v4111_v50, 0.0 }
0x5626   :  { %4123 = vadd.xlane.f32.xlu0 %v4122_v39 }
0x5628   :  { %v4115_v53 = vpop.permute.xlu0 %4114 }
0x5629   :  { %v4128_v57 = vsel %vm257_vm3, %v4115_v53, 0.0 }
0x562a   :  { %4129 = vadd.xlane.f32.xlu0 %v4128_v57 }
0x5630   :  { %v5713_v35 = vpop.eup %5712 }
0x5631   :  { %4086 = vrot.lane.b32.xlu1 %v5713_v35, %s5753_s23 }
0x5635   :  { %4112 = vrot.lane.b32.xlu1 %v6746_v21, %s5753_s23 }
0x56a3   :  { %v4087_v62 = vpop.permute.xlu1 %4086 }
0x56a4   :  { %v4089_v33 = vmul.f32 %v4087_v62, %v4084_v44 }
0x56a6   :  { %v4093_v4 = vadd.f32 %v4092_v38, %v4089_v33 }
0x56a7   :  { %v4113_v59 = vpop.permute.xlu1 %4112 }
0x56a8   :  { %v4105_v6 = vsel %vm217_vm0, %v4104_v0, %v4093_v4  ;;  %v4125_v7 = vsel %vm257_vm3, %v4113_v59, 0.0 }
0x56a9   :  { %4116 = vrot.lane.b32.xlu1 %v4105_v6, %s5753_s23 }
0x56af   :  { %v4124_v8 = vpop.xlane.xlu0 %4123 }
0x56b0   :  { %v4134_v9 = vmul.f32 0.03125, %v4124_v8 }
0x56b2   :  { %v6932_v13 = vsub.f32 %v6660_v54, %v4134_v9 }
0x56b3   :  { %v4130_v10 = vpop.xlane.xlu0 %4129 }
0x56b4   :  { %v4136_v14 = vmul.f32 0.03125, %v4130_v10  ;;  %v4142_v15 = vmul.f32 %v6932_v13, %v6932_v13 }
0x56b6   :  { %v6937_v43 = vsub.f32 %v6852_v30, %v4136_v14 }
0x56b8   :  { %v4144_v17 = vmul.f32 %v6937_v43, %v6937_v43 }
0x56cd   :  { %4126 = vadd.xlane.f32.xlu1 %v4125_v7 }
0x56de   :  { %4150 = vrot.lane.b32.xlu1 %v4142_v15, %s5753_s23 }
0x56e2   :  { %4154 = vrot.lane.b32.xlu1 %v4144_v17, %s5753_s23  ;;  %v4740_v17 = vld [vmem:[%s7210_s18] ss:$0 sm:$0xff] }
0x571b   :  { %v4117_v18 = vpop.permute.xlu1 %4116 }
0x571c   :  { %v4131_v19 = vsel %vm257_vm3, %v4117_v18, 0.0 }
0x571d   :  { %4132 = vadd.xlane.f32.xlu0 %v4131_v19 }
0x5756   :  { %v4127_v54 = vpop.xlane.xlu1 %4126 }
0x5757   :  { %v4135_v20 = vmul.f32 0.03125, %v4127_v54 }
0x5759   :  { %v4139_v23 = vsub.f32 %v6746_v21, %v4135_v20 }
0x575a   :  { %v4151_v30 = vpop.permute.xlu1 %4150 }
0x575b   :  { %v4143_v52 = vmul.f32 %v4139_v23, %v4139_v23  ;;  %v4162_v24 = vsel %vm257_vm3, %v4151_v30, 0.0 }
0x575d   :  { %4152 = vrot.lane.b32.xlu0 %v4143_v52, %s5753_s23 }
0x575e   :  { %v4155_v25 = vpop.permute.xlu1 %4154 }
0x575f   :  { %v4168_v26 = vsel %vm257_vm3, %v4155_v25, 0.0 }
0x577c   :  { %4163 = vadd.xlane.f32.xlu0 %v4162_v24 }
0x5780   :  { %4169 = vadd.xlane.f32.xlu0 %v4168_v26 }
0x57a6   :  { %v4133_v27 = vpop.xlane.xlu0 %4132 }
0x57a7   :  { %v4137_v28 = vmul.f32 0.03125, %v4133_v27 }
0x57a9   :  { %v4141_v29 = vsub.f32 %v4105_v6, %v4137_v28  ;;  %v4573_v28 = vld [vmem:[%s7211_s19 + $0xf8] sm:$0xff] }
0x57aa   :  { %4988 = vmatprep.subr.mxu1 %v4573_v28 }
0x57ab   :  { %v4145_v56 = vmul.f32 %v4141_v29, %v4141_v29  ;;  %4989 = vmatpush3.msra.mxu1 %v4557_v2 }
0x57ad   :  { %4156 = vrot.lane.b32.xlu1 %v4145_v56, %s5753_s23 }
0x57cf   :  { %v4153_v46 = vpop.permute.xlu0 %4152 }
0x57d0   :  { %v4165_v21 = vsel %vm257_vm3, %v4153_v46, 0.0 }
0x57d1   :  { %4166 = vadd.xlane.f32.xlu1 %v4165_v21 }
0x57e2   :  { %4195 = vrot.lane.b32.xlu1 %v4738_v31, %s5749_s27 }
0x5805   :  { %v4164_v1 = vpop.xlane.xlu0 %4163 }
0x5806   :  { %v4174_v22 = vmul.f32 0.03125, %v4164_v1 }
0x5808   :  { %v4178_v5 = vadd.f32 1e-05, %v4174_v22 }
0x5809   :  { %v4170_v0 = vpop.xlane.xlu0 %4169 }
0x580a   :  { %v4176_v11 = vmul.f32 0.03125, %v4170_v0  ;;  %5714 = vrsqrt.f32 %v4178_v5 }
0x580c   :  { %v4180_v37 = vadd.f32 1e-05, %v4176_v11 }
0x580e   :  { %5716 = vrsqrt.f32 %v4180_v37 }
0x5817   :  { %v5715_v45 = vpop.eup %5714 }
0x5818   :  { %v4186_v50 = vmul.f32 %v5715_v45, %v6932_v13  ;;  %v4572_v45 = vld [vmem:[%s7211_s19 + $0xf0] sm:$0xff] }
0x5819   :  { %4990 = vmatprep.subr.mxu1 %v4572_v45  ;;  %v4559_v45 = vld [vmem:[%s7211_s19 + $0x88] sm:$0xff] }
0x581b   :  { %v5717_v58 = vpop.eup %5716 }
0x581c   :  { %v4188_v39 = vmul.f32 %v5717_v58, %v6937_v43  ;;  %v4556_v58 = vld [vmem:[%s7211_s19 + $0x70] sm:$0xff] }
0x581d   :  { %4991 = vmatpush3.msra.mxu1 %v4556_v58  ;;  %v4543_v58 = vld [vmem:[%s7211_s19 + $0x8] sm:$0xff] }
0x581f   :  { %v4157_v32 = vpop.permute.xlu1 %4156 }
0x5820   :  { %v4171_v63 = vsel %vm257_vm3, %v4157_v32, 0.0 }
0x5821   :  { %4172 = vadd.xlane.f32.xlu0 %v4171_v63 }
0x5837   :  { %4207 = vrot.lane.b32.xlu0 %v4739_v34, %s5749_s27 }
0x585a   :  { %v4167_v16 = vpop.xlane.xlu1 %4166 }
0x585b   :  { %v4175_v42 = vmul.f32 0.03125, %v4167_v16 }
0x585d   :  { %v4179_v36 = vadd.f32 1e-05, %v4175_v42 }
0x585e   :  { %v4196_v47 = vpop.permute.xlu1 %4195 }
0x585f   :  { %5718 = vrsqrt.f32 %v4179_v36  ;;  %v4198_v35 = vmul.f32 %v4196_v47, %v4186_v50  ;;  %v4200_v44 = vmul.f32 %v4196_v47, %v4188_v39  ;;  %v4555_v50 = vld [vmem:[%s7211_s19 + $0x68] sm:$0xff]  ;;  %v4570_v39 = vld [vmem:[%s7211_s19 + $0xe0] sm:$0xff] }
0x586c   :  { %v5719_v48 = vpop.eup %5718 }
0x586d   :  { %v4187_v57 = vmul.f32 %v5719_v48, %v4139_v23  ;;  %v4571_v48 = vld [vmem:[%s7211_s19 + $0xe8] sm:$0xff] }
0x586e   :  { %4992 = vmatprep.subr.mxu1 %v4571_v48  ;;  %v4558_v48 = vld [vmem:[%s7211_s19 + $0x80] sm:$0xff] }
0x586f   :  { %v4199_v4 = vmul.f32 %v4196_v47, %v4187_v57  ;;  %4993 = vmatpush3.msra.mxu1 %v4555_v50  ;;  %v4554_v57 = vld [vmem:[%s7211_s19 + $0x60] sm:$0xff] }
0x5870   :  { %4994 = vmatprep.subr.mxu1 %v4570_v39 }
0x5871   :  { %4995 = vmatpush3.msra.mxu1 %v4554_v57 }
0x58aa   :  { %v4173_v49 = vpop.xlane.xlu0 %4172 }
0x58ab   :  { %v4177_v53 = vmul.f32 0.03125, %v4173_v49 }
0x58ad   :  { %v4181_v60 = vadd.f32 1e-05, %v4177_v53 }
0x58ae   :  { %v4208_v62 = vpop.permute.xlu0 %4207 }
0x58af   :  { %5720 = vrsqrt.f32 %v4181_v60  ;;  %v4210_v38 = vadd.f32 %v4208_v62, %v4198_v35  ;;  %v4212_v33 = vadd.f32 %v4208_v62, %v4200_v44  ;;  %v4211_v6 = vadd.f32 %v4208_v62, %v4199_v4  ;;  %v4569_v35 = vld [vmem:[%s7211_s19 + $0xd8] sm:$0xff] }
0x58b0   :  { %4996 = vmatprep.subr.mxu1 %v4569_v35 }
0x58b1   :  { %4233 = vrot.lane.b32.xlu0 %v4212_v33, %s5753_s23  ;;  %4229 = vrot.lane.b32.xlu1 %v4210_v38, %s5753_s23  ;;  %v4553_v38 = vld [vmem:[%s7211_s19 + $0x58] sm:$0xff] }
0x58b2   :  { %4997 = vmatpush3.msra.mxu1 %v4553_v38 }
0x58b5   :  { %4231 = vrot.lane.b32.xlu1 %v4211_v6, %s5753_s23  ;;  %v4568_v6 = vld [vmem:[%s7211_s19 + $0xd0] sm:$0xff] }
0x58b6   :  { %4998 = vmatprep.subr.mxu1 %v4568_v6 }
0x58bc   :  { %v5721_v59 = vpop.eup %5720 }
0x58bd   :  { %v4189_v7 = vmul.f32 %v5721_v59, %v4141_v29  ;;  %v4552_v59 = vld [vmem:[%s7211_s19 + $0x50] sm:$0xff] }
0x58be   :  { %4999 = vmatpush3.msra.mxu1 %v4552_v59 }
0x58bf   :  { %v4201_v8 = vmul.f32 %v4196_v47, %v4189_v7  ;;  %v4567_v7 = vld [vmem:[%s7211_s19 + $0xc8] sm:$0xff] }
0x58c0   :  { %5000 = vmatprep.subr.mxu1 %v4567_v7 }
0x58c1   :  { %v4213_v9 = vadd.f32 %v4208_v62, %v4201_v8 }
0x58c3   :  { %4235 = vrot.lane.b32.xlu1 %v4213_v9, %s5753_s23 }
0x5923   :  { %v4230_v10 = vpop.permute.xlu1 %4229  ;;  %v4234_v14 = vpop.permute.xlu0 %4233 }
0x5924   :  { %5429 = vmatprep.mubr.msk.f32.mxu0 %vm257_vm3, %v4230_v10 }
0x5927   :  { %v4232_v13 = vpop.permute.xlu1 %4231 }
0x5928   :  { %5430 = vmatmul.mubr.msk.f32.vlgmr.msra.gmra.mxu0 %vm257_vm3, %v4232_v13 }
0x5929   :  { %5432 = vmatprep.mubr.msk.f32.mxu0 %vm257_vm3, %v4234_v14  ;;  %v4551_v14 = vld [vmem:[%s7211_s19 + $0x48] sm:$0xff] }
0x592a   :  { %5001 = vmatpush3.msra.mxu1 %v4551_v14 }
0x5935   :  { %v4236_v15 = vpop.permute.xlu1 %4235 }
0x5936   :  { %5433 = vmatmul.mubr.msk.f32.gmra.mxu0 %vm257_vm3, %v4236_v15 }
0x59e8   :  { %v5431_v43 = vpop.f32.mrf.mxu0 }
0x59e9   :  { %v4317_v54 = vadd.f32 %v5431_v43, %v4740_v17 }
0x59ea   :  { %v4311_v18 = vpop.f32.mrf.mxu0 }
0x59eb   :  { %v4312_v19 = vadd.f32 %v4740_v17, %v4311_v18  ;;  %v4331_v23 = vmax.f32 %v4317_v54, 0.0  ;;  %v4565_v18 = vld [vmem:[%s7211_s19 + $0xb8] sm:$0xff] }
0x59ed   :  { %v4330_v20 = vmax.f32 %v4312_v19, 0.0 }
0x59ef   :  { %4338 = vrot.lane.b32.xlu1 %v4330_v20, %s5754_s2 }
0x59f3   :  { %4340 = vrot.lane.b32.xlu1 %v4331_v23, %s5754_s2 }
0x59f6   :  { %v5434_v52 = vpop.f32.mrf.mxu0 }
0x59f7   :  { %v4327_v25 = vadd.f32 %v5434_v52, %v4740_v17 }
0x59f8   :  { %v4321_v30 = vpop.f32.mrf.mxu0 }
0x59f9   :  { %v4322_v24 = vadd.f32 %v4740_v17, %v4321_v30  ;;  %v4333_v27 = vmax.f32 %v4327_v25, 0.0  ;;  %v4550_v17 = vld [vmem:[%s7211_s19 + $0x40] sm:$0xff] }
0x59fb   :  { %v4332_v26 = vmax.f32 %v4322_v24, 0.0 }
0x59fd   :  { %4342 = vrot.lane.b32.xlu0 %v4332_v26, %s5754_s2 }
0x5a01   :  { %4344 = vrot.lane.b32.xlu0 %v4333_v27, %s5754_s2 }
0x5a61   :  { %v4339_v29 = vpop.permute.xlu1 %4338 }
0x5a62   :  { %v4350_v21 = vsub.f32 %v4330_v20, %v4339_v29 }
0x5a64   :  { %v4745_v32 = vmul.f32 -1.442695, %v4350_v21  ;;  %v4547_v21 = vld [vmem:[%s7211_s19 + $0x28] sm:$0xff] }
0x5a65   :  { %v4341_v56 = vpop.permute.xlu1 %4340 }
0x5a66   :  { %v4351_v46 = vsub.f32 %v4331_v23, %v4341_v56  ;;  %v4549_v23 = vld [vmem:[%s7211_s19 + $0x38] sm:$0xff] }
0x5a68   :  { %v4746_v31 = vmul.f32 -1.442695, %v4351_v46  ;;  %v4563_v46 = vld [vmem:[%s7211_s19 + $0xa8] sm:$0xff] }
0x5a6a   :  { %5722 = vpow2.f32 %v4746_v31 }
0x5a6b   :  { %5724 = vpow2.f32 %v4745_v32 }
0x5a6f   :  { %v4343_v63 = vpop.permute.xlu0 %4342 }
0x5a70   :  { %v4352_v34 = vsub.f32 %v4332_v26, %v4343_v63  ;;  %v4564_v26 = vld [vmem:[%s7211_s19 + $0xb0] sm:$0xff] }
0x5a72   :  { %v4747_v40 = vmul.f32 -1.442695, %v4352_v34  ;;  %v4546_v34 = vld [vmem:[%s7211_s19 + $0x20] sm:$0xff] }
0x5a73   :  { %v4345_v41 = vpop.permute.xlu0 %4344 }
0x5a74   :  { %5726 = vpow2.f32 %v4747_v40  ;;  %v4353_v1 = vsub.f32 %v4333_v27, %v4345_v41  ;;  %v4548_v27 = vld [vmem:[%s7211_s19 + $0x30] sm:$0xff] }
0x5a76   :  { %v4748_v0 = vmul.f32 -1.442695, %v4353_v1 }
0x5a77   :  { %v5723_v22 = vpop.eup %5722 }
0x5a78   :  { %5728 = vpow2.f32 %v4748_v0  ;;  %v5725_v16 = vpop.eup %5724  ;;  %v4367_v11 = vadd.f32 1.0, %v5723_v22  ;;  %v4561_v0 = vld [vmem:[%s7211_s19 + $0x98] sm:$0xff] }
0x5a79   :  { %v4366_v5 = vadd.f32 1.0, %v5725_v16  ;;  %v4545_v22 = vld [vmem:[%s7211_s19 + $0x18] sm:$0xff] }
0x5a7a   :  { %5730 = vrcp.f32 %v4367_v11 }
0x5a81   :  { %v5727_v42 = vpop.eup %5726 }
0x5a82   :  { %v4368_v37 = vadd.f32 1.0, %v5727_v42 }
0x5a84   :  { %5732 = vrcp.f32 %v4368_v37  ;;  %v4544_v37 = vld [vmem:[%s7211_s19 + $0x10] sm:$0xff] }
0x5a85   :  { %v5729_v36 = vpop.eup %5728  ;;  %5734 = vrcp.f32 %v4366_v5  ;;  %v4560_v5 = vld [vmem:[%s7211_s19 + $0x90] sm:$0xff] }
0x5a86   :  { %v4369_v12 = vadd.f32 1.0, %v5729_v36 }
0x5a87   :  { %v5731_v47 = vpop.eup %5730 }
0x5a88   :  { %5736 = vrcp.f32 %v4369_v12  ;;  %v7016_v44 = vmul.f32 %v5731_v47, %v6012_v55  ;;  %v4542_v47 = vld [vmem:[%s7211_s19] sm:$0xff] }
0x5a8a   :  { %v7043_v9 = vsub.f32 %v6012_v55, %v7016_v44  ;;  %v4403_v50 = vrot.slane %v7016_v44, 2  ;;  %v4407_v38 = vrot.slane %v7016_v44, 4  ;;  %v4411_v7 = vrot.slane %v7016_v44, 6 }
0x5a8c   :  { %v4479_v54 = vrot.slane %v7043_v9, 2  ;;  %v4483_v29 = vrot.slane %v7043_v9, 4  ;;  %v4487_v57 = vrot.slane %v7043_v9, 6 }
0x5a91   :  { %v5733_v49 = vpop.eup %5732 }
0x5a92   :  { %v5735_v53 = vpop.eup %5734  ;;  %v7019_v60 = vmul.f32 %v5733_v49, %v6018_v61 }
0x5a93   :  { %v7025_v33 = vmul.f32 %v5735_v53, %v6008_v51 }
0x5a94   :  { %v4416_v13 = vrot.slane %v7019_v60, 2  ;;  %v4420_v20 = vrot.slane %v7019_v60, 4  ;;  %v7078_v25 = vsub.f32 %v6018_v61, %v7019_v60  ;;  %v4424_v56 = vrot.slane %v7019_v60, 6 }
0x5a95   :  { %v5737_v62 = vpop.eup %5736  ;;  %v4387_v55 = vrot.slane %v7025_v33, 2  ;;  %v4391_v30 = vrot.slane %v7025_v33, 4  ;;  %v7091_v61 = vsub.f32 %v6008_v51, %v7025_v33  ;;  %v4395_v32 = vrot.slane %v7025_v33, 6  ;;  %v4562_v51 = vld [vmem:[%s7211_s19 + $0xa0] sm:$0xff] }
0x5a96   :  { %v7028_v4 = vmul.f32 %v5737_v62, %v6028_v3  ;;  %v4496_v63 = vrot.slane %v7078_v25, 4  ;;  %v4492_v1 = vrot.slane %v7078_v25, 2  ;;  %v4500_v42 = vrot.slane %v7078_v25, 6 }
0x5a97   :  { %v5454_v19 = vpack.i.bf16 %v4387_v55, %v4416_v13  ;;  %v5459_v28 = vpack.i.bf16 %v4391_v30, %v4420_v20  ;;  %v5464_v40 = vpack.i.bf16 %v4395_v32, %v4424_v56  ;;  %v4467_v41 = vrot.slane %v7091_v61, 4 }
0x5a98   :  { %v5444_v8 = vpack.i.bf16 %v7016_v44, %v7028_v4  ;;  %v7047_v10 = vsub.f32 %v6028_v3, %v7028_v4  ;;  %v4566_v3 = vld [vmem:[%s7211_s19 + $0xc0] sm:$0xff]  ;;  %v4463_v11 = vrot.slane %v7091_v61, 2  ;;  %v4471_v12 = vrot.slane %v7091_v61, 6 }
0x5a99   :  { %5002 = vmatprep.subr.mxu1 %v4566_v3  ;;  %v5489_v16 = vpack.i.bf16 %v4467_v41, %v4496_v63  ;;  %v4432_v2 = vrot.slane %v7028_v4, 2  ;;  %v4436_v35 = vrot.slane %v7028_v4, 4  ;;  %v4440_v6 = vrot.slane %v7028_v4, 6 }
0x5a9a   :  { %5445 = vrot.lane.b32.xlu0 %v5444_v8, %s5752_s7  ;;  %v5449_v15 = vpack.i.bf16 %v7043_v9, %v7047_v10  ;;  %v4508_v43 = vrot.slane %v7047_v10, 2  ;;  %5003 = vmatpush3.msra.mxu1 %v4550_v17  ;;  %v4512_v24 = vrot.slane %v7047_v10, 4  ;;  %v5479_v36 = vpack.i.bf16 %v4463_v11, %v4492_v1 }
0x5a9b   :  { %5004 = vmatprep.subr.mxu1 %v4565_v18  ;;  %v5494_v49 = vpack.i.bf16 %v4471_v12, %v4500_v42  ;;  %v4516_v39 = vrot.slane %v7047_v10, 6  ;;  %v5484_v53 = vpack.i.bf16 %v4403_v50, %v4432_v2  ;;  %v5504_v59 = vpack.i.bf16 %v4407_v38, %v4436_v35 }
0x5a9c   :  { %5450 = vrot.lane.b32.xlu1 %v5449_v15, %s5752_s7  ;;  %v5469_v52 = vpack.i.bf16 %v4479_v54, %v4508_v43  ;;  %5005 = vmatpush3.msra.mxu1 %v4549_v23  ;;  %v5474_v31 = vpack.i.bf16 %v4483_v29, %v4512_v24  ;;  %v5509_v8 = vpack.i.bf16 %v4411_v7, %v4440_v6 }
0x5a9d   :  { %5006 = vmatprep.subr.mxu1 %v4564_v26  ;;  %v5499_v62 = vpack.i.bf16 %v4487_v57, %v4516_v39 }
0x5a9e   :  { %5455 = vrot.lane.b32.xlu0 %v5454_v19, %s5748_s25  ;;  %5007 = vmatpush3.msra.mxu1 %v4548_v27 }
0x5a9f   :  { %5008 = vmatprep.subr.mxu1 %v4563_v46 }
0x5aa0   :  { %5470 = vrot.lane.b32.xlu1 %v5469_v52, %s5755_s9  ;;  %5009 = vmatpush3.msra.mxu1 %v4547_v21 }
0x5aa1   :  { %5010 = vmatprep.subr.mxu1 %v4562_v51 }
0x5aa2   :  { %5460 = vrot.lane.b32.xlu0 %v5459_v28, %s5749_s27  ;;  %5011 = vmatpush3.msra.mxu1 %v4546_v34 }
0x5aa3   :  { %5012 = vmatprep.subr.mxu1 %v4561_v0 }
0x5aa4   :  { %5475 = vrot.lane.b32.xlu1 %v5474_v31, %s5753_s23  ;;  %5013 = vmatpush3.msra.mxu1 %v4545_v22 }
0x5aa5   :  { %5014 = vmatprep.subr.mxu1 %v4560_v5 }
0x5aa6   :  { %5465 = vrot.lane.b32.xlu0 %v5464_v40, %s5756_s26  ;;  %5015 = vmatpush3.msra.mxu1 %v4544_v37 }
0x5aa7   :  { %5016 = vmatprep.subr.mxu1 %v4559_v45 }
0x5aa8   :  { %5490 = vrot.lane.b32.xlu1 %v5489_v16, %s5749_s27  ;;  %5017 = vmatpush3.msra.mxu1 %v4543_v58 }
0x5aa9   :  { %5018 = vmatprep.subr.mxu1 %v4558_v48 }
0x5aaa   :  { %5480 = vrot.lane.b32.xlu0 %v5479_v36, %s5748_s25  ;;  %5019 = vmatpush3.msra.mxu1 %v4542_v47 }
0x5aac   :  { %5495 = vrot.lane.b32.xlu1 %v5494_v49, %s5756_s26 }
0x5aae   :  { %5485 = vrot.lane.b32.xlu0 %v5484_v53, %s5755_s9 }
0x5ab0   :  { %5500 = vrot.lane.b32.xlu1 %v5499_v62, %s5754_s2 }
0x5ab2   :  { %5505 = vrot.lane.b32.xlu0 %v5504_v59, %s5753_s23 }
0x5ab4   :  { %5510 = vrot.lane.b32.xlu1 %v5509_v8, %s5754_s2 }
0x5b0c   :  { %v5446_v9 = vpop.permute.xlu0 %5445 }
0x5b0d   :  { %v5448_v18 = vunpack.i.h.bf16 %v5446_v9  ;;  %v5447_v44 = vunpack.i.l.bf16 %v5446_v9 }
0x5b0e   :  { %v5451_v10 = vpop.permute.xlu1 %5450 }
0x5b0f   :  { %v5453_v19 = vunpack.i.h.bf16 %v5451_v10  ;;  %v5452_v54 = vunpack.i.l.bf16 %v5451_v10 }
0x5b10   :  { %v5456_v13 = vpop.permute.xlu0 %5455 }
0x5b11   :  { %v5458_v43 = vunpack.i.h.bf16 %v5456_v13  ;;  %v5457_v3 = vunpack.i.l.bf16 %v5456_v13 }
0x5b12   :  { %v5471_v14 = vpop.permute.xlu1 %5470 }
0x5b13   :  { %v4444_v20 = vsel %vm252_vm2, %v7025_v33, %v5458_v43  ;;  %v4455_v23 = vsel %vm252_vm2, %v7019_v60, %v5457_v3  ;;  %v5473_v56 = vunpack.i.h.bf16 %v5471_v14  ;;  %v5472_v46 = vunpack.i.l.bf16 %v5471_v14 }
0x5b14   :  { %v5461_v15 = vpop.permute.xlu0 %5460 }
0x5b15   :  { %v5463_v52 = vunpack.i.h.bf16 %v5461_v15  ;;  %v5462_v30 = vunpack.i.l.bf16 %v5461_v15 }
0x5b16   :  { %v5476_v55 = vpop.permute.xlu1 %5475 }
0x5b17   :  { %v4445_v34 = vsel %vm257_vm3, %v4444_v20, %v5463_v52  ;;  %v4456_v40 = vsel %vm257_vm3, %v4455_v23, %v5462_v30  ;;  %v5478_v12 = vunpack.i.h.bf16 %v5476_v55  ;;  %v5477_v2 = vunpack.i.l.bf16 %v5476_v55 }
0x5b18   :  { %v5466_v17 = vpop.permute.xlu0 %5465 }
0x5b19   :  { %v5468_v26 = vunpack.i.h.bf16 %v5466_v17  ;;  %v5467_v27 = vunpack.i.l.bf16 %v5466_v17 }
0x5b1a   :  { %v5491_v4 = vpop.permute.xlu1 %5490 }
0x5b1b   :  { %v5493_v21 = vunpack.i.h.bf16 %v5491_v4  ;;  %v5492_v31 = vunpack.i.l.bf16 %v5491_v4  ;;  %v4446_v22 = vsel %vm275_vm4, %v4445_v34, %v5468_v26  ;;  %v4457_v16 = vsel %vm275_vm4, %v4456_v40, %v5467_v27 }
0x5b1c   :  { %v5481_v24 = vpop.permute.xlu0 %5480  ;;  %v4448_v48 = vsel %vm4447_vm7, %v4446_v22, %v5448_v18  ;;  %v4458_v47 = vsel %vm4447_vm7, %v4457_v16, %v5447_v44  ;;  %v4749_v44 = vld [vmem:[%s7212_s20] ss:$0 sm:$0xff] }
0x5b1d   :  { %v5483_v28 = vunpack.i.h.bf16 %v5481_v24  ;;  %v5482_v29 = vunpack.i.l.bf16 %v5481_v24 }
0x5b1e   :  { %v5496_v32 = vpop.permute.xlu1 %5495 }
0x5b1f   :  { %v4520_v63 = vsel %vm252_vm2, %v7091_v61, %v5483_v28  ;;  %v4527_v33 = vsel %vm252_vm2, %v7078_v25, %v5482_v29  ;;  %v5498_v51 = vunpack.i.h.bf16 %v5496_v32  ;;  %v5497_v60 = vunpack.i.l.bf16 %v5496_v32 }
0x5b20   :  { %v4521_v41 = vsel %vm257_vm3, %v4520_v63, %v5493_v21  ;;  %v4528_v1 = vsel %vm257_vm3, %v4527_v33, %v5492_v31  ;;  %v5486_v0 = vpop.permute.xlu0 %5485 }
0x5b21   :  { %v4522_v61 = vsel %vm275_vm4, %v4521_v41, %v5498_v51  ;;  %v4529_v11 = vsel %vm275_vm4, %v4528_v1, %v5497_v60  ;;  %v5488_v5 = vunpack.i.h.bf16 %v5486_v0  ;;  %v5487_v37 = vunpack.i.l.bf16 %v5486_v0 }
0x5b22   :  { %v4523_v25 = vsel %vm4447_vm7, %v4522_v61, %v5453_v19  ;;  %v4530_v42 = vsel %vm4447_vm7, %v4529_v11, %v5452_v54  ;;  %v5501_v36 = vpop.permute.xlu1 %5500 }
0x5b23   :  { %v5503_v45 = vunpack.i.h.bf16 %v5501_v36  ;;  %v5502_v58 = vunpack.i.l.bf16 %v5501_v36  ;;  %v4524_v49 = vsel %vm4449_vm8, %v4523_v25, %v5473_v56  ;;  %v4531_v50 = vsel %vm4449_vm8, %v4530_v42, %v5472_v46 }
0x5b24   :  { %v5506_v39 = vpop.permute.xlu0 %5505  ;;  %v4525_v53 = vsel %vm4451_vm9, %v4524_v49, %v5478_v12  ;;  %v4532_v57 = vsel %vm4451_vm9, %v4531_v50, %v5477_v2  ;;  %v4450_v38 = vsel %vm4449_vm8, %v4448_v48, %v5488_v5  ;;  %v4459_v6 = vsel %vm4449_vm8, %v4458_v47, %v5487_v37 }
0x5b25   :  { %v5508_v35 = vunpack.i.h.bf16 %v5506_v39  ;;  %v5507_v62 = vunpack.i.l.bf16 %v5506_v39  ;;  %v4526_v59 = vsel %vm4453_vm10, %v4525_v53, %v5503_v45  ;;  %v4533_v7 = vsel %vm4453_vm10, %v4532_v57, %v5502_v58 }
0x5b26   :  { %v5511_v8 = vpop.permute.xlu1 %5510  ;;  %v4536_v14 = vrot.slane %v4526_v59, 6  ;;  %v4537_v43 = vrot.slane %v4533_v7, 6 }
0x5b27   :  { %v4452_v9 = vsel %vm4451_vm9, %v4450_v38, %v5508_v35  ;;  %v4460_v10 = vsel %vm4451_vm9, %v4459_v6, %v5507_v62  ;;  %v5513_v13 = vunpack.i.h.bf16 %v5511_v8  ;;  %v5512_v15 = vunpack.i.l.bf16 %v5511_v8 }
0x5b29   :  { %v4454_v55 = vsel %vm4453_vm10, %v4452_v9, %v5513_v13  ;;  %v4461_v3 = vsel %vm4453_vm10, %v4460_v10, %v5512_v15 }
0x5b2a   :  { %v4540_v17 = vsel %vm204_vm1, %v4454_v55, %v4536_v14  ;;  %v4541_v4 = vsel %vm204_vm1, %v4461_v3, %v4537_v43 }
0x5b2b   :  { %4645 = vmatprep.mubr.f32.mxu1 %v4541_v4 }
0x5b2c   :  { %4646 = vmatmul.mubr.f32.vlgmr.msra.gmra.mxu1 %v4540_v17 }
0x5bec   :  { %v5020_v18 = vpop.f32.mrf.mxu1 }
0x5bee   :  { %v5021_v19 = vpop.f32.mrf.mxu1 }
0x5bef   :  { %v5022_v54 = vadd.f32 %v5021_v19, %v5020_v18 }
0x5bf1   :  { %v4648_v20 = vadd.f32 %v5022_v54, %v4749_v44 }
0x5bf3   :  { %4651 = vst [vmem:[%s7213_s21] sm:$0xf] %v4648_v20 }

</bundles_post_ra>
